<compile_context>
chip_gen: v7x
topology: tpu7x:2x2x1
jax: 0.10.0
libtpu: 0.0.40
codegen_flags: <defaults>
</compile_context>

<pallas_src>
import math
import functools
import itertools

import jax
import jax.numpy as jnp
from jax.experimental import pallas as pl
from jax.experimental.pallas import tpu as pltpu

F32 = jnp.float32
BF16 = jnp.bfloat16
LN_EPS = 1e-5
NEG_INF = -1e30  # finite large-negative avoids exp(-inf - -inf) NaN corner cases

VMEM_SPEC = pl.BlockSpec(memory_space=pltpu.MemorySpace.VMEM)


# -----------------------------------------------------------------------------
# In-kernel building blocks (values are VMEM-resident; math in f32, dots in bf16)
# -----------------------------------------------------------------------------

def _layernorm(z, g, b, eps=LN_EPS):
    # one-pass moments: var = E[x^2] - E[x]^2 (halves the cross-lane XLU reductions)
    mu = jnp.mean(z, axis=-1, keepdims=True)
    m2 = jnp.mean(z * z, axis=-1, keepdims=True)
    var = m2 - mu * mu
    return (z - mu) * jax.lax.rsqrt(var + eps) * g + b


def _softmax_lastdim(s):
    m = jnp.max(s, axis=-1, keepdims=True)
    p = jnp.exp(s - m)
    # reciprocal rides the EUP slot (approx=True: ~1e-3 rel err; use False for validation)
    return p * pl.reciprocal(jnp.sum(p, axis=-1, keepdims=True), approx=True)


def _ffn(x2, w1, b1, w2, b2):
    h = jnp.maximum(jnp.dot(x2.astype(BF16), w1, preferred_element_type=jnp.float32) + b1, 0.0)
    return jnp.dot(h.astype(BF16), w2, preferred_element_type=jnp.float32) + b2


def _mha_self(x2, nhead, wqkv, bqkv, wo, bo, *, S, causal):
    # x2: (Bblk*S, D) f32; wqkv bf16 (D,3D) with q block pre-scaled by 1/sqrt(Dh);
    # bqkv f32 (1,3D); wo bf16 (D,D); bo f32 (1,D)
    BS, D = x2.shape
    Bblk = BS // S
    Dh = D // nhead
    qkv = jnp.dot(x2.astype(BF16), wqkv, preferred_element_type=jnp.float32) + bqkv
    qkv3 = qkv.reshape(Bblk, S, 3 * D).astype(BF16)      # cast once for all head slices

    keep = None
    if causal:  # hoisted out of the per-head loop (no CSE for broadcast_in_dim)
        row = jax.lax.broadcasted_iota(jnp.int32, (S, S), 0)
        col = jax.lax.broadcasted_iota(jnp.int32, (S, S), 1)
        keep = col <= row

    acc = jnp.zeros((BS, D), jnp.float32)
    for h in range(nhead):                                # static lane slices, no concat
        qh = qkv3[:, :, h * Dh:(h + 1) * Dh]
        kh = qkv3[:, :, D + h * Dh:D + (h + 1) * Dh]
        vh = qkv3[:, :, 2 * D + h * Dh:2 * D + (h + 1) * Dh]
        s = jnp.einsum('bqd,bkd->bqk', qh, kh, preferred_element_type=jnp.float32)
        if causal:
            s = jnp.where(keep, s, NEG_INF)
        p = _softmax_lastdim(s).astype(BF16)
        ho = jnp.einsum('bqk,bkd->bqd', p, vh, preferred_element_type=jnp.float32)
        # fuse the output projection into the head loop: acc += head_out @ Wo[h-rows]
        acc = acc + jnp.dot(ho.reshape(BS, Dh).astype(BF16),
                            wo[h * Dh:(h + 1) * Dh, :],
                            preferred_element_type=jnp.float32)
    return acc + bo


def _mha_cross(xq2, mem3_bf, nhead, wq, bq, wkv, bkv, wo, bo):
    # xq2: (Bblk*St, D) f32; mem3_bf: (Bblk, Ss, D) bf16 (already bf16 from the encoder)
    Bblk, Ss, D = mem3_bf.shape
    St = xq2.shape[0] // Bblk
    Dh = D // nhead
    q = jnp.dot(xq2.astype(BF16), wq, preferred_element_type=jnp.float32) + bq
    q3 = q.reshape(Bblk, St, D).astype(BF16)
    kv = jnp.dot(mem3_bf.reshape(Bblk * Ss, D), wkv, preferred_element_type=jnp.float32) + bkv
    kv3 = kv.reshape(Bblk, Ss, 2 * D).astype(BF16)

    acc = jnp.zeros((Bblk * St, D), jnp.float32)
    for h in range(nhead):
        qh = q3[:, :, h * Dh:(h + 1) * Dh]
        kh = kv3[:, :, h * Dh:(h + 1) * Dh]
        vh = kv3[:, :, D + h * Dh:D + (h + 1) * Dh]
        s = jnp.einsum('bqd,bkd->bqk', qh, kh, preferred_element_type=jnp.float32)
        p = _softmax_lastdim(s).astype(BF16)
        ho = jnp.einsum('bqk,bkd->bqd', p, vh, preferred_element_type=jnp.float32)
        acc = acc + jnp.dot(ho.reshape(Bblk * St, Dh).astype(BF16),
                            wo[h * Dh:(h + 1) * Dh, :],
                            preferred_element_type=jnp.float32)
    return acc + bo


# -----------------------------------------------------------------------------
# Fused stack kernels (grid = (batch_blocks, nlayers); activation in VMEM scratch)
# -----------------------------------------------------------------------------

def _encoder_stack_kernel(x_ref, pe_ref,
                          wqkv_ref, bqkv_ref, wo_ref, bo_ref, ln1g_ref, ln1b_ref,
                          w1_ref, b1_ref, w2_ref, b2_ref, ln2g_ref, ln2b_ref,
                          fng_ref, fnb_ref,
                          o_ref, x_scr, *, nhead):
    layer = pl.program_id(1)

    @pl.when(layer == 0)
    def _():
        # positional encoding fused into the first layer step
        x_scr[...] = x_ref[...] + pe_ref[...]

    Bblk, S, D = x_scr.shape
    x = x_scr[...].reshape(Bblk * S, D)                   # f32, stays resident in VMEM

    sa = _mha_self(x, nhead, wqkv_ref[0], bqkv_ref[0], wo_ref[0], bo_ref[0],
                   S=S, causal=False)
    x = _layernorm(x + sa, ln1g_ref[0], ln1b_ref[0])
    ff = _ffn(x, w1_ref[0], b1_ref[0], w2_ref[0], b2_ref[0])
    x = _layernorm(x + ff, ln2g_ref[0], ln2b_ref[0])

    x_scr[...] = x.reshape(Bblk, S, D)

    @pl.when(layer == pl.num_programs(1) - 1)
    def _():
        # nn.Transformer encoder-final LayerNorm fused into the last layer step;
        # memory emitted in bf16 -- it is only ever an MXU operand downstream.
        y = _layernorm(x, fng_ref[...], fnb_ref[...])
        o_ref[...] = y.reshape(Bblk, S, D).astype(o_ref.dtype)


def _decoder_stack_kernel(x_ref, mem_ref, pe_ref,
                          wqkv_ref, bqkv_ref, wos_ref, bos_ref, ln1g_ref, ln1b_ref,
                          wqc_ref, bqc_ref, wkvc_ref, bkvc_ref, woc_ref, boc_ref,
                          ln2g_ref, ln2b_ref,
                          w1_ref, b1_ref, w2_ref, b2_ref, ln3g_ref, ln3b_ref,
                          o_ref, x_scr, *, nhead, causal):
    layer = pl.program_id(1)

    @pl.when(layer == 0)
    def _():
        x_scr[...] = x_ref[...] + pe_ref[...]

    Bblk, St, D = x_scr.shape
    x = x_scr[...].reshape(Bblk * St, D)
    mem_bf = mem_ref[...]                                  # (Bblk, Ss, D) bf16

    # self-attention block (post-norm, causal)
    sa = _mha_self(x, nhead, wqkv_ref[0], bqkv_ref[0], wos_ref[0], bos_ref[0],
                   S=St, causal=causal)
    x = _layernorm(x + sa, ln1g_ref[0], ln1b_ref[0])
    # cross-attention block
    ca = _mha_cross(x, mem_bf, nhead, wqc_ref[0], bqc_ref[0],
                    wkvc_ref[0], bkvc_ref[0], woc_ref[0], boc_ref[0])
    x = _layernorm(x + ca, ln2g_ref[0], ln2b_ref[0])
    # feed-forward block
    ff = _ffn(x, w1_ref[0], b1_ref[0], w2_ref[0], b2_ref[0])
    x = _layernorm(x + ff, ln3g_ref[0], ln3b_ref[0])

    x_scr[...] = x.reshape(Bblk, St, D)

    @pl.when(layer == pl.num_programs(1) - 1)
    def _():
        o_ref[...] = x.reshape(Bblk, St, D).astype(o_ref.dtype)


def _head_kernel(x_ref, ng_ref, nb_ref, wl_ref, bl_ref, lg_ref, lb_ref,
                 w2_ref, b2_ref, o_ref):
    # decoder-final LayerNorm applied only to the kept pred_len tokens (per-token op),
    # then Linear(D,512) -> LN(512) -> ReLU -> Linear(512, d_out padded to 128 lanes)
    x = _layernorm(x_ref[...], ng_ref[...], nb_ref[...])
    y = jnp.dot(x.astype(BF16), wl_ref[...], preferred_element_type=jnp.float32) + bl_ref[...]
    y = jnp.maximum(_layernorm(y, lg_ref[...], lb_ref[...]), 0.0)
    o_ref[...] = jnp.dot(y.astype(BF16), w2_ref[...],
                         preferred_element_type=jnp.float32) + b2_ref[...]


# -----------------------------------------------------------------------------
# pallas_call wrappers
# -----------------------------------------------------------------------------

_ENC_KEYS = ("wqkv", "bqkv", "wo", "bo", "ln1_g", "ln1_b",
             "w1", "b1", "w2", "b2", "ln2_g", "ln2_b")

_DEC_KEYS = ("wqkv_s", "bqkv_s", "wo_s", "bo_s", "ln1_g", "ln1_b",
             "wq_c", "bq_c", "wkv_c", "bkv_c", "wo_c", "bo_c", "ln2_g", "ln2_b",
             "w1", "b1", "w2", "b2", "ln3_g", "ln3_b")


def _layer_weight_spec(a):
    # per-layer slice of a (nlayers, ...) stacked weight; re-DMA'd (double-buffered)
    # each layer step so layer l+1 weights prefetch under layer l compute.
    nd = a.ndim
    return pl.BlockSpec((1,) + a.shape[1:],
                        lambda b, l, _nd=nd: (l,) + (0,) * (_nd - 1))


def _const_spec(a):
    nd = a.ndim
    return pl.BlockSpec(a.shape, lambda b, l, _nd=nd: (0,) * _nd)


def _pick_batch_block(B, S, rows_target=256):
    # Enough rows per grid step to keep the MXU M dimension busy, but keep >=2 batch
    # blocks when possible so the "parallel" axis can shard across TensorCores (v7x).
    bblk = max(1, min(B, rows_target // max(S, 1)))
    while B % bblk:
        bblk -= 1
    if B > 1 and B // bblk < 2:
        bblk = max(1, bblk // 2)
        while B % bblk:
            bblk -= 1
    return bblk


def encoder_stack(x, pe, p, norm_g, norm_b, nhead, bblk):
    B, S, D = x.shape
    L = p["wqkv"].shape[0]
    x_spec = pl.BlockSpec((bblk, S, D), lambda b, l: (b, 0, 0))
    pe_spec = pl.BlockSpec((1, S, D), lambda b, l: (0, 0, 0))
    weights = [p[k] for k in _ENC_KEYS]
    return pl.pallas_call(
        functools.partial(_encoder_stack_kernel, nhead=nhead),
        out_shape=jax.ShapeDtypeStruct((B, S, D), BF16),
        grid=(B // bblk, L),
        in_specs=([x_spec, pe_spec] + [_layer_weight_spec(w) for w in weights]
                  + [_const_spec(norm_g), _const_spec(norm_b)]),
        out_specs=x_spec,
        scratch_shapes=[pltpu.VMEM((bblk, S, D), F32)],
        compiler_params=pltpu.CompilerParams(
            dimension_semantics=("parallel", "arbitrary")),
    )(x, pe, *weights, norm_g, norm_b)


def decoder_stack(x, mem, pe, p, nhead, causal, bblk):
    B, St, D = x.shape
    Ss = mem.shape[1]
    L = p["wqkv_s"].shape[0]
    x_spec = pl.BlockSpec((bblk, St, D), lambda b, l: (b, 0, 0))
    mem_spec = pl.BlockSpec((bblk, Ss, D), lambda b, l: (b, 0, 0))
    pe_spec = pl.BlockSpec((1, St, D), lambda b, l: (0, 0, 0))
    weights = [p[k] for k in _DEC_KEYS]
    return pl.pallas_call(
        functools.partial(_decoder_stack_kernel, nhead=nhead, causal=causal),
        out_shape=jax.ShapeDtypeStruct((B, St, D), F32),
        grid=(B // bblk, L),
        in_specs=[x_spec, mem_spec, pe_spec] + [_layer_weight_spec(w) for w in weights],
        out_specs=x_spec,
        scratch_shapes=[pltpu.VMEM((bblk, St, D), F32)],
        compiler_params=pltpu.CompilerParams(
            dimension_semantics=("parallel", "arbitrary")),
    )(x, mem, pe, *weights)


def head_projection(x2d, params, d_out):
    M = x2d.shape[0]
    padded = params["head_w2p"].shape[1]
    args = (x2d, params["dec_norm_g"], params["dec_norm_b"],
            params["head_w1"], params["head_b1"],
            params["head_ln_g"], params["head_ln_b"],
            params["head_w2p"], params["head_b2p"])
    out = pl.pallas_call(
        _head_kernel,
        out_shape=jax.ShapeDtypeStruct((M, padded), F32),
        in_specs=[VMEM_SPEC] * len(args),
        out_specs=VMEM_SPEC,
    )(*args)
    return out[:, :d_out]


# -----------------------------------------------------------------------------
# Full forward pass (matches TransformerCp.forward, eval mode)
# -----------------------------------------------------------------------------

@functools.partial(jax.jit, static_argnames=("nhead", "pred_len", "has_mask", "batch_block"))
def transformer_cp_forward(params, src, tgt, nhead, pred_len, has_mask=True,
                           batch_block=None):
    B, Ss, D = src.shape
    St = tgt.shape[1]
    pe = params["pe"]
    bblk = batch_block or _pick_batch_block(B, max(Ss, St))

    # Encoder stack: one pallas_call, layers on an "arbitrary" grid axis; encoder-final
    # LayerNorm fused in; memory returned in bf16 for the decoder's MXU consumption.
    mem = encoder_stack(src, pe[:, :Ss, :], params["enc"],
                        params["enc_norm_g"], params["enc_norm_b"], nhead, bblk)

    # Decoder stack: one pallas_call (causal tgt_mask iff has_mask).
    x = decoder_stack(tgt, mem, pe[:, :St, :], params["dec"], nhead, has_mask, bblk)

    # Slice the last pred_len tokens BEFORE the decoder-final norm, then the fused head:
    # DecoderNorm -> Linear(D,512) -> LN(512) -> ReLU -> Linear(512,1)  (lane-padded store).
    last = x[:, -pred_len:, :].reshape(B * pred_len, D)
    out = head_projection(last, params, d_out=1)
    return out.reshape(B, pred_len, 1)


# -----------------------------------------------------------------------------
# Deterministic parameter construction (weights bf16, biases / LN params f32)
# -----------------------------------------------------------------------------

def init_params(key, d_model, nhead, nlayers, d_ff, max_len,
                head_hidden=512, d_out=1, out_pad=128):
    Dh = d_model // nhead
    scale = 1.0 / math.sqrt(Dh)        # folded into the whole q projection (weight AND bias)
    counter = itertools.count()

    def nrm(shape, s=0.05):
        return (s * jax.random.normal(jax.random.fold_in(key, next(counter)), shape)).astype(F32)

    def zeros(shape):
        return jnp.zeros(shape, F32)

    def ones(shape):
        return jnp.ones(shape, F32)

    def enc_layer():
        wq = nrm((d_model, d_model)) * scale
        wk, wv = nrm((d_model, d_model)), nrm((d_model, d_model))
        bq = zeros((1, d_model)) * scale                   # zero at init, scaled for generality
        bk, bv = zeros((1, d_model)), zeros((1, d_model))
        return {
            "wqkv": jnp.concatenate([wq, wk, wv], axis=1),
            "bqkv": jnp.concatenate([bq, bk, bv], axis=1),
            "wo": nrm((d_model, d_model)), "bo": zeros((1, d_model)),
            "ln1_g": ones((1, d_model)), "ln1_b": zeros((1, d_model)),
            "w1": nrm((d_model, d_ff)), "b1": zeros((1, d_ff)),
            "w2": nrm((d_ff, d_model)), "b2": zeros((1, d_model)),
            "ln2_g": ones((1, d_model)), "ln2_b": zeros((1, d_model)),
        }

    def dec_layer():
        wq = nrm((d_model, d_model)) * scale
        wk, wv = nrm((d_model, d_model)), nrm((d_model, d_model))
        bq = zeros((1, d_model)) * scale
        bk, bv = zeros((1, d_model)), zeros((1, d_model))
        wqc = nrm((d_model, d_model)) * scale
        bqc = zeros((1, d_model)) * scale
        wkc, wvc = nrm((d_model, d_model)), nrm((d_model, d_model))
        return {
            "wqkv_s": jnp.concatenate([wq, wk, wv], axis=1),
            "bqkv_s": jnp.concatenate([bq, bk, bv], axis=1),
            "wo_s": nrm((d_model, d_model)), "bo_s": zeros((1, d_model)),
            "ln1_g": ones((1, d_model)), "ln1_b": zeros((1, d_model)),
            "wq_c": wqc, "bq_c": bqc,
            "wkv_c": jnp.concatenate([wkc, wvc], axis=1), "bkv_c": zeros((1, 2 * d_model)),
            "wo_c": nrm((d_model, d_model)), "bo_c": zeros((1, d_model)),
            "ln2_g": ones((1, d_model)), "ln2_b": zeros((1, d_model)),
            "w1": nrm((d_model, d_ff)), "b1": zeros((1, d_ff)),
            "w2": nrm((d_ff, d_model)), "b2": zeros((1, d_model)),
            "ln3_g": ones((1, d_model)), "ln3_b": zeros((1, d_model)),
        }

    def stack(layers, keys, bf16_keys):
        out = {}
        for k in keys:
            a = jnp.stack([lp[k] for lp in layers], axis=0)
            out[k] = a.astype(BF16) if k in bf16_keys else a
        return out

    enc_layers = [enc_layer() for _ in range(nlayers)]
    dec_layers = [dec_layer() for _ in range(nlayers)]
    enc_bf16 = {"wqkv", "wo", "w1", "w2"}
    dec_bf16 = {"wqkv_s", "wo_s", "wq_c", "wkv_c", "wo_c", "w1", "w2"}

    # sinusoidal positional-encoding buffer (PositionalEncoding)
    position = jnp.arange(max_len, dtype=F32)[:, None]
    div_term = jnp.exp(jnp.arange(0, d_model, 2, dtype=F32) * (-math.log(10000.0) / d_model))
    pe = jnp.zeros((max_len, d_model), F32)
    pe = pe.at[:, 0::2].set(jnp.sin(position * div_term))
    pe = pe.at[:, 1::2].set(jnp.cos(position * div_term))

    # head: pad the (512, 1) output projection to 128 lanes for a lane-dense store
    head_w2 = nrm((head_hidden, d_out))
    head_b2 = zeros((1, d_out))
    head_w2p = jnp.zeros((head_hidden, out_pad), F32).at[:, :d_out].set(head_w2).astype(BF16)
    head_b2p = jnp.zeros((1, out_pad), F32).at[:, :d_out].set(head_b2)

    return {
        "pe": pe[None, :, :],
        "enc": stack(enc_layers, _ENC_KEYS, enc_bf16),
        "dec": stack(dec_layers, _DEC_KEYS, dec_bf16),
        "enc_norm_g": ones((1, d_model)), "enc_norm_b": zeros((1, d_model)),
        "dec_norm_g": ones((1, d_model)), "dec_norm_b": zeros((1, d_model)),
        "head_w1": nrm((d_model, head_hidden)).astype(BF16), "head_b1": zeros((1, head_hidden)),
        "head_ln_g": ones((1, head_hidden)), "head_ln_b": zeros((1, head_hidden)),
        "head_w2p": head_w2p, "head_b2p": head_b2p,
    }


# -----------------------------------------------------------------------------
# Demo
# -----------------------------------------------------------------------------

if __name__ == "__main__":
    # small shapes consistent with the module: batch=2, seq_len=8, d_model=32, nhead=4,
    # nlayers=2, d_ff=64, pred_len=1 (head hidden 512 and output 1 are hard-coded)
    B, seq_len = 2, 8
    d_model, nhead, nlayers, d_ff, pred_len = 32, 4, 2, 64, 1

    key = jax.random.PRNGKey(0)
    k_p, k_src, k_tgt = jax.random.split(key, 3)
    params = init_params(k_p, d_model, nhead, nlayers, d_ff, max_len=seq_len)
    src = jax.random.normal(k_src, (B, seq_len, d_model), dtype=F32)
    tgt = jax.random.normal(k_tgt, (B, seq_len, d_model), dtype=F32)

    # TODO(synk): reference module runs in float64; TPU has no f64 MXU, so bf16-in/f32-acc.
    out = transformer_cp_forward(params, src, tgt, nhead=nhead,
                                 pred_len=pred_len, has_mask=True)
    out = jax.block_until_ready(out)
    assert out.shape == (B, pred_len, 1), out.shape
    assert bool(jnp.all(jnp.isfinite(out)))
    print("KERNEL_OK")
</pallas_src>

<mosaic_0001>
module attributes {stable_mosaic.version = 11 : i64} {
  func.func @_encoder_stack_kernel(%arg0: i32, %arg1: i32, %arg2: memref<1x8x32xf32, #tpu.memory_space<vmem>>, %arg3: memref<1x8x32xf32, #tpu.memory_space<vmem>>, %arg4: memref<1x32x96xbf16, #tpu.memory_space<vmem>>, %arg5: memref<1x1x96xf32, #tpu.memory_space<vmem>>, %arg6: memref<1x32x32xbf16, #tpu.memory_space<vmem>>, %arg7: memref<1x1x32xf32, #tpu.memory_space<vmem>>, %arg8: memref<1x1x32xf32, #tpu.memory_space<vmem>>, %arg9: memref<1x1x32xf32, #tpu.memory_space<vmem>>, %arg10: memref<1x32x64xbf16, #tpu.memory_space<vmem>>, %arg11: memref<1x1x64xf32, #tpu.memory_space<vmem>>, %arg12: memref<1x64x32xbf16, #tpu.memory_space<vmem>>, %arg13: memref<1x1x32xf32, #tpu.memory_space<vmem>>, %arg14: memref<1x1x32xf32, #tpu.memory_space<vmem>>, %arg15: memref<1x1x32xf32, #tpu.memory_space<vmem>>, %arg16: memref<1x32xf32, #tpu.memory_space<vmem>>, %arg17: memref<1x32xf32, #tpu.memory_space<vmem>>, %arg18: memref<1x8x32xbf16, #tpu.memory_space<vmem>>, %arg19: memref<1x8x32xf32, #tpu.memory_space<vmem>>) attributes {dimension_semantics = [#tpu.dimension_semantics<parallel>, #tpu.dimension_semantics<arbitrary>], iteration_bounds = array<i64: 2, 2>, scalar_prefetch = 0 : i64, scratch_operands = 1 : i64, tpu.core_type = #tpu.core_type<tc>, window_params = [{transform_indices = @transform_0, window_bounds = array<i64: 1, 8, 32>}, {pipeline_mode = #tpu.pipeline_mode<synchronous>, transform_indices = @transform_1, window_bounds = array<i64: 1, 8, 32>}, {transform_indices = @transform_2, window_bounds = array<i64: 1, 32, 96>}, {transform_indices = @transform_3, window_bounds = array<i64: 1, 1, 96>}, {transform_indices = @transform_4, window_bounds = array<i64: 1, 32, 32>}, {transform_indices = @transform_5, window_bounds = array<i64: 1, 1, 32>}, {transform_indices = @transform_6, window_bounds = array<i64: 1, 1, 32>}, {transform_indices = @transform_7, window_bounds = array<i64: 1, 1, 32>}, {transform_indices = @transform_8, window_bounds = array<i64: 1, 32, 64>}, {transform_indices = @transform_9, window_bounds = array<i64: 1, 1, 64>}, {transform_indices = @transform_10, window_bounds = array<i64: 1, 64, 32>}, {transform_indices = @transform_11, window_bounds = array<i64: 1, 1, 32>}, {transform_indices = @transform_12, window_bounds = array<i64: 1, 1, 32>}, {transform_indices = @transform_13, window_bounds = array<i64: 1, 1, 32>}, {pipeline_mode = #tpu.pipeline_mode<synchronous>, transform_indices = @transform_14, window_bounds = array<i64: 1, 32>}, {pipeline_mode = #tpu.pipeline_mode<synchronous>, transform_indices = @transform_15, window_bounds = array<i64: 1, 32>}, {transform_indices = @transform_16, window_bounds = array<i64: 1, 8, 32>}]} {
    %c0_i32 = arith.constant 0 : i32
    %0 = arith.cmpi eq, %arg1, %c0_i32 : i32
    %1 = arith.extui %0 : i1 to i32
    %c0_i32_0 = arith.constant 0 : i32
    %2 = arith.cmpi ne, %1, %c0_i32_0 : i32
    scf.if %2 {
      %c0_77 = arith.constant 0 : index
      %c0_78 = arith.constant 0 : index
      %c0_79 = arith.constant 0 : index
      %183 = vector.load %arg2[%c0_77, %c0_78, %c0_79] : memref<1x8x32xf32, #tpu.memory_space<vmem>>, vector<1x8x32xf32>
      %c0_80 = arith.constant 0 : index
      %c0_81 = arith.constant 0 : index
      %c0_82 = arith.constant 0 : index
      %184 = vector.load %arg3[%c0_80, %c0_81, %c0_82] : memref<1x8x32xf32, #tpu.memory_space<vmem>>, vector<1x8x32xf32>
      %185 = arith.addf %183, %184 : vector<1x8x32xf32>
      %c0_83 = arith.constant 0 : index
      %c0_84 = arith.constant 0 : index
      %c0_85 = arith.constant 0 : index
      %186 = vector.load %arg19[%c0_83, %c0_84, %c0_85] : memref<1x8x32xf32, #tpu.memory_space<vmem>>, vector<1x8x32xf32>
      tpu.vector_store %arg19[%c0_83, %c0_84, %c0_85], %185 {strides = array<i32>} : memref<1x8x32xf32, #tpu.memory_space<vmem>>, vector<1x8x32xf32>,
    } else {
    }
    %c0 = arith.constant 0 : index
    %c0_1 = arith.constant 0 : index
    %c0_2 = arith.constant 0 : index
    %3 = vector.load %arg19[%c0, %c0_1, %c0_2] : memref<1x8x32xf32, #tpu.memory_space<vmem>>, vector<1x8x32xf32>
    %4 = vector.shape_cast %3 : vector<1x8x32xf32> to vector<8x32xf32>
    %c0_3 = arith.constant 0 : index
    %c0_4 = arith.constant 0 : index
    %c0_5 = arith.constant 0 : index
    %5 = vector.load %arg4[%c0_3, %c0_4, %c0_5] : memref<1x32x96xbf16, #tpu.memory_space<vmem>>, vector<1x32x96xbf16>
    %6 = vector.shape_cast %5 : vector<1x32x96xbf16> to vector<32x96xbf16>
    %c0_6 = arith.constant 0 : index
    %c0_7 = arith.constant 0 : index
    %c0_8 = arith.constant 0 : index
    %7 = vector.load %arg5[%c0_6, %c0_7, %c0_8] : memref<1x1x96xf32, #tpu.memory_space<vmem>>, vector<1x1x96xf32>
    %8 = vector.shape_cast %7 : vector<1x1x96xf32> to vector<1x96xf32>
    %c0_9 = arith.constant 0 : index
    %c0_10 = arith.constant 0 : index
    %c0_11 = arith.constant 0 : index
    %9 = vector.load %arg6[%c0_9, %c0_10, %c0_11] : memref<1x32x32xbf16, #tpu.memory_space<vmem>>, vector<1x32x32xbf16>
    %10 = vector.shape_cast %9 : vector<1x32x32xbf16> to vector<32x32xbf16>
    %c0_12 = arith.constant 0 : index
    %c0_13 = arith.constant 0 : index
    %c0_14 = arith.constant 0 : index
    %11 = vector.load %arg7[%c0_12, %c0_13, %c0_14] : memref<1x1x32xf32, #tpu.memory_space<vmem>>, vector<1x1x32xf32>
    %12 = vector.shape_cast %11 : vector<1x1x32xf32> to vector<1x32xf32>
    %13 = arith.truncf %4 : vector<8x32xf32> to vector<8x32xbf16>
    %cst = arith.constant dense<0.000000e+00> : vector<8x96xf32>
    %14 = tpu.matmul %13, %6, %cst {dimension_numbers = #tpu.dot_dimension_numbers<[1], [0], [0], [1], [0, 0, 1, 1], [], []>} : vector<8x32xbf16>, vector<32x96xbf16>, vector<8x96xf32> -> vector<8x96xf32>
    %15 = vector.broadcast %8 : vector<1x96xf32> to vector<8x96xf32>
    %16 = arith.addf %14, %15 : vector<8x96xf32>
    %17 = vector.shape_cast %16 : vector<8x96xf32> to vector<1x8x96xf32>
    %18 = arith.truncf %17 : vector<1x8x96xf32> to vector<1x8x96xbf16>
    %cst_15 = arith.constant 0.000000e+00 : f32
    %19 = vector.broadcast %cst_15 : f32 to vector<8x32xf32>
    %20 = vector.extract_strided_slice %18 {offsets = [0, 0, 0], sizes = [1, 8, 8], strides = [1, 1, 1]} : vector<1x8x96xbf16> to vector<1x8x8xbf16>
    %21 = vector.extract_strided_slice %18 {offsets = [0, 0, 32], sizes = [1, 8, 8], strides = [1, 1, 1]} : vector<1x8x96xbf16> to vector<1x8x8xbf16>
    %22 = vector.extract_strided_slice %18 {offsets = [0, 0, 64], sizes = [1, 8, 8], strides = [1, 1, 1]} : vector<1x8x96xbf16> to vector<1x8x8xbf16>
    "tpu.trace_start"() <{level = 10 : i32, message = "bqd,bkd->bqk"}> : () -> ()
    %cst_16 = arith.constant dense<0.000000e+00> : vector<1x8x8xf32>
    %23 = tpu.matmul %20, %21, %cst_16 {dimension_numbers = #tpu.dot_dimension_numbers<[2], [2], [1], [1], [0, 0, 0, 1, 1, 1], [0], [0]>} : vector<1x8x8xbf16>, vector<1x8x8xbf16>, vector<1x8x8xf32> -> vector<1x8x8xf32>
    "tpu.trace_stop"() : () -> ()
    %cst_17 = arith.constant dense<0xFF800000> : vector<1x8xf32>
    %24 = vector.multi_reduction <maximumf>, %23, %cst_17 [2] : vector<1x8x8xf32> to vector<1x8xf32>
    %25 = vector.shape_cast %24 : vector<1x8xf32> to vector<1x8x1xf32>
    %26 = vector.broadcast %25 : vector<1x8x1xf32> to vector<1x8x8xf32>
    %27 = arith.subf %23, %26 : vector<1x8x8xf32>
    %28 = math.exp %27 : vector<1x8x8xf32>
    %cst_18 = arith.constant dense<0.000000e+00> : vector<1x8xf32>
    %29 = vector.multi_reduction <add>, %28, %cst_18 [2] : vector<1x8x8xf32> to vector<1x8xf32>
    %30 = vector.shape_cast %29 : vector<1x8xf32> to vector<1x8x1xf32>
    %31 = tpu.reciprocal %30 {approx = true} : vector<1x8x1xf32> -> vector<1x8x1xf32>
    %32 = vector.broadcast %31 : vector<1x8x1xf32> to vector<1x8x8xf32>
    %33 = arith.mulf %28, %32 : vector<1x8x8xf32>
    %34 = arith.truncf %33 : vector<1x8x8xf32> to vector<1x8x8xbf16>
    "tpu.trace_start"() <{level = 10 : i32, message = "bqk,bkd->bqd"}> : () -> ()
    %cst_19 = arith.constant dense<0.000000e+00> : vector<1x8x8xf32>
    %35 = tpu.matmul %34, %22, %cst_19 {dimension_numbers = #tpu.dot_dimension_numbers<[2], [1], [1], [2], [0, 0, 0, 1, 1, 2], [0], [0]>} : vector<1x8x8xbf16>, vector<1x8x8xbf16>, vector<1x8x8xf32> -> vector<1x8x8xf32>
    "tpu.trace_stop"() : () -> ()
    %36 = vector.shape_cast %35 : vector<1x8x8xf32> to vector<8x8xf32>
    %37 = arith.truncf %36 : vector<8x8xf32> to vector<8x8xbf16>
    %38 = vector.extract_strided_slice %10 {offsets = [0, 0], sizes = [8, 32], strides = [1, 1]} : vector<32x32xbf16> to vector<8x32xbf16>
    %cst_20 = arith.constant dense<0.000000e+00> : vector<8x32xf32>
    %39 = tpu.matmul %37, %38, %cst_20 {dimension_numbers = #tpu.dot_dimension_numbers<[1], [0], [0], [1], [0, 0, 1, 1], [], []>} : vector<8x8xbf16>, vector<8x32xbf16>, vector<8x32xf32> -> vector<8x32xf32>
    %40 = arith.addf %19, %39 : vector<8x32xf32>
    %41 = vector.extract_strided_slice %18 {offsets = [0, 0, 8], sizes = [1, 8, 8], strides = [1, 1, 1]} : vector<1x8x96xbf16> to vector<1x8x8xbf16>
    %42 = vector.extract_strided_slice %18 {offsets = [0, 0, 40], sizes = [1, 8, 8], strides = [1, 1, 1]} : vector<1x8x96xbf16> to vector<1x8x8xbf16>
    %43 = vector.extract_strided_slice %18 {offsets = [0, 0, 72], sizes = [1, 8, 8], strides = [1, 1, 1]} : vector<1x8x96xbf16> to vector<1x8x8xbf16>
    "tpu.trace_start"() <{level = 10 : i32, message = "bqd,bkd->bqk"}> : () -> ()
    %cst_21 = arith.constant dense<0.000000e+00> : vector<1x8x8xf32>
    %44 = tpu.matmul %41, %42, %cst_21 {dimension_numbers = #tpu.dot_dimension_numbers<[2], [2], [1], [1], [0, 0, 0, 1, 1, 1], [0], [0]>} : vector<1x8x8xbf16>, vector<1x8x8xbf16>, vector<1x8x8xf32> -> vector<1x8x8xf32>
    "tpu.trace_stop"() : () -> ()
    %cst_22 = arith.constant dense<0xFF800000> : vector<1x8xf32>
    %45 = vector.multi_reduction <maximumf>, %44, %cst_22 [2] : vector<1x8x8xf32> to vector<1x8xf32>
    %46 = vector.shape_cast %45 : vector<1x8xf32> to vector<1x8x1xf32>
    %47 = vector.broadcast %46 : vector<1x8x1xf32> to vector<1x8x8xf32>
    %48 = arith.subf %44, %47 : vector<1x8x8xf32>
    %49 = math.exp %48 : vector<1x8x8xf32>
    %cst_23 = arith.constant dense<0.000000e+00> : vector<1x8xf32>
    %50 = vector.multi_reduction <add>, %49, %cst_23 [2] : vector<1x8x8xf32> to vector<1x8xf32>
    %51 = vector.shape_cast %50 : vector<1x8xf32> to vector<1x8x1xf32>
    %52 = tpu.reciprocal %51 {approx = true} : vector<1x8x1xf32> -> vector<1x8x1xf32>
    %53 = vector.broadcast %52 : vector<1x8x1xf32> to vector<1x8x8xf32>
    %54 = arith.mulf %49, %53 : vector<1x8x8xf32>
    %55 = arith.truncf %54 : vector<1x8x8xf32> to vector<1x8x8xbf16>
    "tpu.trace_start"() <{level = 10 : i32, message = "bqk,bkd->bqd"}> : () -> ()
    %cst_24 = arith.constant dense<0.000000e+00> : vector<1x8x8xf32>
    %56 = tpu.matmul %55, %43, %cst_24 {dimension_numbers = #tpu.dot_dimension_numbers<[2], [1], [1], [2], [0, 0, 0, 1, 1, 2], [0], [0]>} : vector<1x8x8xbf16>, vector<1x8x8xbf16>, vector<1x8x8xf32> -> vector<1x8x8xf32>
    "tpu.trace_stop"() : () -> ()
    %57 = vector.shape_cast %56 : vector<1x8x8xf32> to vector<8x8xf32>
    %58 = arith.truncf %57 : vector<8x8xf32> to vector<8x8xbf16>
    %59 = vector.extract_strided_slice %10 {offsets = [8, 0], sizes = [8, 32], strides = [1, 1]} : vector<32x32xbf16> to vector<8x32xbf16>
    %cst_25 = arith.constant dense<0.000000e+00> : vector<8x32xf32>
    %60 = tpu.matmul %58, %59, %cst_25 {dimension_numbers = #tpu.dot_dimension_numbers<[1], [0], [0], [1], [0, 0, 1, 1], [], []>} : vector<8x8xbf16>, vector<8x32xbf16>, vector<8x32xf32> -> vector<8x32xf32>
    %61 = arith.addf %40, %60 : vector<8x32xf32>
    %62 = vector.extract_strided_slice %18 {offsets = [0, 0, 16], sizes = [1, 8, 8], strides = [1, 1, 1]} : vector<1x8x96xbf16> to vector<1x8x8xbf16>
    %63 = vector.extract_strided_slice %18 {offsets = [0, 0, 48], sizes = [1, 8, 8], strides = [1, 1, 1]} : vector<1x8x96xbf16> to vector<1x8x8xbf16>
    %64 = vector.extract_strided_slice %18 {offsets = [0, 0, 80], sizes = [1, 8, 8], strides = [1, 1, 1]} : vector<1x8x96xbf16> to vector<1x8x8xbf16>
    "tpu.trace_start"() <{level = 10 : i32, message = "bqd,bkd->bqk"}> : () -> ()
    %cst_26 = arith.constant dense<0.000000e+00> : vector<1x8x8xf32>
    %65 = tpu.matmul %62, %63, %cst_26 {dimension_numbers = #tpu.dot_dimension_numbers<[2], [2], [1], [1], [0, 0, 0, 1, 1, 1], [0], [0]>} : vector<1x8x8xbf16>, vector<1x8x8xbf16>, vector<1x8x8xf32> -> vector<1x8x8xf32>
    "tpu.trace_stop"() : () -> ()
    %cst_27 = arith.constant dense<0xFF800000> : vector<1x8xf32>
    %66 = vector.multi_reduction <maximumf>, %65, %cst_27 [2] : vector<1x8x8xf32> to vector<1x8xf32>
    %67 = vector.shape_cast %66 : vector<1x8xf32> to vector<1x8x1xf32>
    %68 = vector.broadcast %67 : vector<1x8x1xf32> to vector<1x8x8xf32>
    %69 = arith.subf %65, %68 : vector<1x8x8xf32>
    %70 = math.exp %69 : vector<1x8x8xf32>
    %cst_28 = arith.constant dense<0.000000e+00> : vector<1x8xf32>
    %71 = vector.multi_reduction <add>, %70, %cst_28 [2] : vector<1x8x8xf32> to vector<1x8xf32>
    %72 = vector.shape_cast %71 : vector<1x8xf32> to vector<1x8x1xf32>
    %73 = tpu.reciprocal %72 {approx = true} : vector<1x8x1xf32> -> vector<1x8x1xf32>
    %74 = vector.broadcast %73 : vector<1x8x1xf32> to vector<1x8x8xf32>
    %75 = arith.mulf %70, %74 : vector<1x8x8xf32>
    %76 = arith.truncf %75 : vector<1x8x8xf32> to vector<1x8x8xbf16>
    "tpu.trace_start"() <{level = 10 : i32, message = "bqk,bkd->bqd"}> : () -> ()
    %cst_29 = arith.constant dense<0.000000e+00> : vector<1x8x8xf32>
    %77 = tpu.matmul %76, %64, %cst_29 {dimension_numbers = #tpu.dot_dimension_numbers<[2], [1], [1], [2], [0, 0, 0, 1, 1, 2], [0], [0]>} : vector<1x8x8xbf16>, vector<1x8x8xbf16>, vector<1x8x8xf32> -> vector<1x8x8xf32>
    "tpu.trace_stop"() : () -> ()
    %78 = vector.shape_cast %77 : vector<1x8x8xf32> to vector<8x8xf32>
    %79 = arith.truncf %78 : vector<8x8xf32> to vector<8x8xbf16>
    %80 = vector.extract_strided_slice %10 {offsets = [16, 0], sizes = [8, 32], strides = [1, 1]} : vector<32x32xbf16> to vector<8x32xbf16>
    %cst_30 = arith.constant dense<0.000000e+00> : vector<8x32xf32>
    %81 = tpu.matmul %79, %80, %cst_30 {dimension_numbers = #tpu.dot_dimension_numbers<[1], [0], [0], [1], [0, 0, 1, 1], [], []>} : vector<8x8xbf16>, vector<8x32xbf16>, vector<8x32xf32> -> vector<8x32xf32>
    %82 = arith.addf %61, %81 : vector<8x32xf32>
    %83 = vector.extract_strided_slice %18 {offsets = [0, 0, 24], sizes = [1, 8, 8], strides = [1, 1, 1]} : vector<1x8x96xbf16> to vector<1x8x8xbf16>
    %84 = vector.extract_strided_slice %18 {offsets = [0, 0, 56], sizes = [1, 8, 8], strides = [1, 1, 1]} : vector<1x8x96xbf16> to vector<1x8x8xbf16>
    %85 = vector.extract_strided_slice %18 {offsets = [0, 0, 88], sizes = [1, 8, 8], strides = [1, 1, 1]} : vector<1x8x96xbf16> to vector<1x8x8xbf16>
    "tpu.trace_start"() <{level = 10 : i32, message = "bqd,bkd->bqk"}> : () -> ()
    %cst_31 = arith.constant dense<0.000000e+00> : vector<1x8x8xf32>
    %86 = tpu.matmul %83, %84, %cst_31 {dimension_numbers = #tpu.dot_dimension_numbers<[2], [2], [1], [1], [0, 0, 0, 1, 1, 1], [0], [0]>} : vector<1x8x8xbf16>, vector<1x8x8xbf16>, vector<1x8x8xf32> -> vector<1x8x8xf32>
    "tpu.trace_stop"() : () -> ()
    %cst_32 = arith.constant dense<0xFF800000> : vector<1x8xf32>
    %87 = vector.multi_reduction <maximumf>, %86, %cst_32 [2] : vector<1x8x8xf32> to vector<1x8xf32>
    %88 = vector.shape_cast %87 : vector<1x8xf32> to vector<1x8x1xf32>
    %89 = vector.broadcast %88 : vector<1x8x1xf32> to vector<1x8x8xf32>
    %90 = arith.subf %86, %89 : vector<1x8x8xf32>
    %91 = math.exp %90 : vector<1x8x8xf32>
    %cst_33 = arith.constant dense<0.000000e+00> : vector<1x8xf32>
    %92 = vector.multi_reduction <add>, %91, %cst_33 [2] : vector<1x8x8xf32> to vector<1x8xf32>
    %93 = vector.shape_cast %92 : vector<1x8xf32> to vector<1x8x1xf32>
    %94 = tpu.reciprocal %93 {approx = true} : vector<1x8x1xf32> -> vector<1x8x1xf32>
    %95 = vector.broadcast %94 : vector<1x8x1xf32> to vector<1x8x8xf32>
    %96 = arith.mulf %91, %95 : vector<1x8x8xf32>
    %97 = arith.truncf %96 : vector<1x8x8xf32> to vector<1x8x8xbf16>
    "tpu.trace_start"() <{level = 10 : i32, message = "bqk,bkd->bqd"}> : () -> ()
    %cst_34 = arith.constant dense<0.000000e+00> : vector<1x8x8xf32>
    %98 = tpu.matmul %97, %85, %cst_34 {dimension_numbers = #tpu.dot_dimension_numbers<[2], [1], [1], [2], [0, 0, 0, 1, 1, 2], [0], [0]>} : vector<1x8x8xbf16>, vector<1x8x8xbf16>, vector<1x8x8xf32> -> vector<1x8x8xf32>
    "tpu.trace_stop"() : () -> ()
    %99 = vector.shape_cast %98 : vector<1x8x8xf32> to vector<8x8xf32>
    %100 = arith.truncf %99 : vector<8x8xf32> to vector<8x8xbf16>
    %101 = vector.extract_strided_slice %10 {offsets = [24, 0], sizes = [8, 32], strides = [1, 1]} : vector<32x32xbf16> to vector<8x32xbf16>
    %cst_35 = arith.constant dense<0.000000e+00> : vector<8x32xf32>
    %102 = tpu.matmul %100, %101, %cst_35 {dimension_numbers = #tpu.dot_dimension_numbers<[1], [0], [0], [1], [0, 0, 1, 1], [], []>} : vector<8x8xbf16>, vector<8x32xbf16>, vector<8x32xf32> -> vector<8x32xf32>
    %103 = arith.addf %82, %102 : vector<8x32xf32>
    %104 = vector.broadcast %12 : vector<1x32xf32> to vector<8x32xf32>
    %105 = arith.addf %103, %104 : vector<8x32xf32>
    %106 = arith.addf %4, %105 : vector<8x32xf32>
    %c0_36 = arith.constant 0 : index
    %c0_37 = arith.constant 0 : index
    %c0_38 = arith.constant 0 : index
    %107 = vector.load %arg8[%c0_36, %c0_37, %c0_38] : memref<1x1x32xf32, #tpu.memory_space<vmem>>, vector<1x1x32xf32>
    %108 = vector.shape_cast %107 : vector<1x1x32xf32> to vector<1x32xf32>
    %c0_39 = arith.constant 0 : index
    %c0_40 = arith.constant 0 : index
    %c0_41 = arith.constant 0 : index
    %109 = vector.load %arg9[%c0_39, %c0_40, %c0_41] : memref<1x1x32xf32, #tpu.memory_space<vmem>>, vector<1x1x32xf32>
    %110 = vector.shape_cast %109 : vector<1x1x32xf32> to vector<1x32xf32>
    %cst_42 = arith.constant dense<0.000000e+00> : vector<8xf32>
    %111 = vector.multi_reduction <add>, %106, %cst_42 [1] : vector<8x32xf32> to vector<8xf32>
    %112 = vector.shape_cast %111 : vector<8xf32> to vector<8x1xf32>
    %cst_43 = arith.constant 3.200000e+01 : f32
    %113 = vector.broadcast %cst_43 : f32 to vector<8x1xf32>
    %114 = arith.divf %112, %113 : vector<8x1xf32>
    %115 = arith.mulf %106, %106 : vector<8x32xf32>
    %cst_44 = arith.constant dense<0.000000e+00> : vector<8xf32>
    %116 = vector.multi_reduction <add>, %115, %cst_44 [1] : vector<8x32xf32> to vector<8xf32>
    %117 = vector.shape_cast %116 : vector<8xf32> to vector<8x1xf32>
    %cst_45 = arith.constant 3.200000e+01 : f32
    %118 = vector.broadcast %cst_45 : f32 to vector<8x1xf32>
    %119 = arith.divf %117, %118 : vector<8x1xf32>
    %120 = arith.mulf %114, %114 : vector<8x1xf32>
    %121 = arith.subf %119, %120 : vector<8x1xf32>
    %122 = vector.broadcast %114 : vector<8x1xf32> to vector<8x32xf32>
    %123 = arith.subf %106, %122 : vector<8x32xf32>
    %cst_46 = arith.constant 9.99999974E-6 : f32
    %124 = vector.broadcast %cst_46 : f32 to vector<8x1xf32>
    %125 = arith.addf %121, %124 : vector<8x1xf32>
    %126 = math.rsqrt %125 : vector<8x1xf32>
    %127 = vector.broadcast %126 : vector<8x1xf32> to vector<8x32xf32>
    %128 = arith.mulf %123, %127 : vector<8x32xf32>
    %129 = vector.broadcast %108 : vector<1x32xf32> to vector<8x32xf32>
    %130 = arith.mulf %128, %129 : vector<8x32xf32>
    %131 = vector.broadcast %110 : vector<1x32xf32> to vector<8x32xf32>
    %132 = arith.addf %130, %131 : vector<8x32xf32>
    %c0_47 = arith.constant 0 : index
    %c0_48 = arith.constant 0 : index
    %c0_49 = arith.constant 0 : index
    %133 = vector.load %arg10[%c0_47, %c0_48, %c0_49] : memref<1x32x64xbf16, #tpu.memory_space<vmem>>, vector<1x32x64xbf16>
    %134 = vector.shape_cast %133 : vector<1x32x64xbf16> to vector<32x64xbf16>
    %c0_50 = arith.constant 0 : index
    %c0_51 = arith.constant 0 : index
    %c0_52 = arith.constant 0 : index
    %135 = vector.load %arg11[%c0_50, %c0_51, %c0_52] : memref<1x1x64xf32, #tpu.memory_space<vmem>>, vector<1x1x64xf32>
    %136 = vector.shape_cast %135 : vector<1x1x64xf32> to vector<1x64xf32>
    %c0_53 = arith.constant 0 : index
    %c0_54 = arith.constant 0 : index
    %c0_55 = arith.constant 0 : index
    %137 = vector.load %arg12[%c0_53, %c0_54, %c0_55] : memref<1x64x32xbf16, #tpu.memory_space<vmem>>, vector<1x64x32xbf16>
    %138 = vector.shape_cast %137 : vector<1x64x32xbf16> to vector<64x32xbf16>
    %c0_56 = arith.constant 0 : index
    %c0_57 = arith.constant 0 : index
    %c0_58 = arith.constant 0 : index
    %139 = vector.load %arg13[%c0_56, %c0_57, %c0_58] : memref<1x1x32xf32, #tpu.memory_space<vmem>>, vector<1x1x32xf32>
    %140 = vector.shape_cast %139 : vector<1x1x32xf32> to vector<1x32xf32>
    %141 = arith.truncf %132 : vector<8x32xf32> to vector<8x32xbf16>
    %cst_59 = arith.constant dense<0.000000e+00> : vector<8x64xf32>
    %142 = tpu.matmul %141, %134, %cst_59 {dimension_numbers = #tpu.dot_dimension_numbers<[1], [0], [0], [1], [0, 0, 1, 1], [], []>} : vector<8x32xbf16>, vector<32x64xbf16>, vector<8x64xf32> -> vector<8x64xf32>
    %143 = vector.broadcast %136 : vector<1x64xf32> to vector<8x64xf32>
    %144 = arith.addf %142, %143 : vector<8x64xf32>
    %cst_60 = arith.constant 0.000000e+00 : f32
    %145 = vector.broadcast %cst_60 : f32 to vector<8x64xf32>
    %146 = arith.maximumf %144, %145 : vector<8x64xf32>
    %147 = arith.truncf %146 : vector<8x64xf32> to vector<8x64xbf16>
    %cst_61 = arith.constant dense<0.000000e+00> : vector<8x32xf32>
    %148 = tpu.matmul %147, %138, %cst_61 {dimension_numbers = #tpu.dot_dimension_numbers<[1], [0], [0], [1], [0, 0, 1, 1], [], []>} : vector<8x64xbf16>, vector<64x32xbf16>, vector<8x32xf32> -> vector<8x32xf32>
    %149 = vector.broadcast %140 : vector<1x32xf32> to vector<8x32xf32>
    %150 = arith.addf %148, %149 : vector<8x32xf32>
    %151 = arith.addf %132, %150 : vector<8x32xf32>
    %c0_62 = arith.constant 0 : index
    %c0_63 = arith.constant 0 : index
    %c0_64 = arith.constant 0 : index
    %152 = vector.load %arg14[%c0_62, %c0_63, %c0_64] : memref<1x1x32xf32, #tpu.memory_space<vmem>>, vector<1x1x32xf32>
    %153 = vector.shape_cast %152 : vector<1x1x32xf32> to vector<1x32xf32>
    %c0_65 = arith.constant 0 : index
    %c0_66 = arith.constant 0 : index
    %c0_67 = arith.constant 0 : index
    %154 = vector.load %arg15[%c0_65, %c0_66, %c0_67] : memref<1x1x32xf32, #tpu.memory_space<vmem>>, vector<1x1x32xf32>
    %155 = vector.shape_cast %154 : vector<1x1x32xf32> to vector<1x32xf32>
    %cst_68 = arith.constant dense<0.000000e+00> : vector<8xf32>
    %156 = vector.multi_reduction <add>, %151, %cst_68 [1] : vector<8x32xf32> to vector<8xf32>
    %157 = vector.shape_cast %156 : vector<8xf32> to vector<8x1xf32>
    %cst_69 = arith.constant 3.200000e+01 : f32
    %158 = vector.broadcast %cst_69 : f32 to vector<8x1xf32>
    %159 = arith.divf %157, %158 : vector<8x1xf32>
    %160 = arith.mulf %151, %151 : vector<8x32xf32>
    %cst_70 = arith.constant dense<0.000000e+00> : vector<8xf32>
    %161 = vector.multi_reduction <add>, %160, %cst_70 [1] : vector<8x32xf32> to vector<8xf32>
    %162 = vector.shape_cast %161 : vector<8xf32> to vector<8x1xf32>
    %cst_71 = arith.constant 3.200000e+01 : f32
    %163 = vector.broadcast %cst_71 : f32 to vector<8x1xf32>
    %164 = arith.divf %162, %163 : vector<8x1xf32>
    %165 = arith.mulf %159, %159 : vector<8x1xf32>
    %166 = arith.subf %164, %165 : vector<8x1xf32>
    %167 = vector.broadcast %159 : vector<8x1xf32> to vector<8x32xf32>
    %168 = arith.subf %151, %167 : vector<8x32xf32>
    %cst_72 = arith.constant 9.99999974E-6 : f32
    %169 = vector.broadcast %cst_72 : f32 to vector<8x1xf32>
    %170 = arith.addf %166, %169 : vector<8x1xf32>
    %171 = math.rsqrt %170 : vector<8x1xf32>
    %172 = vector.broadcast %171 : vector<8x1xf32> to vector<8x32xf32>
    %173 = arith.mulf %168, %172 : vector<8x32xf32>
    %174 = vector.broadcast %153 : vector<1x32xf32> to vector<8x32xf32>
    %175 = arith.mulf %173, %174 : vector<8x32xf32>
    %176 = vector.broadcast %155 : vector<1x32xf32> to vector<8x32xf32>
    %177 = arith.addf %175, %176 : vector<8x32xf32>
    %178 = vector.shape_cast %177 : vector<8x32xf32> to vector<1x8x32xf32>
    %c0_73 = arith.constant 0 : index
    %c0_74 = arith.constant 0 : index
    %c0_75 = arith.constant 0 : index
    %179 = vector.load %arg19[%c0_73, %c0_74, %c0_75] : memref<1x8x32xf32, #tpu.memory_space<vmem>>, vector<1x8x32xf32>
    tpu.vector_store %arg19[%c0_73, %c0_74, %c0_75], %178 {strides = array<i32>} : memref<1x8x32xf32, #tpu.memory_space<vmem>>, vector<1x8x32xf32>,
    %c1_i32 = arith.constant 1 : i32
    %180 = arith.cmpi eq, %arg1, %c1_i32 : i32
    %181 = arith.extui %180 : i1 to i32
    %c0_i32_76 = arith.constant 0 : i32
    %182 = arith.cmpi ne, %181, %c0_i32_76 : i32
    scf.if %182 {
      %c0_77 = arith.constant 0 : index
      %c0_78 = arith.constant 0 : index
      %183 = vector.load %arg16[%c0_77, %c0_78] : memref<1x32xf32, #tpu.memory_space<vmem>>, vector<1x32xf32>
      %c0_79 = arith.constant 0 : index
      %c0_80 = arith.constant 0 : index
      %184 = vector.load %arg17[%c0_79, %c0_80] : memref<1x32xf32, #tpu.memory_space<vmem>>, vector<1x32xf32>
      %cst_81 = arith.constant dense<0.000000e+00> : vector<8xf32>
      %185 = vector.multi_reduction <add>, %177, %cst_81 [1] : vector<8x32xf32> to vector<8xf32>
      %186 = vector.shape_cast %185 : vector<8xf32> to vector<8x1xf32>
      %cst_82 = arith.constant 3.200000e+01 : f32
      %187 = vector.broadcast %cst_82 : f32 to vector<8x1xf32>
      %188 = arith.divf %186, %187 : vector<8x1xf32>
      %189 = arith.mulf %177, %177 : vector<8x32xf32>
      %cst_83 = arith.constant dense<0.000000e+00> : vector<8xf32>
      %190 = vector.multi_reduction <add>, %189, %cst_83 [1] : vector<8x32xf32> to vector<8xf32>
      %191 = vector.shape_cast %190 : vector<8xf32> to vector<8x1xf32>
      %cst_84 = arith.constant 3.200000e+01 : f32
      %192 = vector.broadcast %cst_84 : f32 to vector<8x1xf32>
      %193 = arith.divf %191, %192 : vector<8x1xf32>
      %194 = arith.mulf %188, %188 : vector<8x1xf32>
      %195 = arith.subf %193, %194 : vector<8x1xf32>
      %196 = vector.broadcast %188 : vector<8x1xf32> to vector<8x32xf32>
      %197 = arith.subf %177, %196 : vector<8x32xf32>
      %cst_85 = arith.constant 9.99999974E-6 : f32
      %198 = vector.broadcast %cst_85 : f32 to vector<8x1xf32>
      %199 = arith.addf %195, %198 : vector<8x1xf32>
      %200 = math.rsqrt %199 : vector<8x1xf32>
      %201 = vector.broadcast %200 : vector<8x1xf32> to vector<8x32xf32>
      %202 = arith.mulf %197, %201 : vector<8x32xf32>
      %203 = vector.broadcast %183 : vector<1x32xf32> to vector<8x32xf32>
      %204 = arith.mulf %202, %203 : vector<8x32xf32>
      %205 = vector.broadcast %184 : vector<1x32xf32> to vector<8x32xf32>
      %206 = arith.addf %204, %205 : vector<8x32xf32>
      %207 = vector.shape_cast %206 : vector<8x32xf32> to vector<1x8x32xf32>
      %208 = arith.truncf %207 : vector<1x8x32xf32> to vector<1x8x32xbf16>
      %c0_86 = arith.constant 0 : index
      %c0_87 = arith.constant 0 : index
      %c0_88 = arith.constant 0 : index
      %209 = vector.load %arg18[%c0_86, %c0_87, %c0_88] : memref<1x8x32xbf16, #tpu.memory_space<vmem>>, vector<1x8x32xbf16>
      tpu.vector_store %arg18[%c0_86, %c0_87, %c0_88], %208 {strides = array<i32>} : memref<1x8x32xbf16, #tpu.memory_space<vmem>>, vector<1x8x32xbf16>,
    } else {
    }
    return
  }
  func.func @transform_0(%arg0: i32, %arg1: i32) -> (i32, i32, i32) {
    %c0_i32 = arith.constant 0 : i32
    %c0_i32_0 = arith.constant 0 : i32
    %c0_i32_1 = arith.constant 0 : i32
    return %arg0, %c0_i32, %c0_i32_0 : i32, i32, i32
  }
  func.func @transform_1(%arg0: i32, %arg1: i32) -> (i32, i32, i32) {
    %c0_i32 = arith.constant 0 : i32
    %c0_i32_0 = arith.constant 0 : i32
    %c0_i32_1 = arith.constant 0 : i32
    %c0_i32_2 = arith.constant 0 : i32
    return %c0_i32, %c0_i32_0, %c0_i32_1 : i32, i32, i32
  }
  func.func @transform_2(%arg0: i32, %arg1: i32) -> (i32, i32, i32) {
    %c0_i32 = arith.constant 0 : i32
    %c0_i32_0 = arith.constant 0 : i32
    %c0_i32_1 = arith.constant 0 : i32
    return %arg1, %c0_i32, %c0_i32_0 : i32, i32, i32
  }
  func.func @transform_3(%arg0: i32, %arg1: i32) -> (i32, i32, i32) {
    %c0_i32 = arith.constant 0 : i32
    %c0_i32_0 = arith.constant 0 : i32
    %c0_i32_1 = arith.constant 0 : i32
    return %arg1, %c0_i32, %c0_i32_0 : i32, i32, i32
  }
  func.func @transform_4(%arg0: i32, %arg1: i32) -> (i32, i32, i32) {
    %c0_i32 = arith.constant 0 : i32
    %c0_i32_0 = arith.constant 0 : i32
    %c0_i32_1 = arith.constant 0 : i32
    return %arg1, %c0_i32, %c0_i32_0 : i32, i32, i32
  }
  func.func @transform_5(%arg0: i32, %arg1: i32) -> (i32, i32, i32) {
    %c0_i32 = arith.constant 0 : i32
    %c0_i32_0 = arith.constant 0 : i32
    %c0_i32_1 = arith.constant 0 : i32
    return %arg1, %c0_i32, %c0_i32_0 : i32, i32, i32
  }
  func.func @transform_6(%arg0: i32, %arg1: i32) -> (i32, i32, i32) {
    %c0_i32 = arith.constant 0 : i32
    %c0_i32_0 = arith.constant 0 : i32
    %c0_i32_1 = arith.constant 0 : i32
    return %arg1, %c0_i32, %c0_i32_0 : i32, i32, i32
  }
  func.func @transform_7(%arg0: i32, %arg1: i32) -> (i32, i32, i32) {
    %c0_i32 = arith.constant 0 : i32
    %c0_i32_0 = arith.constant 0 : i32
    %c0_i32_1 = arith.constant 0 : i32
    return %arg1, %c0_i32, %c0_i32_0 : i32, i32, i32
  }
  func.func @transform_8(%arg0: i32, %arg1: i32) -> (i32, i32, i32) {
    %c0_i32 = arith.constant 0 : i32
    %c0_i32_0 = arith.constant 0 : i32
    %c0_i32_1 = arith.constant 0 : i32
    return %arg1, %c0_i32, %c0_i32_0 : i32, i32, i32
  }
  func.func @transform_9(%arg0: i32, %arg1: i32) -> (i32, i32, i32) {
    %c0_i32 = arith.constant 0 : i32
    %c0_i32_0 = arith.constant 0 : i32
    %c0_i32_1 = arith.constant 0 : i32
    return %arg1, %c0_i32, %c0_i32_0 : i32, i32, i32
  }
  func.func @transform_10(%arg0: i32, %arg1: i32) -> (i32, i32, i32) {
    %c0_i32 = arith.constant 0 : i32
    %c0_i32_0 = arith.constant 0 : i32
    %c0_i32_1 = arith.constant 0 : i32
    return %arg1, %c0_i32, %c0_i32_0 : i32, i32, i32
  }
  func.func @transform_11(%arg0: i32, %arg1: i32) -> (i32, i32, i32) {
    %c0_i32 = arith.constant 0 : i32
    %c0_i32_0 = arith.constant 0 : i32
    %c0_i32_1 = arith.constant 0 : i32
    return %arg1, %c0_i32, %c0_i32_0 : i32, i32, i32
  }
  func.func @transform_12(%arg0: i32, %arg1: i32) -> (i32, i32, i32) {
    %c0_i32 = arith.constant 0 : i32
    %c0_i32_0 = arith.constant 0 : i32
    %c0_i32_1 = arith.constant 0 : i32
    return %arg1, %c0_i32, %c0_i32_0 : i32, i32, i32
  }
  func.func @transform_13(%arg0: i32, %arg1: i32) -> (i32, i32, i32) {
    %c0_i32 = arith.constant 0 : i32
    %c0_i32_0 = arith.constant 0 : i32
    %c0_i32_1 = arith.constant 0 : i32
    return %arg1, %c0_i32, %c0_i32_0 : i32, i32, i32
  }
  func.func @transform_14(%arg0: i32, %arg1: i32) -> (i32, i32) {
    %c0_i32 = arith.constant 0 : i32
    %c0_i32_0 = arith.constant 0 : i32
    %c0_i32_1 = arith.constant 0 : i32
    return %c0_i32, %c0_i32_0 : i32, i32
  }
  func.func @transform_15(%arg0: i32, %arg1: i32) -> (i32, i32) {
    %c0_i32 = arith.constant 0 : i32
    %c0_i32_0 = arith.constant 0 : i32
    %c0_i32_1 = arith.constant 0 : i32
    return %c0_i32, %c0_i32_0 : i32, i32
  }
  func.func @transform_16(%arg0: i32, %arg1: i32) -> (i32, i32, i32) {
    %c0_i32 = arith.constant 0 : i32
    %c0_i32_0 = arith.constant 0 : i32
    %c0_i32_1 = arith.constant 0 : i32
    return %arg0, %c0_i32, %c0_i32_0 : i32, i32, i32
  }
}

module attributes {stable_mosaic.version = 11 : i64} {
  func.func @_decoder_stack_kernel(%arg0: i32, %arg1: i32, %arg2: memref<1x8x32xf32, #tpu.memory_space<vmem>>, %arg3: memref<1x8x32xbf16, #tpu.memory_space<vmem>>, %arg4: memref<1x8x32xf32, #tpu.memory_space<vmem>>, %arg5: memref<1x32x96xbf16, #tpu.memory_space<vmem>>, %arg6: memref<1x1x96xf32, #tpu.memory_space<vmem>>, %arg7: memref<1x32x32xbf16, #tpu.memory_space<vmem>>, %arg8: memref<1x1x32xf32, #tpu.memory_space<vmem>>, %arg9: memref<1x1x32xf32, #tpu.memory_space<vmem>>, %arg10: memref<1x1x32xf32, #tpu.memory_space<vmem>>, %arg11: memref<1x32x32xbf16, #tpu.memory_space<vmem>>, %arg12: memref<1x1x32xf32, #tpu.memory_space<vmem>>, %arg13: memref<1x32x64xbf16, #tpu.memory_space<vmem>>, %arg14: memref<1x1x64xf32, #tpu.memory_space<vmem>>, %arg15: memref<1x32x32xbf16, #tpu.memory_space<vmem>>, %arg16: memref<1x1x32xf32, #tpu.memory_space<vmem>>, %arg17: memref<1x1x32xf32, #tpu.memory_space<vmem>>, %arg18: memref<1x1x32xf32, #tpu.memory_space<vmem>>, %arg19: memref<1x32x64xbf16, #tpu.memory_space<vmem>>, %arg20: memref<1x1x64xf32, #tpu.memory_space<vmem>>, %arg21: memref<1x64x32xbf16, #tpu.memory_space<vmem>>, %arg22: memref<1x1x32xf32, #tpu.memory_space<vmem>>, %arg23: memref<1x1x32xf32, #tpu.memory_space<vmem>>, %arg24: memref<1x1x32xf32, #tpu.memory_space<vmem>>, %arg25: memref<1x8x32xf32, #tpu.memory_space<vmem>>, %arg26: memref<1x8x32xf32, #tpu.memory_space<vmem>>) attributes {dimension_semantics = [#tpu.dimension_semantics<parallel>, #tpu.dimension_semantics<arbitrary>], iteration_bounds = array<i64: 2, 2>, scalar_prefetch = 0 : i64, scratch_operands = 1 : i64, tpu.core_type = #tpu.core_type<tc>, window_params = [{transform_indices = @transform_0, window_bounds = array<i64: 1, 8, 32>}, {transform_indices = @transform_1, window_bounds = array<i64: 1, 8, 32>}, {pipeline_mode = #tpu.pipeline_mode<synchronous>, transform_indices = @transform_2, window_bounds = array<i64: 1, 8, 32>}, {transform_indices = @transform_3, window_bounds = array<i64: 1, 32, 96>}, {transform_indices = @transform_4, window_bounds = array<i64: 1, 1, 96>}, {transform_indices = @transform_5, window_bounds = array<i64: 1, 32, 32>}, {transform_indices = @transform_6, window_bounds = array<i64: 1, 1, 32>}, {transform_indices = @transform_7, window_bounds = array<i64: 1, 1, 32>}, {transform_indices = @transform_8, window_bounds = array<i64: 1, 1, 32>}, {transform_indices = @transform_9, window_bounds = array<i64: 1, 32, 32>}, {transform_indices = @transform_10, window_bounds = array<i64: 1, 1, 32>}, {transform_indices = @transform_11, window_bounds = array<i64: 1, 32, 64>}, {transform_indices = @transform_12, window_bounds = array<i64: 1, 1, 64>}, {transform_indices = @transform_13, window_bounds = array<i64: 1, 32, 32>}, {transform_indices = @transform_14, window_bounds = array<i64: 1, 1, 32>}, {transform_indices = @transform_15, window_bounds = array<i64: 1, 1, 32>}, {transform_indices = @transform_16, window_bounds = array<i64: 1, 1, 32>}, {transform_indices = @transform_17, window_bounds = array<i64: 1, 32, 64>}, {transform_indices = @transform_18, window_bounds = array<i64: 1, 1, 64>}, {transform_indices = @transform_19, window_bounds = array<i64: 1, 64, 32>}, {transform_indices = @transform_20, window_bounds = array<i64: 1, 1, 32>}, {transform_indices = @transform_21, window_bounds = array<i64: 1, 1, 32>}, {transform_indices = @transform_22, window_bounds = array<i64: 1, 1, 32>}, {transform_indices = @transform_23, window_bounds = array<i64: 1, 8, 32>}]} {
    %c0_i32 = arith.constant 0 : i32
    %0 = arith.cmpi eq, %arg1, %c0_i32 : i32
    %1 = arith.extui %0 : i1 to i32
    %c0_i32_0 = arith.constant 0 : i32
    %2 = arith.cmpi ne, %1, %c0_i32_0 : i32
    scf.if %2 {
      %c0_136 = arith.constant 0 : index
      %c0_137 = arith.constant 0 : index
      %c0_138 = arith.constant 0 : index
      %337 = vector.load %arg2[%c0_136, %c0_137, %c0_138] : memref<1x8x32xf32, #tpu.memory_space<vmem>>, vector<1x8x32xf32>
      %c0_139 = arith.constant 0 : index
      %c0_140 = arith.constant 0 : index
      %c0_141 = arith.constant 0 : index
      %338 = vector.load %arg4[%c0_139, %c0_140, %c0_141] : memref<1x8x32xf32, #tpu.memory_space<vmem>>, vector<1x8x32xf32>
      %339 = arith.addf %337, %338 : vector<1x8x32xf32>
      %c0_142 = arith.constant 0 : index
      %c0_143 = arith.constant 0 : index
      %c0_144 = arith.constant 0 : index
      %340 = vector.load %arg26[%c0_142, %c0_143, %c0_144] : memref<1x8x32xf32, #tpu.memory_space<vmem>>, vector<1x8x32xf32>
      tpu.vector_store %arg26[%c0_142, %c0_143, %c0_144], %339 {strides = array<i32>} : memref<1x8x32xf32, #tpu.memory_space<vmem>>, vector<1x8x32xf32>,
    } else {
    }
    %c0 = arith.constant 0 : index
    %c0_1 = arith.constant 0 : index
    %c0_2 = arith.constant 0 : index
    %3 = vector.load %arg26[%c0, %c0_1, %c0_2] : memref<1x8x32xf32, #tpu.memory_space<vmem>>, vector<1x8x32xf32>
    %4 = vector.shape_cast %3 : vector<1x8x32xf32> to vector<8x32xf32>
    %c0_3 = arith.constant 0 : index
    %c0_4 = arith.constant 0 : index
    %c0_5 = arith.constant 0 : index
    %5 = vector.load %arg3[%c0_3, %c0_4, %c0_5] : memref<1x8x32xbf16, #tpu.memory_space<vmem>>, vector<1x8x32xbf16>
    %c0_6 = arith.constant 0 : index
    %c0_7 = arith.constant 0 : index
    %c0_8 = arith.constant 0 : index
    %6 = vector.load %arg5[%c0_6, %c0_7, %c0_8] : memref<1x32x96xbf16, #tpu.memory_space<vmem>>, vector<1x32x96xbf16>
    %7 = vector.shape_cast %6 : vector<1x32x96xbf16> to vector<32x96xbf16>
    %c0_9 = arith.constant 0 : index
    %c0_10 = arith.constant 0 : index
    %c0_11 = arith.constant 0 : index
    %8 = vector.load %arg6[%c0_9, %c0_10, %c0_11] : memref<1x1x96xf32, #tpu.memory_space<vmem>>, vector<1x1x96xf32>
    %9 = vector.shape_cast %8 : vector<1x1x96xf32> to vector<1x96xf32>
    %c0_12 = arith.constant 0 : index
    %c0_13 = arith.constant 0 : index
    %c0_14 = arith.constant 0 : index
    %10 = vector.load %arg7[%c0_12, %c0_13, %c0_14] : memref<1x32x32xbf16, #tpu.memory_space<vmem>>, vector<1x32x32xbf16>
    %11 = vector.shape_cast %10 : vector<1x32x32xbf16> to vector<32x32xbf16>
    %c0_15 = arith.constant 0 : index
    %c0_16 = arith.constant 0 : index
    %c0_17 = arith.constant 0 : index
    %12 = vector.load %arg8[%c0_15, %c0_16, %c0_17] : memref<1x1x32xf32, #tpu.memory_space<vmem>>, vector<1x1x32xf32>
    %13 = vector.shape_cast %12 : vector<1x1x32xf32> to vector<1x32xf32>
    %14 = arith.truncf %4 : vector<8x32xf32> to vector<8x32xbf16>
    %cst = arith.constant dense<0.000000e+00> : vector<8x96xf32>
    %15 = tpu.matmul %14, %7, %cst {dimension_numbers = #tpu.dot_dimension_numbers<[1], [0], [0], [1], [0, 0, 1, 1], [], []>} : vector<8x32xbf16>, vector<32x96xbf16>, vector<8x96xf32> -> vector<8x96xf32>
    %16 = vector.broadcast %9 : vector<1x96xf32> to vector<8x96xf32>
    %17 = arith.addf %15, %16 : vector<8x96xf32>
    %18 = vector.shape_cast %17 : vector<8x96xf32> to vector<1x8x96xf32>
    %19 = arith.truncf %18 : vector<1x8x96xf32> to vector<1x8x96xbf16>
    %20 = tpu.iota {dimensions = array<i32: 0>} : vector<8x8xi32>
    %21 = tpu.iota {dimensions = array<i32: 1>} : vector<8x8xi32>
    %22 = arith.cmpi sle, %21, %20 : vector<8x8xi32>
    %cst_18 = arith.constant 0.000000e+00 : f32
    %23 = vector.broadcast %cst_18 : f32 to vector<8x32xf32>
    %24 = vector.extract_strided_slice %19 {offsets = [0, 0, 0], sizes = [1, 8, 8], strides = [1, 1, 1]} : vector<1x8x96xbf16> to vector<1x8x8xbf16>
    %25 = vector.extract_strided_slice %19 {offsets = [0, 0, 32], sizes = [1, 8, 8], strides = [1, 1, 1]} : vector<1x8x96xbf16> to vector<1x8x8xbf16>
    %26 = vector.extract_strided_slice %19 {offsets = [0, 0, 64], sizes = [1, 8, 8], strides = [1, 1, 1]} : vector<1x8x96xbf16> to vector<1x8x8xbf16>
    "tpu.trace_start"() <{level = 10 : i32, message = "bqd,bkd->bqk"}> : () -> ()
    %cst_19 = arith.constant dense<0.000000e+00> : vector<1x8x8xf32>
    %27 = tpu.matmul %24, %25, %cst_19 {dimension_numbers = #tpu.dot_dimension_numbers<[2], [2], [1], [1], [0, 0, 0, 1, 1, 1], [0], [0]>} : vector<1x8x8xbf16>, vector<1x8x8xbf16>, vector<1x8x8xf32> -> vector<1x8x8xf32>
    %cst_20 = arith.constant -1.000000e+30 : f32
    "tpu.trace_stop"() : () -> ()
    %28 = vector.shape_cast %22 : vector<8x8xi1> to vector<1x8x8xi1>
    %29 = vector.broadcast %cst_20 : f32 to vector<1x8x8xf32>
    %30 = arith.select %28, %27, %29 : vector<1x8x8xi1>, vector<1x8x8xf32>
    %cst_21 = arith.constant dense<0xFF800000> : vector<1x8xf32>
    %31 = vector.multi_reduction <maximumf>, %30, %cst_21 [2] : vector<1x8x8xf32> to vector<1x8xf32>
    %32 = vector.shape_cast %31 : vector<1x8xf32> to vector<1x8x1xf32>
    %33 = vector.broadcast %32 : vector<1x8x1xf32> to vector<1x8x8xf32>
    %34 = arith.subf %30, %33 : vector<1x8x8xf32>
    %35 = math.exp %34 : vector<1x8x8xf32>
    %cst_22 = arith.constant dense<0.000000e+00> : vector<1x8xf32>
    %36 = vector.multi_reduction <add>, %35, %cst_22 [2] : vector<1x8x8xf32> to vector<1x8xf32>
    %37 = vector.shape_cast %36 : vector<1x8xf32> to vector<1x8x1xf32>
    %38 = tpu.reciprocal %37 {approx = true} : vector<1x8x1xf32> -> vector<1x8x1xf32>
    %39 = vector.broadcast %38 : vector<1x8x1xf32> to vector<1x8x8xf32>
    %40 = arith.mulf %35, %39 : vector<1x8x8xf32>
    %41 = arith.truncf %40 : vector<1x8x8xf32> to vector<1x8x8xbf16>
    "tpu.trace_start"() <{level = 10 : i32, message = "bqk,bkd->bqd"}> : () -> ()
    %cst_23 = arith.constant dense<0.000000e+00> : vector<1x8x8xf32>
    %42 = tpu.matmul %41, %26, %cst_23 {dimension_numbers = #tpu.dot_dimension_numbers<[2], [1], [1], [2], [0, 0, 0, 1, 1, 2], [0], [0]>} : vector<1x8x8xbf16>, vector<1x8x8xbf16>, vector<1x8x8xf32> -> vector<1x8x8xf32>
    "tpu.trace_stop"() : () -> ()
    %43 = vector.shape_cast %42 : vector<1x8x8xf32> to vector<8x8xf32>
    %44 = arith.truncf %43 : vector<8x8xf32> to vector<8x8xbf16>
    %45 = vector.extract_strided_slice %11 {offsets = [0, 0], sizes = [8, 32], strides = [1, 1]} : vector<32x32xbf16> to vector<8x32xbf16>
    %cst_24 = arith.constant dense<0.000000e+00> : vector<8x32xf32>
    %46 = tpu.matmul %44, %45, %cst_24 {dimension_numbers = #tpu.dot_dimension_numbers<[1], [0], [0], [1], [0, 0, 1, 1], [], []>} : vector<8x8xbf16>, vector<8x32xbf16>, vector<8x32xf32> -> vector<8x32xf32>
    %47 = arith.addf %23, %46 : vector<8x32xf32>
    %48 = vector.extract_strided_slice %19 {offsets = [0, 0, 8], sizes = [1, 8, 8], strides = [1, 1, 1]} : vector<1x8x96xbf16> to vector<1x8x8xbf16>
    %49 = vector.extract_strided_slice %19 {offsets = [0, 0, 40], sizes = [1, 8, 8], strides = [1, 1, 1]} : vector<1x8x96xbf16> to vector<1x8x8xbf16>
    %50 = vector.extract_strided_slice %19 {offsets = [0, 0, 72], sizes = [1, 8, 8], strides = [1, 1, 1]} : vector<1x8x96xbf16> to vector<1x8x8xbf16>
    "tpu.trace_start"() <{level = 10 : i32, message = "bqd,bkd->bqk"}> : () -> ()
    %cst_25 = arith.constant dense<0.000000e+00> : vector<1x8x8xf32>
    %51 = tpu.matmul %48, %49, %cst_25 {dimension_numbers = #tpu.dot_dimension_numbers<[2], [2], [1], [1], [0, 0, 0, 1, 1, 1], [0], [0]>} : vector<1x8x8xbf16>, vector<1x8x8xbf16>, vector<1x8x8xf32> -> vector<1x8x8xf32>
    %cst_26 = arith.constant -1.000000e+30 : f32
    "tpu.trace_stop"() : () -> ()
    %52 = vector.shape_cast %22 : vector<8x8xi1> to vector<1x8x8xi1>
    %53 = vector.broadcast %cst_26 : f32 to vector<1x8x8xf32>
    %54 = arith.select %52, %51, %53 : vector<1x8x8xi1>, vector<1x8x8xf32>
    %cst_27 = arith.constant dense<0xFF800000> : vector<1x8xf32>
    %55 = vector.multi_reduction <maximumf>, %54, %cst_27 [2] : vector<1x8x8xf32> to vector<1x8xf32>
    %56 = vector.shape_cast %55 : vector<1x8xf32> to vector<1x8x1xf32>
    %57 = vector.broadcast %56 : vector<1x8x1xf32> to vector<1x8x8xf32>
    %58 = arith.subf %54, %57 : vector<1x8x8xf32>
    %59 = math.exp %58 : vector<1x8x8xf32>
    %cst_28 = arith.constant dense<0.000000e+00> : vector<1x8xf32>
    %60 = vector.multi_reduction <add>, %59, %cst_28 [2] : vector<1x8x8xf32> to vector<1x8xf32>
    %61 = vector.shape_cast %60 : vector<1x8xf32> to vector<1x8x1xf32>
    %62 = tpu.reciprocal %61 {approx = true} : vector<1x8x1xf32> -> vector<1x8x1xf32>
    %63 = vector.broadcast %62 : vector<1x8x1xf32> to vector<1x8x8xf32>
    %64 = arith.mulf %59, %63 : vector<1x8x8xf32>
    %65 = arith.truncf %64 : vector<1x8x8xf32> to vector<1x8x8xbf16>
    "tpu.trace_start"() <{level = 10 : i32, message = "bqk,bkd->bqd"}> : () -> ()
    %cst_29 = arith.constant dense<0.000000e+00> : vector<1x8x8xf32>
    %66 = tpu.matmul %65, %50, %cst_29 {dimension_numbers = #tpu.dot_dimension_numbers<[2], [1], [1], [2], [0, 0, 0, 1, 1, 2], [0], [0]>} : vector<1x8x8xbf16>, vector<1x8x8xbf16>, vector<1x8x8xf32> -> vector<1x8x8xf32>
    "tpu.trace_stop"() : () -> ()
    %67 = vector.shape_cast %66 : vector<1x8x8xf32> to vector<8x8xf32>
    %68 = arith.truncf %67 : vector<8x8xf32> to vector<8x8xbf16>
    %69 = vector.extract_strided_slice %11 {offsets = [8, 0], sizes = [8, 32], strides = [1, 1]} : vector<32x32xbf16> to vector<8x32xbf16>
    %cst_30 = arith.constant dense<0.000000e+00> : vector<8x32xf32>
    %70 = tpu.matmul %68, %69, %cst_30 {dimension_numbers = #tpu.dot_dimension_numbers<[1], [0], [0], [1], [0, 0, 1, 1], [], []>} : vector<8x8xbf16>, vector<8x32xbf16>, vector<8x32xf32> -> vector<8x32xf32>
    %71 = arith.addf %47, %70 : vector<8x32xf32>
    %72 = vector.extract_strided_slice %19 {offsets = [0, 0, 16], sizes = [1, 8, 8], strides = [1, 1, 1]} : vector<1x8x96xbf16> to vector<1x8x8xbf16>
    %73 = vector.extract_strided_slice %19 {offsets = [0, 0, 48], sizes = [1, 8, 8], strides = [1, 1, 1]} : vector<1x8x96xbf16> to vector<1x8x8xbf16>
    %74 = vector.extract_strided_slice %19 {offsets = [0, 0, 80], sizes = [1, 8, 8], strides = [1, 1, 1]} : vector<1x8x96xbf16> to vector<1x8x8xbf16>
    "tpu.trace_start"() <{level = 10 : i32, message = "bqd,bkd->bqk"}> : () -> ()
    %cst_31 = arith.constant dense<0.000000e+00> : vector<1x8x8xf32>
    %75 = tpu.matmul %72, %73, %cst_31 {dimension_numbers = #tpu.dot_dimension_numbers<[2], [2], [1], [1], [0, 0, 0, 1, 1, 1], [0], [0]>} : vector<1x8x8xbf16>, vector<1x8x8xbf16>, vector<1x8x8xf32> -> vector<1x8x8xf32>
    %cst_32 = arith.constant -1.000000e+30 : f32
    "tpu.trace_stop"() : () -> ()
    %76 = vector.shape_cast %22 : vector<8x8xi1> to vector<1x8x8xi1>
    %77 = vector.broadcast %cst_32 : f32 to vector<1x8x8xf32>
    %78 = arith.select %76, %75, %77 : vector<1x8x8xi1>, vector<1x8x8xf32>
    %cst_33 = arith.constant dense<0xFF800000> : vector<1x8xf32>
    %79 = vector.multi_reduction <maximumf>, %78, %cst_33 [2] : vector<1x8x8xf32> to vector<1x8xf32>
    %80 = vector.shape_cast %79 : vector<1x8xf32> to vector<1x8x1xf32>
    %81 = vector.broadcast %80 : vector<1x8x1xf32> to vector<1x8x8xf32>
    %82 = arith.subf %78, %81 : vector<1x8x8xf32>
    %83 = math.exp %82 : vector<1x8x8xf32>
    %cst_34 = arith.constant dense<0.000000e+00> : vector<1x8xf32>
    %84 = vector.multi_reduction <add>, %83, %cst_34 [2] : vector<1x8x8xf32> to vector<1x8xf32>
    %85 = vector.shape_cast %84 : vector<1x8xf32> to vector<1x8x1xf32>
    %86 = tpu.reciprocal %85 {approx = true} : vector<1x8x1xf32> -> vector<1x8x1xf32>
    %87 = vector.broadcast %86 : vector<1x8x1xf32> to vector<1x8x8xf32>
    %88 = arith.mulf %83, %87 : vector<1x8x8xf32>
    %89 = arith.truncf %88 : vector<1x8x8xf32> to vector<1x8x8xbf16>
    "tpu.trace_start"() <{level = 10 : i32, message = "bqk,bkd->bqd"}> : () -> ()
    %cst_35 = arith.constant dense<0.000000e+00> : vector<1x8x8xf32>
    %90 = tpu.matmul %89, %74, %cst_35 {dimension_numbers = #tpu.dot_dimension_numbers<[2], [1], [1], [2], [0, 0, 0, 1, 1, 2], [0], [0]>} : vector<1x8x8xbf16>, vector<1x8x8xbf16>, vector<1x8x8xf32> -> vector<1x8x8xf32>
    "tpu.trace_stop"() : () -> ()
    %91 = vector.shape_cast %90 : vector<1x8x8xf32> to vector<8x8xf32>
    %92 = arith.truncf %91 : vector<8x8xf32> to vector<8x8xbf16>
    %93 = vector.extract_strided_slice %11 {offsets = [16, 0], sizes = [8, 32], strides = [1, 1]} : vector<32x32xbf16> to vector<8x32xbf16>
    %cst_36 = arith.constant dense<0.000000e+00> : vector<8x32xf32>
    %94 = tpu.matmul %92, %93, %cst_36 {dimension_numbers = #tpu.dot_dimension_numbers<[1], [0], [0], [1], [0, 0, 1, 1], [], []>} : vector<8x8xbf16>, vector<8x32xbf16>, vector<8x32xf32> -> vector<8x32xf32>
    %95 = arith.addf %71, %94 : vector<8x32xf32>
    %96 = vector.extract_strided_slice %19 {offsets = [0, 0, 24], sizes = [1, 8, 8], strides = [1, 1, 1]} : vector<1x8x96xbf16> to vector<1x8x8xbf16>
    %97 = vector.extract_strided_slice %19 {offsets = [0, 0, 56], sizes = [1, 8, 8], strides = [1, 1, 1]} : vector<1x8x96xbf16> to vector<1x8x8xbf16>
    %98 = vector.extract_strided_slice %19 {offsets = [0, 0, 88], sizes = [1, 8, 8], strides = [1, 1, 1]} : vector<1x8x96xbf16> to vector<1x8x8xbf16>
    "tpu.trace_start"() <{level = 10 : i32, message = "bqd,bkd->bqk"}> : () -> ()
    %cst_37 = arith.constant dense<0.000000e+00> : vector<1x8x8xf32>
    %99 = tpu.matmul %96, %97, %cst_37 {dimension_numbers = #tpu.dot_dimension_numbers<[2], [2], [1], [1], [0, 0, 0, 1, 1, 1], [0], [0]>} : vector<1x8x8xbf16>, vector<1x8x8xbf16>, vector<1x8x8xf32> -> vector<1x8x8xf32>
    %cst_38 = arith.constant -1.000000e+30 : f32
    "tpu.trace_stop"() : () -> ()
    %100 = vector.shape_cast %22 : vector<8x8xi1> to vector<1x8x8xi1>
    %101 = vector.broadcast %cst_38 : f32 to vector<1x8x8xf32>
    %102 = arith.select %100, %99, %101 : vector<1x8x8xi1>, vector<1x8x8xf32>
    %cst_39 = arith.constant dense<0xFF800000> : vector<1x8xf32>
    %103 = vector.multi_reduction <maximumf>, %102, %cst_39 [2] : vector<1x8x8xf32> to vector<1x8xf32>
    %104 = vector.shape_cast %103 : vector<1x8xf32> to vector<1x8x1xf32>
    %105 = vector.broadcast %104 : vector<1x8x1xf32> to vector<1x8x8xf32>
    %106 = arith.subf %102, %105 : vector<1x8x8xf32>
    %107 = math.exp %106 : vector<1x8x8xf32>
    %cst_40 = arith.constant dense<0.000000e+00> : vector<1x8xf32>
    %108 = vector.multi_reduction <add>, %107, %cst_40 [2] : vector<1x8x8xf32> to vector<1x8xf32>
    %109 = vector.shape_cast %108 : vector<1x8xf32> to vector<1x8x1xf32>
    %110 = tpu.reciprocal %109 {approx = true} : vector<1x8x1xf32> -> vector<1x8x1xf32>
    %111 = vector.broadcast %110 : vector<1x8x1xf32> to vector<1x8x8xf32>
    %112 = arith.mulf %107, %111 : vector<1x8x8xf32>
    %113 = arith.truncf %112 : vector<1x8x8xf32> to vector<1x8x8xbf16>
    "tpu.trace_start"() <{level = 10 : i32, message = "bqk,bkd->bqd"}> : () -> ()
    %cst_41 = arith.constant dense<0.000000e+00> : vector<1x8x8xf32>
    %114 = tpu.matmul %113, %98, %cst_41 {dimension_numbers = #tpu.dot_dimension_numbers<[2], [1], [1], [2], [0, 0, 0, 1, 1, 2], [0], [0]>} : vector<1x8x8xbf16>, vector<1x8x8xbf16>, vector<1x8x8xf32> -> vector<1x8x8xf32>
    "tpu.trace_stop"() : () -> ()
    %115 = vector.shape_cast %114 : vector<1x8x8xf32> to vector<8x8xf32>
    %116 = arith.truncf %115 : vector<8x8xf32> to vector<8x8xbf16>
    %117 = vector.extract_strided_slice %11 {offsets = [24, 0], sizes = [8, 32], strides = [1, 1]} : vector<32x32xbf16> to vector<8x32xbf16>
    %cst_42 = arith.constant dense<0.000000e+00> : vector<8x32xf32>
    %118 = tpu.matmul %116, %117, %cst_42 {dimension_numbers = #tpu.dot_dimension_numbers<[1], [0], [0], [1], [0, 0, 1, 1], [], []>} : vector<8x8xbf16>, vector<8x32xbf16>, vector<8x32xf32> -> vector<8x32xf32>
    %119 = arith.addf %95, %118 : vector<8x32xf32>
    %120 = vector.broadcast %13 : vector<1x32xf32> to vector<8x32xf32>
    %121 = arith.addf %119, %120 : vector<8x32xf32>
    %122 = arith.addf %4, %121 : vector<8x32xf32>
    %c0_43 = arith.constant 0 : index
    %c0_44 = arith.constant 0 : index
    %c0_45 = arith.constant 0 : index
    %123 = vector.load %arg9[%c0_43, %c0_44, %c0_45] : memref<1x1x32xf32, #tpu.memory_space<vmem>>, vector<1x1x32xf32>
    %124 = vector.shape_cast %123 : vector<1x1x32xf32> to vector<1x32xf32>
    %c0_46 = arith.constant 0 : index
    %c0_47 = arith.constant 0 : index
    %c0_48 = arith.constant 0 : index
    %125 = vector.load %arg10[%c0_46, %c0_47, %c0_48] : memref<1x1x32xf32, #tpu.memory_space<vmem>>, vector<1x1x32xf32>
    %126 = vector.shape_cast %125 : vector<1x1x32xf32> to vector<1x32xf32>
    %cst_49 = arith.constant dense<0.000000e+00> : vector<8xf32>
    %127 = vector.multi_reduction <add>, %122, %cst_49 [1] : vector<8x32xf32> to vector<8xf32>
    %128 = vector.shape_cast %127 : vector<8xf32> to vector<8x1xf32>
    %cst_50 = arith.constant 3.200000e+01 : f32
    %129 = vector.broadcast %cst_50 : f32 to vector<8x1xf32>
    %130 = arith.divf %128, %129 : vector<8x1xf32>
    %131 = arith.mulf %122, %122 : vector<8x32xf32>
    %cst_51 = arith.constant dense<0.000000e+00> : vector<8xf32>
    %132 = vector.multi_reduction <add>, %131, %cst_51 [1] : vector<8x32xf32> to vector<8xf32>
    %133 = vector.shape_cast %132 : vector<8xf32> to vector<8x1xf32>
    %cst_52 = arith.constant 3.200000e+01 : f32
    %134 = vector.broadcast %cst_52 : f32 to vector<8x1xf32>
    %135 = arith.divf %133, %134 : vector<8x1xf32>
    %136 = arith.mulf %130, %130 : vector<8x1xf32>
    %137 = arith.subf %135, %136 : vector<8x1xf32>
    %138 = vector.broadcast %130 : vector<8x1xf32> to vector<8x32xf32>
    %139 = arith.subf %122, %138 : vector<8x32xf32>
    %cst_53 = arith.constant 9.99999974E-6 : f32
    %140 = vector.broadcast %cst_53 : f32 to vector<8x1xf32>
    %141 = arith.addf %137, %140 : vector<8x1xf32>
    %142 = math.rsqrt %141 : vector<8x1xf32>
    %143 = vector.broadcast %142 : vector<8x1xf32> to vector<8x32xf32>
    %144 = arith.mulf %139, %143 : vector<8x32xf32>
    %145 = vector.broadcast %124 : vector<1x32xf32> to vector<8x32xf32>
    %146 = arith.mulf %144, %145 : vector<8x32xf32>
    %147 = vector.broadcast %126 : vector<1x32xf32> to vector<8x32xf32>
    %148 = arith.addf %146, %147 : vector<8x32xf32>
    %c0_54 = arith.constant 0 : index
    %c0_55 = arith.constant 0 : index
    %c0_56 = arith.constant 0 : index
    %149 = vector.load %arg11[%c0_54, %c0_55, %c0_56] : memref<1x32x32xbf16, #tpu.memory_space<vmem>>, vector<1x32x32xbf16>
    %150 = vector.shape_cast %149 : vector<1x32x32xbf16> to vector<32x32xbf16>
    %c0_57 = arith.constant 0 : index
    %c0_58 = arith.constant 0 : index
    %c0_59 = arith.constant 0 : index
    %151 = vector.load %arg12[%c0_57, %c0_58, %c0_59] : memref<1x1x32xf32, #tpu.memory_space<vmem>>, vector<1x1x32xf32>
    %152 = vector.shape_cast %151 : vector<1x1x32xf32> to vector<1x32xf32>
    %c0_60 = arith.constant 0 : index
    %c0_61 = arith.constant 0 : index
    %c0_62 = arith.constant 0 : index
    %153 = vector.load %arg13[%c0_60, %c0_61, %c0_62] : memref<1x32x64xbf16, #tpu.memory_space<vmem>>, vector<1x32x64xbf16>
    %154 = vector.shape_cast %153 : vector<1x32x64xbf16> to vector<32x64xbf16>
    %c0_63 = arith.constant 0 : index
    %c0_64 = arith.constant 0 : index
    %c0_65 = arith.constant 0 : index
    %155 = vector.load %arg14[%c0_63, %c0_64, %c0_65] : memref<1x1x64xf32, #tpu.memory_space<vmem>>, vector<1x1x64xf32>
    %156 = vector.shape_cast %155 : vector<1x1x64xf32> to vector<1x64xf32>
    %c0_66 = arith.constant 0 : index
    %c0_67 = arith.constant 0 : index
    %c0_68 = arith.constant 0 : index
    %157 = vector.load %arg15[%c0_66, %c0_67, %c0_68] : memref<1x32x32xbf16, #tpu.memory_space<vmem>>, vector<1x32x32xbf16>
    %158 = vector.shape_cast %157 : vector<1x32x32xbf16> to vector<32x32xbf16>
    %c0_69 = arith.constant 0 : index
    %c0_70 = arith.constant 0 : index
    %c0_71 = arith.constant 0 : index
    %159 = vector.load %arg16[%c0_69, %c0_70, %c0_71] : memref<1x1x32xf32, #tpu.memory_space<vmem>>, vector<1x1x32xf32>
    %160 = vector.shape_cast %159 : vector<1x1x32xf32> to vector<1x32xf32>
    %161 = arith.truncf %148 : vector<8x32xf32> to vector<8x32xbf16>
    %cst_72 = arith.constant dense<0.000000e+00> : vector<8x32xf32>
    %162 = tpu.matmul %161, %150, %cst_72 {dimension_numbers = #tpu.dot_dimension_numbers<[1], [0], [0], [1], [0, 0, 1, 1], [], []>} : vector<8x32xbf16>, vector<32x32xbf16>, vector<8x32xf32> -> vector<8x32xf32>
    %163 = vector.broadcast %152 : vector<1x32xf32> to vector<8x32xf32>
    %164 = arith.addf %162, %163 : vector<8x32xf32>
    %165 = vector.shape_cast %164 : vector<8x32xf32> to vector<1x8x32xf32>
    %166 = arith.truncf %165 : vector<1x8x32xf32> to vector<1x8x32xbf16>
    %167 = vector.shape_cast %5 : vector<1x8x32xbf16> to vector<8x32xbf16>
    %cst_73 = arith.constant dense<0.000000e+00> : vector<8x64xf32>
    %168 = tpu.matmul %167, %154, %cst_73 {dimension_numbers = #tpu.dot_dimension_numbers<[1], [0], [0], [1], [0, 0, 1, 1], [], []>} : vector<8x32xbf16>, vector<32x64xbf16>, vector<8x64xf32> -> vector<8x64xf32>
    %169 = vector.broadcast %156 : vector<1x64xf32> to vector<8x64xf32>
    %170 = arith.addf %168, %169 : vector<8x64xf32>
    %171 = vector.shape_cast %170 : vector<8x64xf32> to vector<1x8x64xf32>
    %172 = arith.truncf %171 : vector<1x8x64xf32> to vector<1x8x64xbf16>
    %cst_74 = arith.constant 0.000000e+00 : f32
    %173 = vector.broadcast %cst_74 : f32 to vector<8x32xf32>
    %174 = vector.extract_strided_slice %166 {offsets = [0, 0, 0], sizes = [1, 8, 8], strides = [1, 1, 1]} : vector<1x8x32xbf16> to vector<1x8x8xbf16>
    %175 = vector.extract_strided_slice %172 {offsets = [0, 0, 0], sizes = [1, 8, 8], strides = [1, 1, 1]} : vector<1x8x64xbf16> to vector<1x8x8xbf16>
    %176 = vector.extract_strided_slice %172 {offsets = [0, 0, 32], sizes = [1, 8, 8], strides = [1, 1, 1]} : vector<1x8x64xbf16> to vector<1x8x8xbf16>
    "tpu.trace_start"() <{level = 10 : i32, message = "bqd,bkd->bqk"}> : () -> ()
    %cst_75 = arith.constant dense<0.000000e+00> : vector<1x8x8xf32>
    %177 = tpu.matmul %174, %175, %cst_75 {dimension_numbers = #tpu.dot_dimension_numbers<[2], [2], [1], [1], [0, 0, 0, 1, 1, 1], [0], [0]>} : vector<1x8x8xbf16>, vector<1x8x8xbf16>, vector<1x8x8xf32> -> vector<1x8x8xf32>
    "tpu.trace_stop"() : () -> ()
    %cst_76 = arith.constant dense<0xFF800000> : vector<1x8xf32>
    %178 = vector.multi_reduction <maximumf>, %177, %cst_76 [2] : vector<1x8x8xf32> to vector<1x8xf32>
    %179 = vector.shape_cast %178 : vector<1x8xf32> to vector<1x8x1xf32>
    %180 = vector.broadcast %179 : vector<1x8x1xf32> to vector<1x8x8xf32>
    %181 = arith.subf %177, %180 : vector<1x8x8xf32>
    %182 = math.exp %181 : vector<1x8x8xf32>
    %cst_77 = arith.constant dense<0.000000e+00> : vector<1x8xf32>
    %183 = vector.multi_reduction <add>, %182, %cst_77 [2] : vector<1x8x8xf32> to vector<1x8xf32>
    %184 = vector.shape_cast %183 : vector<1x8xf32> to vector<1x8x1xf32>
    %185 = tpu.reciprocal %184 {approx = true} : vector<1x8x1xf32> -> vector<1x8x1xf32>
    %186 = vector.broadcast %185 : vector<1x8x1xf32> to vector<1x8x8xf32>
    %187 = arith.mulf %182, %186 : vector<1x8x8xf32>
    %188 = arith.truncf %187 : vector<1x8x8xf32> to vector<1x8x8xbf16>
    "tpu.trace_start"() <{level = 10 : i32, message = "bqk,bkd->bqd"}> : () -> ()
    %cst_78 = arith.constant dense<0.000000e+00> : vector<1x8x8xf32>
    %189 = tpu.matmul %188, %176, %cst_78 {dimension_numbers = #tpu.dot_dimension_numbers<[2], [1], [1], [2], [0, 0, 0, 1, 1, 2], [0], [0]>} : vector<1x8x8xbf16>, vector<1x8x8xbf16>, vector<1x8x8xf32> -> vector<1x8x8xf32>
    "tpu.trace_stop"() : () -> ()
    %190 = vector.shape_cast %189 : vector<1x8x8xf32> to vector<8x8xf32>
    %191 = arith.truncf %190 : vector<8x8xf32> to vector<8x8xbf16>
    %192 = vector.extract_strided_slice %158 {offsets = [0, 0], sizes = [8, 32], strides = [1, 1]} : vector<32x32xbf16> to vector<8x32xbf16>
    %cst_79 = arith.constant dense<0.000000e+00> : vector<8x32xf32>
    %193 = tpu.matmul %191, %192, %cst_79 {dimension_numbers = #tpu.dot_dimension_numbers<[1], [0], [0], [1], [0, 0, 1, 1], [], []>} : vector<8x8xbf16>, vector<8x32xbf16>, vector<8x32xf32> -> vector<8x32xf32>
    %194 = arith.addf %173, %193 : vector<8x32xf32>
    %195 = vector.extract_strided_slice %166 {offsets = [0, 0, 8], sizes = [1, 8, 8], strides = [1, 1, 1]} : vector<1x8x32xbf16> to vector<1x8x8xbf16>
    %196 = vector.extract_strided_slice %172 {offsets = [0, 0, 8], sizes = [1, 8, 8], strides = [1, 1, 1]} : vector<1x8x64xbf16> to vector<1x8x8xbf16>
    %197 = vector.extract_strided_slice %172 {offsets = [0, 0, 40], sizes = [1, 8, 8], strides = [1, 1, 1]} : vector<1x8x64xbf16> to vector<1x8x8xbf16>
    "tpu.trace_start"() <{level = 10 : i32, message = "bqd,bkd->bqk"}> : () -> ()
    %cst_80 = arith.constant dense<0.000000e+00> : vector<1x8x8xf32>
    %198 = tpu.matmul %195, %196, %cst_80 {dimension_numbers = #tpu.dot_dimension_numbers<[2], [2], [1], [1], [0, 0, 0, 1, 1, 1], [0], [0]>} : vector<1x8x8xbf16>, vector<1x8x8xbf16>, vector<1x8x8xf32> -> vector<1x8x8xf32>
    "tpu.trace_stop"() : () -> ()
    %cst_81 = arith.constant dense<0xFF800000> : vector<1x8xf32>
    %199 = vector.multi_reduction <maximumf>, %198, %cst_81 [2] : vector<1x8x8xf32> to vector<1x8xf32>
    %200 = vector.shape_cast %199 : vector<1x8xf32> to vector<1x8x1xf32>
    %201 = vector.broadcast %200 : vector<1x8x1xf32> to vector<1x8x8xf32>
    %202 = arith.subf %198, %201 : vector<1x8x8xf32>
    %203 = math.exp %202 : vector<1x8x8xf32>
    %cst_82 = arith.constant dense<0.000000e+00> : vector<1x8xf32>
    %204 = vector.multi_reduction <add>, %203, %cst_82 [2] : vector<1x8x8xf32> to vector<1x8xf32>
    %205 = vector.shape_cast %204 : vector<1x8xf32> to vector<1x8x1xf32>
    %206 = tpu.reciprocal %205 {approx = true} : vector<1x8x1xf32> -> vector<1x8x1xf32>
    %207 = vector.broadcast %206 : vector<1x8x1xf32> to vector<1x8x8xf32>
    %208 = arith.mulf %203, %207 : vector<1x8x8xf32>
    %209 = arith.truncf %208 : vector<1x8x8xf32> to vector<1x8x8xbf16>
    "tpu.trace_start"() <{level = 10 : i32, message = "bqk,bkd->bqd"}> : () -> ()
    %cst_83 = arith.constant dense<0.000000e+00> : vector<1x8x8xf32>
    %210 = tpu.matmul %209, %197, %cst_83 {dimension_numbers = #tpu.dot_dimension_numbers<[2], [1], [1], [2], [0, 0, 0, 1, 1, 2], [0], [0]>} : vector<1x8x8xbf16>, vector<1x8x8xbf16>, vector<1x8x8xf32> -> vector<1x8x8xf32>
    "tpu.trace_stop"() : () -> ()
    %211 = vector.shape_cast %210 : vector<1x8x8xf32> to vector<8x8xf32>
    %212 = arith.truncf %211 : vector<8x8xf32> to vector<8x8xbf16>
    %213 = vector.extract_strided_slice %158 {offsets = [8, 0], sizes = [8, 32], strides = [1, 1]} : vector<32x32xbf16> to vector<8x32xbf16>
    %cst_84 = arith.constant dense<0.000000e+00> : vector<8x32xf32>
    %214 = tpu.matmul %212, %213, %cst_84 {dimension_numbers = #tpu.dot_dimension_numbers<[1], [0], [0], [1], [0, 0, 1, 1], [], []>} : vector<8x8xbf16>, vector<8x32xbf16>, vector<8x32xf32> -> vector<8x32xf32>
    %215 = arith.addf %194, %214 : vector<8x32xf32>
    %216 = vector.extract_strided_slice %166 {offsets = [0, 0, 16], sizes = [1, 8, 8], strides = [1, 1, 1]} : vector<1x8x32xbf16> to vector<1x8x8xbf16>
    %217 = vector.extract_strided_slice %172 {offsets = [0, 0, 16], sizes = [1, 8, 8], strides = [1, 1, 1]} : vector<1x8x64xbf16> to vector<1x8x8xbf16>
    %218 = vector.extract_strided_slice %172 {offsets = [0, 0, 48], sizes = [1, 8, 8], strides = [1, 1, 1]} : vector<1x8x64xbf16> to vector<1x8x8xbf16>
    "tpu.trace_start"() <{level = 10 : i32, message = "bqd,bkd->bqk"}> : () -> ()
    %cst_85 = arith.constant dense<0.000000e+00> : vector<1x8x8xf32>
    %219 = tpu.matmul %216, %217, %cst_85 {dimension_numbers = #tpu.dot_dimension_numbers<[2], [2], [1], [1], [0, 0, 0, 1, 1, 1], [0], [0]>} : vector<1x8x8xbf16>, vector<1x8x8xbf16>, vector<1x8x8xf32> -> vector<1x8x8xf32>
    "tpu.trace_stop"() : () -> ()
    %cst_86 = arith.constant dense<0xFF800000> : vector<1x8xf32>
    %220 = vector.multi_reduction <maximumf>, %219, %cst_86 [2] : vector<1x8x8xf32> to vector<1x8xf32>
    %221 = vector.shape_cast %220 : vector<1x8xf32> to vector<1x8x1xf32>
    %222 = vector.broadcast %221 : vector<1x8x1xf32> to vector<1x8x8xf32>
    %223 = arith.subf %219, %222 : vector<1x8x8xf32>
    %224 = math.exp %223 : vector<1x8x8xf32>
    %cst_87 = arith.constant dense<0.000000e+00> : vector<1x8xf32>
    %225 = vector.multi_reduction <add>, %224, %cst_87 [2] : vector<1x8x8xf32> to vector<1x8xf32>
    %226 = vector.shape_cast %225 : vector<1x8xf32> to vector<1x8x1xf32>
    %227 = tpu.reciprocal %226 {approx = true} : vector<1x8x1xf32> -> vector<1x8x1xf32>
    %228 = vector.broadcast %227 : vector<1x8x1xf32> to vector<1x8x8xf32>
    %229 = arith.mulf %224, %228 : vector<1x8x8xf32>
    %230 = arith.truncf %229 : vector<1x8x8xf32> to vector<1x8x8xbf16>
    "tpu.trace_start"() <{level = 10 : i32, message = "bqk,bkd->bqd"}> : () -> ()
    %cst_88 = arith.constant dense<0.000000e+00> : vector<1x8x8xf32>
    %231 = tpu.matmul %230, %218, %cst_88 {dimension_numbers = #tpu.dot_dimension_numbers<[2], [1], [1], [2], [0, 0, 0, 1, 1, 2], [0], [0]>} : vector<1x8x8xbf16>, vector<1x8x8xbf16>, vector<1x8x8xf32> -> vector<1x8x8xf32>
    "tpu.trace_stop"() : () -> ()
    %232 = vector.shape_cast %231 : vector<1x8x8xf32> to vector<8x8xf32>
    %233 = arith.truncf %232 : vector<8x8xf32> to vector<8x8xbf16>
    %234 = vector.extract_strided_slice %158 {offsets = [16, 0], sizes = [8, 32], strides = [1, 1]} : vector<32x32xbf16> to vector<8x32xbf16>
    %cst_89 = arith.constant dense<0.000000e+00> : vector<8x32xf32>
    %235 = tpu.matmul %233, %234, %cst_89 {dimension_numbers = #tpu.dot_dimension_numbers<[1], [0], [0], [1], [0, 0, 1, 1], [], []>} : vector<8x8xbf16>, vector<8x32xbf16>, vector<8x32xf32> -> vector<8x32xf32>
    %236 = arith.addf %215, %235 : vector<8x32xf32>
    %237 = vector.extract_strided_slice %166 {offsets = [0, 0, 24], sizes = [1, 8, 8], strides = [1, 1, 1]} : vector<1x8x32xbf16> to vector<1x8x8xbf16>
    %238 = vector.extract_strided_slice %172 {offsets = [0, 0, 24], sizes = [1, 8, 8], strides = [1, 1, 1]} : vector<1x8x64xbf16> to vector<1x8x8xbf16>
    %239 = vector.extract_strided_slice %172 {offsets = [0, 0, 56], sizes = [1, 8, 8], strides = [1, 1, 1]} : vector<1x8x64xbf16> to vector<1x8x8xbf16>
    "tpu.trace_start"() <{level = 10 : i32, message = "bqd,bkd->bqk"}> : () -> ()
    %cst_90 = arith.constant dense<0.000000e+00> : vector<1x8x8xf32>
    %240 = tpu.matmul %237, %238, %cst_90 {dimension_numbers = #tpu.dot_dimension_numbers<[2], [2], [1], [1], [0, 0, 0, 1, 1, 1], [0], [0]>} : vector<1x8x8xbf16>, vector<1x8x8xbf16>, vector<1x8x8xf32> -> vector<1x8x8xf32>
    "tpu.trace_stop"() : () -> ()
    %cst_91 = arith.constant dense<0xFF800000> : vector<1x8xf32>
    %241 = vector.multi_reduction <maximumf>, %240, %cst_91 [2] : vector<1x8x8xf32> to vector<1x8xf32>
    %242 = vector.shape_cast %241 : vector<1x8xf32> to vector<1x8x1xf32>
    %243 = vector.broadcast %242 : vector<1x8x1xf32> to vector<1x8x8xf32>
    %244 = arith.subf %240, %243 : vector<1x8x8xf32>
    %245 = math.exp %244 : vector<1x8x8xf32>
    %cst_92 = arith.constant dense<0.000000e+00> : vector<1x8xf32>
    %246 = vector.multi_reduction <add>, %245, %cst_92 [2] : vector<1x8x8xf32> to vector<1x8xf32>
    %247 = vector.shape_cast %246 : vector<1x8xf32> to vector<1x8x1xf32>
    %248 = tpu.reciprocal %247 {approx = true} : vector<1x8x1xf32> -> vector<1x8x1xf32>
    %249 = vector.broadcast %248 : vector<1x8x1xf32> to vector<1x8x8xf32>
    %250 = arith.mulf %245, %249 : vector<1x8x8xf32>
    %251 = arith.truncf %250 : vector<1x8x8xf32> to vector<1x8x8xbf16>
    "tpu.trace_start"() <{level = 10 : i32, message = "bqk,bkd->bqd"}> : () -> ()
    %cst_93 = arith.constant dense<0.000000e+00> : vector<1x8x8xf32>
    %252 = tpu.matmul %251, %239, %cst_93 {dimension_numbers = #tpu.dot_dimension_numbers<[2], [1], [1], [2], [0, 0, 0, 1, 1, 2], [0], [0]>} : vector<1x8x8xbf16>, vector<1x8x8xbf16>, vector<1x8x8xf32> -> vector<1x8x8xf32>
    "tpu.trace_stop"() : () -> ()
    %253 = vector.shape_cast %252 : vector<1x8x8xf32> to vector<8x8xf32>
    %254 = arith.truncf %253 : vector<8x8xf32> to vector<8x8xbf16>
    %255 = vector.extract_strided_slice %158 {offsets = [24, 0], sizes = [8, 32], strides = [1, 1]} : vector<32x32xbf16> to vector<8x32xbf16>
    %cst_94 = arith.constant dense<0.000000e+00> : vector<8x32xf32>
    %256 = tpu.matmul %254, %255, %cst_94 {dimension_numbers = #tpu.dot_dimension_numbers<[1], [0], [0], [1], [0, 0, 1, 1], [], []>} : vector<8x8xbf16>, vector<8x32xbf16>, vector<8x32xf32> -> vector<8x32xf32>
    %257 = arith.addf %236, %256 : vector<8x32xf32>
    %258 = vector.broadcast %160 : vector<1x32xf32> to vector<8x32xf32>
    %259 = arith.addf %257, %258 : vector<8x32xf32>
    %260 = arith.addf %148, %259 : vector<8x32xf32>
    %c0_95 = arith.constant 0 : index
    %c0_96 = arith.constant 0 : index
    %c0_97 = arith.constant 0 : index
    %261 = vector.load %arg17[%c0_95, %c0_96, %c0_97] : memref<1x1x32xf32, #tpu.memory_space<vmem>>, vector<1x1x32xf32>
    %262 = vector.shape_cast %261 : vector<1x1x32xf32> to vector<1x32xf32>
    %c0_98 = arith.constant 0 : index
    %c0_99 = arith.constant 0 : index
    %c0_100 = arith.constant 0 : index
    %263 = vector.load %arg18[%c0_98, %c0_99, %c0_100] : memref<1x1x32xf32, #tpu.memory_space<vmem>>, vector<1x1x32xf32>
    %264 = vector.shape_cast %263 : vector<1x1x32xf32> to vector<1x32xf32>
    %cst_101 = arith.constant dense<0.000000e+00> : vector<8xf32>
    %265 = vector.multi_reduction <add>, %260, %cst_101 [1] : vector<8x32xf32> to vector<8xf32>
    %266 = vector.shape_cast %265 : vector<8xf32> to vector<8x1xf32>
    %cst_102 = arith.constant 3.200000e+01 : f32
    %267 = vector.broadcast %cst_102 : f32 to vector<8x1xf32>
    %268 = arith.divf %266, %267 : vector<8x1xf32>
    %269 = arith.mulf %260, %260 : vector<8x32xf32>
    %cst_103 = arith.constant dense<0.000000e+00> : vector<8xf32>
    %270 = vector.multi_reduction <add>, %269, %cst_103 [1] : vector<8x32xf32> to vector<8xf32>
    %271 = vector.shape_cast %270 : vector<8xf32> to vector<8x1xf32>
    %cst_104 = arith.constant 3.200000e+01 : f32
    %272 = vector.broadcast %cst_104 : f32 to vector<8x1xf32>
    %273 = arith.divf %271, %272 : vector<8x1xf32>
    %274 = arith.mulf %268, %268 : vector<8x1xf32>
    %275 = arith.subf %273, %274 : vector<8x1xf32>
    %276 = vector.broadcast %268 : vector<8x1xf32> to vector<8x32xf32>
    %277 = arith.subf %260, %276 : vector<8x32xf32>
    %cst_105 = arith.constant 9.99999974E-6 : f32
    %278 = vector.broadcast %cst_105 : f32 to vector<8x1xf32>
    %279 = arith.addf %275, %278 : vector<8x1xf32>
    %280 = math.rsqrt %279 : vector<8x1xf32>
    %281 = vector.broadcast %280 : vector<8x1xf32> to vector<8x32xf32>
    %282 = arith.mulf %277, %281 : vector<8x32xf32>
    %283 = vector.broadcast %262 : vector<1x32xf32> to vector<8x32xf32>
    %284 = arith.mulf %282, %283 : vector<8x32xf32>
    %285 = vector.broadcast %264 : vector<1x32xf32> to vector<8x32xf32>
    %286 = arith.addf %284, %285 : vector<8x32xf32>
    %c0_106 = arith.constant 0 : index
    %c0_107 = arith.constant 0 : index
    %c0_108 = arith.constant 0 : index
    %287 = vector.load %arg19[%c0_106, %c0_107, %c0_108] : memref<1x32x64xbf16, #tpu.memory_space<vmem>>, vector<1x32x64xbf16>
    %288 = vector.shape_cast %287 : vector<1x32x64xbf16> to vector<32x64xbf16>
    %c0_109 = arith.constant 0 : index
    %c0_110 = arith.constant 0 : index
    %c0_111 = arith.constant 0 : index
    %289 = vector.load %arg20[%c0_109, %c0_110, %c0_111] : memref<1x1x64xf32, #tpu.memory_space<vmem>>, vector<1x1x64xf32>
    %290 = vector.shape_cast %289 : vector<1x1x64xf32> to vector<1x64xf32>
    %c0_112 = arith.constant 0 : index
    %c0_113 = arith.constant 0 : index
    %c0_114 = arith.constant 0 : index
    %291 = vector.load %arg21[%c0_112, %c0_113, %c0_114] : memref<1x64x32xbf16, #tpu.memory_space<vmem>>, vector<1x64x32xbf16>
    %292 = vector.shape_cast %291 : vector<1x64x32xbf16> to vector<64x32xbf16>
    %c0_115 = arith.constant 0 : index
    %c0_116 = arith.constant 0 : index
    %c0_117 = arith.constant 0 : index
    %293 = vector.load %arg22[%c0_115, %c0_116, %c0_117] : memref<1x1x32xf32, #tpu.memory_space<vmem>>, vector<1x1x32xf32>
    %294 = vector.shape_cast %293 : vector<1x1x32xf32> to vector<1x32xf32>
    %295 = arith.truncf %286 : vector<8x32xf32> to vector<8x32xbf16>
    %cst_118 = arith.constant dense<0.000000e+00> : vector<8x64xf32>
    %296 = tpu.matmul %295, %288, %cst_118 {dimension_numbers = #tpu.dot_dimension_numbers<[1], [0], [0], [1], [0, 0, 1, 1], [], []>} : vector<8x32xbf16>, vector<32x64xbf16>, vector<8x64xf32> -> vector<8x64xf32>
    %297 = vector.broadcast %290 : vector<1x64xf32> to vector<8x64xf32>
    %298 = arith.addf %296, %297 : vector<8x64xf32>
    %cst_119 = arith.constant 0.000000e+00 : f32
    %299 = vector.broadcast %cst_119 : f32 to vector<8x64xf32>
    %300 = arith.maximumf %298, %299 : vector<8x64xf32>
    %301 = arith.truncf %300 : vector<8x64xf32> to vector<8x64xbf16>
    %cst_120 = arith.constant dense<0.000000e+00> : vector<8x32xf32>
    %302 = tpu.matmul %301, %292, %cst_120 {dimension_numbers = #tpu.dot_dimension_numbers<[1], [0], [0], [1], [0, 0, 1, 1], [], []>} : vector<8x64xbf16>, vector<64x32xbf16>, vector<8x32xf32> -> vector<8x32xf32>
    %303 = vector.broadcast %294 : vector<1x32xf32> to vector<8x32xf32>
    %304 = arith.addf %302, %303 : vector<8x32xf32>
    %305 = arith.addf %286, %304 : vector<8x32xf32>
    %c0_121 = arith.constant 0 : index
    %c0_122 = arith.constant 0 : index
    %c0_123 = arith.constant 0 : index
    %306 = vector.load %arg23[%c0_121, %c0_122, %c0_123] : memref<1x1x32xf32, #tpu.memory_space<vmem>>, vector<1x1x32xf32>
    %307 = vector.shape_cast %306 : vector<1x1x32xf32> to vector<1x32xf32>
    %c0_124 = arith.constant 0 : index
    %c0_125 = arith.constant 0 : index
    %c0_126 = arith.constant 0 : index
    %308 = vector.load %arg24[%c0_124, %c0_125, %c0_126] : memref<1x1x32xf32, #tpu.memory_space<vmem>>, vector<1x1x32xf32>
    %309 = vector.shape_cast %308 : vector<1x1x32xf32> to vector<1x32xf32>
    %cst_127 = arith.constant dense<0.000000e+00> : vector<8xf32>
    %310 = vector.multi_reduction <add>, %305, %cst_127 [1] : vector<8x32xf32> to vector<8xf32>
    %311 = vector.shape_cast %310 : vector<8xf32> to vector<8x1xf32>
    %cst_128 = arith.constant 3.200000e+01 : f32
    %312 = vector.broadcast %cst_128 : f32 to vector<8x1xf32>
    %313 = arith.divf %311, %312 : vector<8x1xf32>
    %314 = arith.mulf %305, %305 : vector<8x32xf32>
    %cst_129 = arith.constant dense<0.000000e+00> : vector<8xf32>
    %315 = vector.multi_reduction <add>, %314, %cst_129 [1] : vector<8x32xf32> to vector<8xf32>
    %316 = vector.shape_cast %315 : vector<8xf32> to vector<8x1xf32>
    %cst_130 = arith.constant 3.200000e+01 : f32
    %317 = vector.broadcast %cst_130 : f32 to vector<8x1xf32>
    %318 = arith.divf %316, %317 : vector<8x1xf32>
    %319 = arith.mulf %313, %313 : vector<8x1xf32>
    %320 = arith.subf %318, %319 : vector<8x1xf32>
    %321 = vector.broadcast %313 : vector<8x1xf32> to vector<8x32xf32>
    %322 = arith.subf %305, %321 : vector<8x32xf32>
    %cst_131 = arith.constant 9.99999974E-6 : f32
    %323 = vector.broadcast %cst_131 : f32 to vector<8x1xf32>
    %324 = arith.addf %320, %323 : vector<8x1xf32>
    %325 = math.rsqrt %324 : vector<8x1xf32>
    %326 = vector.broadcast %325 : vector<8x1xf32> to vector<8x32xf32>
    %327 = arith.mulf %322, %326 : vector<8x32xf32>
    %328 = vector.broadcast %307 : vector<1x32xf32> to vector<8x32xf32>
    %329 = arith.mulf %327, %328 : vector<8x32xf32>
    %330 = vector.broadcast %309 : vector<1x32xf32> to vector<8x32xf32>
    %331 = arith.addf %329, %330 : vector<8x32xf32>
    %332 = vector.shape_cast %331 : vector<8x32xf32> to vector<1x8x32xf32>
    %c0_132 = arith.constant 0 : index
    %c0_133 = arith.constant 0 : index
    %c0_134 = arith.constant 0 : index
    %333 = vector.load %arg26[%c0_132, %c0_133, %c0_134] : memref<1x8x32xf32, #tpu.memory_space<vmem>>, vector<1x8x32xf32>
    tpu.vector_store %arg26[%c0_132, %c0_133, %c0_134], %332 {strides = array<i32>} : memref<1x8x32xf32, #tpu.memory_space<vmem>>, vector<1x8x32xf32>,
    %c1_i32 = arith.constant 1 : i32
    %334 = arith.cmpi eq, %arg1, %c1_i32 : i32
    %335 = arith.extui %334 : i1 to i32
    %c0_i32_135 = arith.constant 0 : i32
    %336 = arith.cmpi ne, %335, %c0_i32_135 : i32
    scf.if %336 {
      %337 = vector.shape_cast %331 : vector<8x32xf32> to vector<1x8x32xf32>
      %c0_136 = arith.constant 0 : index
      %c0_137 = arith.constant 0 : index
      %c0_138 = arith.constant 0 : index
      %338 = vector.load %arg25[%c0_136, %c0_137, %c0_138] : memref<1x8x32xf32, #tpu.memory_space<vmem>>, vector<1x8x32xf32>
      tpu.vector_store %arg25[%c0_136, %c0_137, %c0_138], %337 {strides = array<i32>} : memref<1x8x32xf32, #tpu.memory_space<vmem>>, vector<1x8x32xf32>,
    } else {
    }
    return
  }
  func.func @transform_0(%arg0: i32, %arg1: i32) -> (i32, i32, i32) {
    %c0_i32 = arith.constant 0 : i32
    %c0_i32_0 = arith.constant 0 : i32
    %c0_i32_1 = arith.constant 0 : i32
    return %arg0, %c0_i32, %c0_i32_0 : i32, i32, i32
  }
  func.func @transform_1(%arg0: i32, %arg1: i32) -> (i32, i32, i32) {
    %c0_i32 = arith.constant 0 : i32
    %c0_i32_0 = arith.constant 0 : i32
    %c0_i32_1 = arith.constant 0 : i32
    return %arg0, %c0_i32, %c0_i32_0 : i32, i32, i32
  }
  func.func @transform_2(%arg0: i32, %arg1: i32) -> (i32, i32, i32) {
    %c0_i32 = arith.constant 0 : i32
    %c0_i32_0 = arith.constant 0 : i32
    %c0_i32_1 = arith.constant 0 : i32
    %c0_i32_2 = arith.constant 0 : i32
    return %c0_i32, %c0_i32_0, %c0_i32_1 : i32, i32, i32
  }
  func.func @transform_3(%arg0: i32, %arg1: i32) -> (i32, i32, i32) {
    %c0_i32 = arith.constant 0 : i32
    %c0_i32_0 = arith.constant 0 : i32
    %c0_i32_1 = arith.constant 0 : i32
    return %arg1, %c0_i32, %c0_i32_0 : i32, i32, i32
  }
  func.func @transform_4(%arg0: i32, %arg1: i32) -> (i32, i32, i32) {
    %c0_i32 = arith.constant 0 : i32
    %c0_i32_0 = arith.constant 0 : i32
    %c0_i32_1 = arith.constant 0 : i32
    return %arg1, %c0_i32, %c0_i32_0 : i32, i32, i32
  }
  func.func @transform_5(%arg0: i32, %arg1: i32) -> (i32, i32, i32) {
    %c0_i32 = arith.constant 0 : i32
    %c0_i32_0 = arith.constant 0 : i32
    %c0_i32_1 = arith.constant 0 : i32
    return %arg1, %c0_i32, %c0_i32_0 : i32, i32, i32
  }
  func.func @transform_6(%arg0: i32, %arg1: i32) -> (i32, i32, i32) {
    %c0_i32 = arith.constant 0 : i32
    %c0_i32_0 = arith.constant 0 : i32
    %c0_i32_1 = arith.constant 0 : i32
    return %arg1, %c0_i32, %c0_i32_0 : i32, i32, i32
  }
  func.func @transform_7(%arg0: i32, %arg1: i32) -> (i32, i32, i32) {
    %c0_i32 = arith.constant 0 : i32
    %c0_i32_0 = arith.constant 0 : i32
    %c0_i32_1 = arith.constant 0 : i32
    return %arg1, %c0_i32, %c0_i32_0 : i32, i32, i32
  }
  func.func @transform_8(%arg0: i32, %arg1: i32) -> (i32, i32, i32) {
    %c0_i32 = arith.constant 0 : i32
    %c0_i32_0 = arith.constant 0 : i32
    %c0_i32_1 = arith.constant 0 : i32
    return %arg1, %c0_i32, %c0_i32_0 : i32, i32, i32
  }
  func.func @transform_9(%arg0: i32, %arg1: i32) -> (i32, i32, i32) {
    %c0_i32 = arith.constant 0 : i32
    %c0_i32_0 = arith.constant 0 : i32
    %c0_i32_1 = arith.constant 0 : i32
    return %arg1, %c0_i32, %c0_i32_0 : i32, i32, i32
  }
  func.func @transform_10(%arg0: i32, %arg1: i32) -> (i32, i32, i32) {
    %c0_i32 = arith.constant 0 : i32
    %c0_i32_0 = arith.constant 0 : i32
    %c0_i32_1 = arith.constant 0 : i32
    return %arg1, %c0_i32, %c0_i32_0 : i32, i32, i32
  }
  func.func @transform_11(%arg0: i32, %arg1: i32) -> (i32, i32, i32) {
    %c0_i32 = arith.constant 0 : i32
    %c0_i32_0 = arith.constant 0 : i32
    %c0_i32_1 = arith.constant 0 : i32
    return %arg1, %c0_i32, %c0_i32_0 : i32, i32, i32
  }
  func.func @transform_12(%arg0: i32, %arg1: i32) -> (i32, i32, i32) {
    %c0_i32 = arith.constant 0 : i32
    %c0_i32_0 = arith.constant 0 : i32
    %c0_i32_1 = arith.constant 0 : i32
    return %arg1, %c0_i32, %c0_i32_0 : i32, i32, i32
  }
  func.func @transform_13(%arg0: i32, %arg1: i32) -> (i32, i32, i32) {
    %c0_i32 = arith.constant 0 : i32
    %c0_i32_0 = arith.constant 0 : i32
    %c0_i32_1 = arith.constant 0 : i32
    return %arg1, %c0_i32, %c0_i32_0 : i32, i32, i32
  }
  func.func @transform_14(%arg0: i32, %arg1: i32) -> (i32, i32, i32) {
    %c0_i32 = arith.constant 0 : i32
    %c0_i32_0 = arith.constant 0 : i32
    %c0_i32_1 = arith.constant 0 : i32
    return %arg1, %c0_i32, %c0_i32_0 : i32, i32, i32
  }
  func.func @transform_15(%arg0: i32, %arg1: i32) -> (i32, i32, i32) {
    %c0_i32 = arith.constant 0 : i32
    %c0_i32_0 = arith.constant 0 : i32
    %c0_i32_1 = arith.constant 0 : i32
    return %arg1, %c0_i32, %c0_i32_0 : i32, i32, i32
  }
  func.func @transform_16(%arg0: i32, %arg1: i32) -> (i32, i32, i32) {
    %c0_i32 = arith.constant 0 : i32
    %c0_i32_0 = arith.constant 0 : i32
    %c0_i32_1 = arith.constant 0 : i32
    return %arg1, %c0_i32, %c0_i32_0 : i32, i32, i32
  }
  func.func @transform_17(%arg0: i32, %arg1: i32) -> (i32, i32, i32) {
    %c0_i32 = arith.constant 0 : i32
    %c0_i32_0 = arith.constant 0 : i32
    %c0_i32_1 = arith.constant 0 : i32
    return %arg1, %c0_i32, %c0_i32_0 : i32, i32, i32
  }
  func.func @transform_18(%arg0: i32, %arg1: i32) -> (i32, i32, i32) {
    %c0_i32 = arith.constant 0 : i32
    %c0_i32_0 = arith.constant 0 : i32
    %c0_i32_1 = arith.constant 0 : i32
    return %arg1, %c0_i32, %c0_i32_0 : i32, i32, i32
  }
  func.func @transform_19(%arg0: i32, %arg1: i32) -> (i32, i32, i32) {
    %c0_i32 = arith.constant 0 : i32
    %c0_i32_0 = arith.constant 0 : i32
    %c0_i32_1 = arith.constant 0 : i32
    return %arg1, %c0_i32, %c0_i32_0 : i32, i32, i32
  }
  func.func @transform_20(%arg0: i32, %arg1: i32) -> (i32, i32, i32) {
    %c0_i32 = arith.constant 0 : i32
    %c0_i32_0 = arith.constant 0 : i32
    %c0_i32_1 = arith.constant 0 : i32
    return %arg1, %c0_i32, %c0_i32_0 : i32, i32, i32
  }
  func.func @transform_21(%arg0: i32, %arg1: i32) -> (i32, i32, i32) {
    %c0_i32 = arith.constant 0 : i32
    %c0_i32_0 = arith.constant 0 : i32
    %c0_i32_1 = arith.constant 0 : i32
    return %arg1, %c0_i32, %c0_i32_0 : i32, i32, i32
  }
  func.func @transform_22(%arg0: i32, %arg1: i32) -> (i32, i32, i32) {
    %c0_i32 = arith.constant 0 : i32
    %c0_i32_0 = arith.constant 0 : i32
    %c0_i32_1 = arith.constant 0 : i32
    return %arg1, %c0_i32, %c0_i32_0 : i32, i32, i32
  }
  func.func @transform_23(%arg0: i32, %arg1: i32) -> (i32, i32, i32) {
    %c0_i32 = arith.constant 0 : i32
    %c0_i32_0 = arith.constant 0 : i32
    %c0_i32_1 = arith.constant 0 : i32
    return %arg0, %c0_i32, %c0_i32_0 : i32, i32, i32
  }
}

module attributes {stable_mosaic.version = 11 : i64} {
  func.func @_head_kernel(%arg0: memref<2x32xf32, #tpu.memory_space<vmem>>, %arg1: memref<1x32xf32, #tpu.memory_space<vmem>>, %arg2: memref<1x32xf32, #tpu.memory_space<vmem>>, %arg3: memref<32x512xbf16, #tpu.memory_space<vmem>>, %arg4: memref<1x512xf32, #tpu.memory_space<vmem>>, %arg5: memref<1x512xf32, #tpu.memory_space<vmem>>, %arg6: memref<1x512xf32, #tpu.memory_space<vmem>>, %arg7: memref<512x128xbf16, #tpu.memory_space<vmem>>, %arg8: memref<1x128xf32, #tpu.memory_space<vmem>>, %arg9: memref<2x128xf32, #tpu.memory_space<vmem>>) attributes {dimension_semantics = [], scalar_prefetch = 0 : i64, scratch_operands = 0 : i64, tpu.core_type = #tpu.core_type<tc>} {
    %c0 = arith.constant 0 : index
    %c0_0 = arith.constant 0 : index
    %0 = vector.load %arg0[%c0, %c0_0] : memref<2x32xf32, #tpu.memory_space<vmem>>, vector<2x32xf32>
    %c0_1 = arith.constant 0 : index
    %c0_2 = arith.constant 0 : index
    %1 = vector.load %arg1[%c0_1, %c0_2] : memref<1x32xf32, #tpu.memory_space<vmem>>, vector<1x32xf32>
    %c0_3 = arith.constant 0 : index
    %c0_4 = arith.constant 0 : index
    %2 = vector.load %arg2[%c0_3, %c0_4] : memref<1x32xf32, #tpu.memory_space<vmem>>, vector<1x32xf32>
    %cst = arith.constant dense<0.000000e+00> : vector<2xf32>
    %3 = vector.multi_reduction <add>, %0, %cst [1] : vector<2x32xf32> to vector<2xf32>
    %4 = vector.shape_cast %3 : vector<2xf32> to vector<2x1xf32>
    %cst_5 = arith.constant 3.200000e+01 : f32
    %5 = vector.broadcast %cst_5 : f32 to vector<2x1xf32>
    %6 = arith.divf %4, %5 : vector<2x1xf32>
    %7 = arith.mulf %0, %0 : vector<2x32xf32>
    %cst_6 = arith.constant dense<0.000000e+00> : vector<2xf32>
    %8 = vector.multi_reduction <add>, %7, %cst_6 [1] : vector<2x32xf32> to vector<2xf32>
    %9 = vector.shape_cast %8 : vector<2xf32> to vector<2x1xf32>
    %cst_7 = arith.constant 3.200000e+01 : f32
    %10 = vector.broadcast %cst_7 : f32 to vector<2x1xf32>
    %11 = arith.divf %9, %10 : vector<2x1xf32>
    %12 = arith.mulf %6, %6 : vector<2x1xf32>
    %13 = arith.subf %11, %12 : vector<2x1xf32>
    %14 = vector.broadcast %6 : vector<2x1xf32> to vector<2x32xf32>
    %15 = arith.subf %0, %14 : vector<2x32xf32>
    %cst_8 = arith.constant 9.99999974E-6 : f32
    %16 = vector.broadcast %cst_8 : f32 to vector<2x1xf32>
    %17 = arith.addf %13, %16 : vector<2x1xf32>
    %18 = math.rsqrt %17 : vector<2x1xf32>
    %19 = vector.broadcast %18 : vector<2x1xf32> to vector<2x32xf32>
    %20 = arith.mulf %15, %19 : vector<2x32xf32>
    %21 = vector.broadcast %1 : vector<1x32xf32> to vector<2x32xf32>
    %22 = arith.mulf %20, %21 : vector<2x32xf32>
    %23 = vector.broadcast %2 : vector<1x32xf32> to vector<2x32xf32>
    %24 = arith.addf %22, %23 : vector<2x32xf32>
    %25 = arith.truncf %24 : vector<2x32xf32> to vector<2x32xbf16>
    %c0_9 = arith.constant 0 : index
    %c0_10 = arith.constant 0 : index
    %26 = vector.load %arg3[%c0_9, %c0_10] : memref<32x512xbf16, #tpu.memory_space<vmem>>, vector<32x512xbf16>
    %cst_11 = arith.constant dense<0.000000e+00> : vector<2x512xf32>
    %27 = tpu.matmul %25, %26, %cst_11 {dimension_numbers = #tpu.dot_dimension_numbers<[1], [0], [0], [1], [0, 0, 1, 1], [], []>} : vector<2x32xbf16>, vector<32x512xbf16>, vector<2x512xf32> -> vector<2x512xf32>
    %c0_12 = arith.constant 0 : index
    %c0_13 = arith.constant 0 : index
    %28 = vector.load %arg4[%c0_12, %c0_13] : memref<1x512xf32, #tpu.memory_space<vmem>>, vector<1x512xf32>
    %29 = vector.broadcast %28 : vector<1x512xf32> to vector<2x512xf32>
    %30 = arith.addf %27, %29 : vector<2x512xf32>
    %c0_14 = arith.constant 0 : index
    %c0_15 = arith.constant 0 : index
    %31 = vector.load %arg5[%c0_14, %c0_15] : memref<1x512xf32, #tpu.memory_space<vmem>>, vector<1x512xf32>
    %c0_16 = arith.constant 0 : index
    %c0_17 = arith.constant 0 : index
    %32 = vector.load %arg6[%c0_16, %c0_17] : memref<1x512xf32, #tpu.memory_space<vmem>>, vector<1x512xf32>
    %cst_18 = arith.constant dense<0.000000e+00> : vector<2xf32>
    %33 = vector.multi_reduction <add>, %30, %cst_18 [1] : vector<2x512xf32> to vector<2xf32>
    %34 = vector.shape_cast %33 : vector<2xf32> to vector<2x1xf32>
    %cst_19 = arith.constant 5.120000e+02 : f32
    %35 = vector.broadcast %cst_19 : f32 to vector<2x1xf32>
    %36 = arith.divf %34, %35 : vector<2x1xf32>
    %37 = arith.mulf %30, %30 : vector<2x512xf32>
    %cst_20 = arith.constant dense<0.000000e+00> : vector<2xf32>
    %38 = vector.multi_reduction <add>, %37, %cst_20 [1] : vector<2x512xf32> to vector<2xf32>
    %39 = vector.shape_cast %38 : vector<2xf32> to vector<2x1xf32>
    %cst_21 = arith.constant 5.120000e+02 : f32
    %40 = vector.broadcast %cst_21 : f32 to vector<2x1xf32>
    %41 = arith.divf %39, %40 : vector<2x1xf32>
    %42 = arith.mulf %36, %36 : vector<2x1xf32>
    %43 = arith.subf %41, %42 : vector<2x1xf32>
    %44 = vector.broadcast %36 : vector<2x1xf32> to vector<2x512xf32>
    %45 = arith.subf %30, %44 : vector<2x512xf32>
    %cst_22 = arith.constant 9.99999974E-6 : f32
    %46 = vector.broadcast %cst_22 : f32 to vector<2x1xf32>
    %47 = arith.addf %43, %46 : vector<2x1xf32>
    %48 = math.rsqrt %47 : vector<2x1xf32>
    %49 = vector.broadcast %48 : vector<2x1xf32> to vector<2x512xf32>
    %50 = arith.mulf %45, %49 : vector<2x512xf32>
    %51 = vector.broadcast %31 : vector<1x512xf32> to vector<2x512xf32>
    %52 = arith.mulf %50, %51 : vector<2x512xf32>
    %53 = vector.broadcast %32 : vector<1x512xf32> to vector<2x512xf32>
    %54 = arith.addf %52, %53 : vector<2x512xf32>
    %cst_23 = arith.constant 0.000000e+00 : f32
    %55 = vector.broadcast %cst_23 : f32 to vector<2x512xf32>
    %56 = arith.maximumf %54, %55 : vector<2x512xf32>
    %57 = arith.truncf %56 : vector<2x512xf32> to vector<2x512xbf16>
    %c0_24 = arith.constant 0 : index
    %c0_25 = arith.constant 0 : index
    %58 = vector.load %arg7[%c0_24, %c0_25] : memref<512x128xbf16, #tpu.memory_space<vmem>>, vector<512x128xbf16>
    %cst_26 = arith.constant dense<0.000000e+00> : vector<2x128xf32>
    %59 = tpu.matmul %57, %58, %cst_26 {dimension_numbers = #tpu.dot_dimension_numbers<[1], [0], [0], [1], [0, 0, 1, 1], [], []>} : vector<2x512xbf16>, vector<512x128xbf16>, vector<2x128xf32> -> vector<2x128xf32>
    %c0_27 = arith.constant 0 : index
    %c0_28 = arith.constant 0 : index
    %60 = vector.load %arg8[%c0_27, %c0_28] : memref<1x128xf32, #tpu.memory_space<vmem>>, vector<1x128xf32>
    %61 = vector.broadcast %60 : vector<1x128xf32> to vector<2x128xf32>
    %62 = arith.addf %59, %61 : vector<2x128xf32>
    %c0_29 = arith.constant 0 : index
    %c0_30 = arith.constant 0 : index
    %63 = vector.load %arg9[%c0_29, %c0_30] : memref<2x128xf32, #tpu.memory_space<vmem>>, vector<2x128xf32>
    tpu.vector_store %arg9[%c0_29, %c0_30], %62 {strides = array<i32>} : memref<2x128xf32, #tpu.memory_space<vmem>>, vector<2x128xf32>,
    return
  }
}

</mosaic_0001>

<bundles_post_ra>
// kernel: transformer_cp_forward.5
= control target key start
LH: loop header
LB: loop body
LE: loop exit
PB: predicated region body
PF: predicated region fallthrough
CT: control target
= control target key end

     0   :  { %vm36_vm0 = vcmask 254976   ;;  %v808_v5 = vmov 0   ;;  %vm138_vm1 = vcmask 261120   ;;  %v78_v28 = vlaneseq  ;;  %s1055_s0 = inlined_call_operand.vmem [shape: f32[2,32], index: 0, kind: input, shape index: {}]   ;;  %s1056_s3 = inlined_call_operand.vmem [shape: bf16[32,512], index: 3, kind: input, shape index: {}]   ;;  %s1057_s1 = inlined_call_operand.vmem [shape: f32[1,32], index: 1, kind: input, shape index: {}]   ;;  %s1058_s2 = inlined_call_operand.vmem [shape: f32[1,32], index: 2, kind: input, shape index: {}]   ;;  %s1059_s4 = inlined_call_operand.vmem [shape: f32[1,512], index: 4, kind: input, shape index: {}]   ;;  %s1060_s7 = inlined_call_operand.vmem [shape: bf16[512,128], index: 7, kind: input, shape index: {}]   ;;  %s1061_s5 = inlined_call_operand.vmem [shape: f32[1,512], index: 5, kind: input, shape index: {}]   ;;  %s1062_s6 = inlined_call_operand.vmem [shape: f32[1,512], index: 6, kind: input, shape index: {}]   ;;  %s1063_s8 = inlined_call_operand.vmem [shape: f32[1,128], index: 8, kind: input, shape index: {}]   ;;  %s1064_s9 = inlined_call_operand.vmem [shape: f32[2,128], index: 9, kind: output, shape index: {}]  }
   0x1   :  { %v33_v0 = vld [vmem:[%s1055_s0] sm:$0x3]  ;;  %v760_v4 = vld [vmem:[%s1056_s3 + $0x4] ss:$16 sps:$4 sm:$0xff]   ;;  %174 = vmatprep.mubr.bf16.mxu0 %v808_v5  ;;  %215 = vmatprep.mubr.bf16.mxu1 %v808_v5  ;;  %v762_v6 = vld [vmem:[%s1056_s3 + $0xc] ss:$16 sps:$4 sm:$0xff]  }
   0x2   :  { %v37_v1 = vsel %vm36_vm0, %v33_v0, 0.0  ;;  %v42_v2 = vmul.f32 %v33_v0, %v33_v0  ;;  %142 = vmatprep.subr.bf16.mxu0 %v760_v4  ;;  %v764_v7 = vld [vmem:[%s1056_s3] ss:$16 sps:$4 sm:$0xff]   ;;  %v765_v8 = vld [vmem:[%s1056_s3 + $0x8] ss:$16 sps:$4 sm:$0xff]   ;;  %183 = vmatprep.subr.bf16.mxu1 %v762_v6  ;;  %v79_v29 = vshrl.u32 %v78_v28, 7 }
   0x3   :  { %38 = vadd.xlane.f32.xlu0 %v37_v1  ;;  %v766_v9 = vld [vmem:[%s1056_s3 + $0x24] ss:$16 sps:$4 sm:$0xff]   ;;  %143 = vmatpush1.bf16.msra.mxu0 %v764_v7  ;;  %v768_v10 = vld [vmem:[%s1056_s3 + $0x2c] ss:$16 sps:$4 sm:$0xff]   ;;  %v770_v11 = vld [vmem:[%s1056_s3 + $0x20] ss:$16 sps:$4 sm:$0xff]  }
   0x4   :  { %v43_v3 = vsel %vm36_vm0, %v42_v2, 0.0  ;;  %184 = vmatpush1.bf16.msra.mxu1 %v765_v8  ;;  %144 = vmatprep.subr.bf16.mxu0 %v766_v9  ;;  %v771_v12 = vld [vmem:[%s1056_s3 + $0x28] ss:$16 sps:$4 sm:$0xff]   ;;  %v670_v22 = vld [vmem:[%s1057_s1] ss:$0 sm:$0xff]  ;;  %v892_v30 = vsub.s32 0, %v79_v29 }
   0x5   :  { %185 = vmatprep.subr.bf16.mxu1 %v768_v10  ;;  %v671_v24 = vld [vmem:[%s1058_s2] ss:$0 sm:$0xff]  ;;  %v894_v31 = vsub.s32 2, %v79_v29  ;;  %v899_v33 = vsub.s32 1, %v79_v29  ;;  %v901_v34 = vsub.s32 3, %v79_v29  ;;  %vm226_vm2 = vcmask 1041408  }
   0x6   :  { %v76_v32 = vld [vmem:[%s1059_s4] sm:$0xf]  ;;  %v776_v9 = vld [vmem:[%s1060_s7 + $0x48] sm:$0xff]   ;;  %v796_v29 = vld [vmem:[%s1060_s7 + $0x70] sm:$0xff]  }
   0x7   :  { %44 = vadd.xlane.f32.xlu0 %v43_v3  ;;  %145 = vmatpush1.bf16.msra.mxu0 %v770_v11  ;;  %v81_v35 = vrot.slane %v76_v32, %v892_v30  ;;  %v89_v36 = vrot.slane %v76_v32, %v894_v31  ;;  %v85_v37 = vrot.slane %v76_v32, %v899_v33  ;;  %v772_v5 = vld [vmem:[%s1060_s7 + $0x40] sm:$0xff]   ;;  %v777_v10 = vld [vmem:[%s1060_s7 + $0xc8] sm:$0xff]  }
   0x8   :  { %186 = vmatpush1.bf16.msra.mxu1 %v771_v12  ;;  %v93_v40 = vrot.slane %v76_v32, %v901_v34  ;;  %v773_v6 = vld [vmem:[%s1060_s7 + $0xc0] sm:$0xff]   ;;  %715 = vmatprep.subr.bf16.mxu0 %v772_v5  ;;  %v778_v11 = vld [vmem:[%s1060_s7 + $0x8] sm:$0xff]   ;;  %v797_v32 = vld [vmem:[%s1060_s7 + $0xf0] sm:$0xff]  }
   0x9   :  { %v774_v7 = vld [vmem:[%s1060_s7] sm:$0xff]   ;;  %737 = vmatprep.subr.bf16.mxu1 %v773_v6  ;;  %v779_v12 = vld [vmem:[%s1060_s7 + $0x88] sm:$0xff]  }
   0xa   :  { %v775_v8 = vld [vmem:[%s1060_s7 + $0x80] sm:$0xff]   ;;  %v795_v28 = vld [vmem:[%s1060_s7 + $0xa8] sm:$0xff]  }
  0x90   :  { %v39_v13 = vpop.xlane.xlu0 %38 }
  0x91   :  { %v41_v14 = vmul.f32 0.03125, %v39_v13  ;;  %v780_v13 = vld [vmem:[%s1060_s7 + $0x50] sm:$0xff]  }
  0x93   :  { %v47_v16 = vmul.f32 %v41_v14, %v41_v14  ;;  %v49_v20 = vsub.f32 %v33_v0, %v41_v14  ;;  %v781_v14 = vld [vmem:[%s1060_s7 + $0xd0] sm:$0xff]  }
  0x94   :  { %v45_v15 = vpop.xlane.xlu0 %44 }
  0x95   :  { %v46_v17 = vmul.f32 0.03125, %v45_v15  ;;  %v782_v15 = vld [vmem:[%s1060_s7 + $0x10] sm:$0xff]  }
  0x97   :  { %v48_v18 = vsub.f32 %v46_v17, %v47_v16  ;;  %v783_v16 = vld [vmem:[%s1060_s7 + $0x90] sm:$0xff]   ;;  %v784_v17 = vld [vmem:[%s1060_s7 + $0x58] sm:$0xff]  }
  0x99   :  { %v50_v19 = vadd.f32 1e-05, %v48_v18  ;;  %v785_v18 = vld [vmem:[%s1060_s7 + $0xd8] sm:$0xff]  }
  0x9b   :  { %804 = vrsqrt.f32 %v50_v19  ;;  %v786_v19 = vld [vmem:[%s1060_s7 + $0x18] sm:$0xff]  }
  0xa5   :  { %v805_v21 = vpop.eup %804 }
  0xa6   :  { %v52_v23 = vmul.f32 %v805_v21, %v49_v20  ;;  %v787_v20 = vld [vmem:[%s1060_s7 + $0x98] sm:$0xff]   ;;  %v788_v21 = vld [vmem:[%s1060_s7 + $0x60] sm:$0xff]  }
  0xa8   :  { %v59_v25 = vmul.f32 %v670_v22, %v52_v23  ;;  %v789_v22 = vld [vmem:[%s1060_s7 + $0xe0] sm:$0xff]  }
  0xa9   :  { %v790_v23 = vld [vmem:[%s1060_s7 + $0x20] sm:$0xff]  }
  0xaa   :  { %v66_v26 = vadd.f32 %v671_v24, %v59_v25  ;;  %v791_v24 = vld [vmem:[%s1060_s7 + $0xa0] sm:$0xff]   ;;  %v792_v25 = vld [vmem:[%s1060_s7 + $0x68] sm:$0xff]  }
  0xac   :  { %v67_v27 = vpack.c.bf16 %v66_v26, %v66_v26  ;;  %v793_v26 = vld [vmem:[%s1060_s7 + $0xe8] sm:$0xff]  }
  0xae   :  { %680 = vmatmul.mubr.msk.bf16.vlgmr.msra.gmra.mrb[0].mxu0 %vm138_vm1, %v67_v27  ;;  %681 = vmatmul.mubr.msk.bf16.vlgmr.msra.gmra.mrb[0].mxu1 %vm138_vm1, %v67_v27  ;;  %v794_v27 = vld [vmem:[%s1060_s7 + $0x28] sm:$0xff]  }
  0xaf   :  { %716 = vmatpush3.bf16.msra.mxu0 %v774_v7  ;;  %738 = vmatpush3.bf16.msra.mxu1 %v775_v8 }
  0xb0   :  { %717 = vmatprep.subr.bf16.mxu0 %v776_v9  ;;  %739 = vmatprep.subr.bf16.mxu1 %v777_v10 }
  0xb3   :  { %718 = vmatpush3.bf16.msra.mxu0 %v778_v11  ;;  %740 = vmatpush3.bf16.msra.mxu1 %v779_v12 }
  0xb4   :  { %719 = vmatprep.subr.bf16.mxu0 %v780_v13  ;;  %741 = vmatprep.subr.bf16.mxu1 %v781_v14 }
  0xb7   :  { %720 = vmatpush3.bf16.msra.mxu0 %v782_v15  ;;  %742 = vmatpush3.bf16.msra.mxu1 %v783_v16 }
  0xb8   :  { %721 = vmatprep.subr.bf16.mxu0 %v784_v17  ;;  %743 = vmatprep.subr.bf16.mxu1 %v785_v18  ;;  %v682_v17 = vld [vmem:[%s1063_s8] ss:$0 sm:$0xff] }
  0xbb   :  { %722 = vmatpush3.bf16.msra.mxu0 %v786_v19  ;;  %744 = vmatpush3.bf16.msra.mxu1 %v787_v20 }
  0xbc   :  { %723 = vmatprep.subr.bf16.mxu0 %v788_v21  ;;  %745 = vmatprep.subr.bf16.mxu1 %v789_v22 }
  0xbf   :  { %724 = vmatpush3.bf16.msra.mxu0 %v790_v23  ;;  %746 = vmatpush3.bf16.msra.mxu1 %v791_v24 }
  0xc0   :  { %725 = vmatprep.subr.bf16.mxu0 %v792_v25  ;;  %747 = vmatprep.subr.bf16.mxu1 %v793_v26 }
  0xc3   :  { %726 = vmatpush3.bf16.msra.mxu0 %v794_v27  ;;  %748 = vmatpush3.bf16.msra.mxu1 %v795_v28 }
  0xc4   :  { %727 = vmatprep.subr.bf16.mxu0 %v796_v29  ;;  %749 = vmatprep.subr.bf16.mxu1 %v797_v32 }
 0x181   :  { %v176_v38 = vpop.f32.mrb[0].mxu0  ;;  %v217_v39 = vpop.f32.mrb[0].mxu1 }
 0x182   :  { %v907_v41 = vadd.f32 %v176_v38, %v81_v35  ;;  %v909_v42 = vadd.f32 %v217_v39, %v89_v36  ;;  %v178_v43 = vpop.f32.mrb[1].mxu0  ;;  %v219_v44 = vpop.f32.mrb[1].mxu1  ;;  %v798_v35 = vld [vmem:[%s1060_s7 + $0x30] sm:$0xff]   ;;  %v801_v38 = vld [vmem:[%s1060_s7 + $0xf8] sm:$0xff]  }
 0x183   :  { %v911_v45 = vadd.f32 %v178_v43, %v85_v37  ;;  %v180_v46 = vpop.f32.mrb[2].mxu0  ;;  %v221_v47 = vpop.f32.mrb[2].mxu1  ;;  %v921_v54 = vadd.f32 %v219_v44, %v93_v40  ;;  %v799_v36 = vld [vmem:[%s1060_s7 + $0xb0] sm:$0xff]   ;;  %728 = vmatpush3.bf16.msra.mxu0 %v798_v35  ;;  %v800_v37 = vld [vmem:[%s1060_s7 + $0x78] sm:$0xff]  }
 0x184   :  { %v238_v48 = vmul.f32 %v907_v41, %v907_v41  ;;  %v181_v49 = vpop.f32.mrb[3].mxu0  ;;  %v222_v50 = vpop.f32.mrb[3].mxu1  ;;  %v227_v51 = vsel %vm226_vm2, %v907_v41, 0.0  ;;  %v240_v52 = vmul.f32 %v909_v42, %v909_v42  ;;  %v230_v58 = vsel %vm226_vm2, %v909_v42, 0.0  ;;  %750 = vmatpush3.bf16.msra.mxu1 %v799_v36  ;;  %729 = vmatprep.subr.bf16.mxu0 %v800_v37  ;;  %v802_v39 = vld [vmem:[%s1060_s7 + $0x38] sm:$0xff]  }
 0x185   :  { %v239_v53 = vmul.f32 %v911_v45, %v911_v45  ;;  %v228_v55 = vsel %vm226_vm2, %v911_v45, 0.0  ;;  %v232_v62 = vsel %vm226_vm2, %v921_v54, 0.0  ;;  %v241_v63 = vmul.f32 %v921_v54, %v921_v54  ;;  %751 = vmatprep.subr.bf16.mxu1 %v801_v38  ;;  %v803_v40 = vld [vmem:[%s1060_s7 + $0xb8] sm:$0xff]  }
 0x186   :  { %v229_v56 = vadd.f32 %v228_v55, %v227_v51  ;;  %v242_v57 = vsel %vm226_vm2, %v238_v48, 0.0  ;;  %v245_v0 = vsel %vm226_vm2, %v240_v52, 0.0  ;;  %v224_v51 = vld [vmem:[%s1061_s5] sm:$0xf] }
 0x187   :  { %v243_v59 = vsel %vm226_vm2, %v239_v53, 0.0  ;;  %v247_v3 = vsel %vm226_vm2, %v241_v63, 0.0  ;;  %730 = vmatpush3.bf16.msra.mxu0 %v802_v39  ;;  %v225_v52 = vld [vmem:[%s1062_s6] sm:$0xf]  ;;  %v268_v53 = vrot.slane %v224_v51, %v892_v30  ;;  %v276_v55 = vrot.slane %v224_v51, %v894_v31 }
 0x188   :  { %v231_v60 = vadd.f32 %v230_v58, %v229_v56  ;;  %v244_v61 = vadd.f32 %v243_v59, %v242_v57  ;;  %752 = vmatpush3.bf16.msra.mxu1 %v803_v40  ;;  %v272_v56 = vrot.slane %v224_v51, %v899_v33  ;;  %v280_v57 = vrot.slane %v224_v51, %v901_v34 }
 0x189   :  { %v297_v63 = vrot.slane %v225_v52, %v899_v33 }
 0x18a   :  { %v233_v1 = vadd.f32 %v232_v62, %v231_v60  ;;  %v246_v2 = vadd.f32 %v245_v0, %v244_v61  ;;  %v305_v0 = vrot.slane %v225_v52, %v901_v34 }
 0x18c   :  { %234 = vadd.xlane.f32.xlu1 %v233_v1  ;;  %v248_v4 = vadd.f32 %v247_v3, %v246_v2  ;;  %v293_v1 = vrot.slane %v225_v52, %v892_v30  ;;  %v301_v2 = vrot.slane %v225_v52, %v894_v31 }
 0x190   :  { %249 = vadd.xlane.f32.xlu1 %v248_v4 }
 0x219   :  { %v235_v43 = vpop.xlane.xlu1 %234 }
 0x21a   :  { %v237_v44 = vmul.f32 0.001953125, %v235_v43 }
 0x21c   :  { %v252_v47 = vmul.f32 %v237_v44, %v237_v44  ;;  %v254_v58 = vsub.f32 %v907_v41, %v237_v44  ;;  %v256_v59 = vsub.f32 %v909_v42, %v237_v44  ;;  %v255_v60 = vsub.f32 %v911_v45, %v237_v44 }
 0x21d   :  { %v250_v46 = vpop.xlane.xlu1 %249  ;;  %v257_v61 = vsub.f32 %v921_v54, %v237_v44 }
 0x21e   :  { %v251_v48 = vmul.f32 0.001953125, %v250_v46 }
 0x220   :  { %v253_v49 = vsub.f32 %v251_v48, %v252_v47 }
 0x222   :  { %v258_v50 = vadd.f32 1e-05, %v253_v49 }
 0x224   :  { %806 = vrsqrt.f32 %v258_v50 }
 0x22e   :  { %v807_v62 = vpop.eup %806 }
 0x22f   :  { %v261_v3 = vmul.f32 %v807_v62, %v255_v60  ;;  %v263_v4 = vmul.f32 %v807_v62, %v257_v61  ;;  %v260_v5 = vmul.f32 %v807_v62, %v254_v58  ;;  %v262_v6 = vmul.f32 %v807_v62, %v256_v59 }
 0x231   :  { %v286_v41 = vmul.f32 %v272_v56, %v261_v3  ;;  %v288_v7 = vmul.f32 %v280_v57, %v263_v4  ;;  %v285_v42 = vmul.f32 %v268_v53, %v260_v5  ;;  %v287_v8 = vmul.f32 %v276_v55, %v262_v6 }
 0x233   :  { %v311_v45 = vadd.f32 %v297_v63, %v286_v41  ;;  %v313_v9 = vadd.f32 %v305_v0, %v288_v7  ;;  %v310_v54 = vadd.f32 %v293_v1, %v285_v42  ;;  %v312_v10 = vadd.f32 %v301_v2, %v287_v8 }
 0x235   :  { %v315_v11 = vmax.f32 %v311_v45, 0.0  ;;  %v317_v33 = vmax.f32 %v313_v9, 0.0  ;;  %v314_v12 = vmax.f32 %v310_v54, 0.0  ;;  %v316_v34 = vmax.f32 %v312_v10, 0.0 }
 0x237   :  { %v319_v13 = vpack.c.bf16 %v315_v11, %v315_v11  ;;  %v321_v30 = vpack.c.bf16 %v317_v33, %v317_v33  ;;  %v318_v14 = vpack.c.bf16 %v314_v12, %v314_v12  ;;  %v320_v31 = vpack.c.bf16 %v316_v34, %v316_v34 }
 0x239   :  { %617 = vmatprep.mubr.bf16.mxu0 %v319_v13  ;;  %657 = vmatprep.mubr.bf16.mxu1 %v321_v30 }
 0x23a   :  { %618 = vmatmul.mubr.bf16.vlgmr.msra.gmra.mrb[4].mxu0 %v318_v14  ;;  %658 = vmatmul.mubr.bf16.vlgmr.msra.gmra.mrb[4].mxu1 %v320_v31 }
 0x30d   :  { %v731_v15 = vpop.f32.mrb[4].mxu0  ;;  %v753_v16 = vpop.f32.mrb[4].mxu1 }
 0x30e   :  { %v732_v18 = vpop.f32.mrb[5].mxu0  ;;  %v754_v19 = vpop.f32.mrb[5].mxu1 }
 0x30f   :  { %v733_v20 = vadd.f32 %v732_v18, %v731_v15  ;;  %v755_v21 = vadd.f32 %v754_v19, %v753_v16  ;;  %v734_v22 = vpop.f32.mrb[6].mxu0  ;;  %v756_v23 = vpop.f32.mrb[6].mxu1 }
 0x310   :  { %v735_v24 = vpop.f32.mrb[7].mxu0  ;;  %v757_v25 = vpop.f32.mrb[7].mxu1 }
 0x311   :  { %v620_v26 = vadd.f32 %v733_v20, %v682_v17 }
 0x313   :  { %v660_v27 = vadd.f32 %v755_v21, %v620_v26 }
 0x315   :  { %665 = vst [vmem:[%s1064_s9] sm:$0x3] %v660_v27 }

// kernel: transformer_cp_forward.3
= control target key start
LH: loop header
LB: loop body
LE: loop exit
PB: predicated region body
PF: predicated region fallthrough
CT: control target
= control target key end

     0   :  { %s2296_s21 = smov 0   ;;  %s2298_s22 = smov 0   ;;  %s2582_s0 = inlined_call_operand.vmem [shape: f32[2,8,32], index: 0, kind: input, shape index: {}]   ;;  %s2583_s1 = inlined_call_operand.vmem [shape: f32[1,8,32], index: 1, kind: input, shape index: {}]   ;;  %s2584_s2 = inlined_call_operand.vmem [shape: bf16[2,32,96], index: 2, kind: input, shape index: {}]   ;;  %s2585_s3 = inlined_call_operand.vmem [shape: f32[2,1,96], index: 3, kind: input, shape index: {}]   ;;  %s2586_s4 = inlined_call_operand.vmem [shape: bf16[2,32,32], index: 4, kind: input, shape index: {}]   ;;  %s2587_s5 = inlined_call_operand.vmem [shape: f32[2,1,32], index: 5, kind: input, shape index: {}]   ;;  %s2588_s6 = inlined_call_operand.vmem [shape: f32[2,1,32], index: 6, kind: input, shape index: {}]   ;;  %s2589_s7 = inlined_call_operand.vmem [shape: f32[2,1,32], index: 7, kind: input, shape index: {}]   ;;  %s2590_s8 = inlined_call_operand.vmem [shape: bf16[2,32,64], index: 8, kind: input, shape index: {}]   ;;  %s2591_s9 = inlined_call_operand.vmem [shape: f32[2,1,64], index: 9, kind: input, shape index: {}]   ;;  %s2592_s10 = inlined_call_operand.vmem [shape: bf16[2,64,32], index: 10, kind: input, shape index: {}]   ;;  %s2593_s11 = inlined_call_operand.vmem [shape: f32[2,1,32], index: 11, kind: input, shape index: {}]   ;;  %s2594_s12 = inlined_call_operand.vmem [shape: f32[2,1,32], index: 12, kind: input, shape index: {}]   ;;  %s2595_s13 = inlined_call_operand.vmem [shape: f32[2,1,32], index: 13, kind: input, shape index: {}]   ;;  %s2596_s14 = inlined_call_operand.vmem [shape: f32[1,32], index: 14, kind: input, shape index: {}]   ;;  %s2597_s15 = inlined_call_operand.vmem [shape: f32[1,32], index: 15, kind: input, shape index: {}]   ;;  %s2598_s16 = inlined_call_operand.vmem [shape: bf16[2,8,32], index: 16, kind: output, shape index: {}]  }
   0x1   :  { %2603 = sst [smem:[#allocation9_spill]] %s2582_s0  ;;  %s2300_s23 = smov 0  }
   0x2   :  { %2604 = sst [smem:[#allocation10_spill]] %s2583_s1  ;;  %s2302_s24 = smov 0  }
   0x3   :  { %2605 = sst [smem:[#allocation11_spill]] %s2584_s2  ;;  %s2304_s25 = smov 0  }
   0x4   :  { %2606 = sst [smem:[#allocation12_spill]] %s2586_s4 }
   0x5   :  { %2607 = sst [smem:[#allocation13_spill]] %s2590_s8 }
   0x6   :  { %2608 = sst [smem:[#allocation14_spill]] %s2591_s9 }
   0x7   :  { %2609 = sst [smem:[#allocation15_spill]] %s2595_s13 }
   0x8   :  { %2610 = sst [smem:[#allocation16_spill]] %s2596_s14 }
   0x9   :  { %2611 = sst [smem:[#allocation17_spill]] %s2597_s15 }
   0xa   :  { %2612 = sst [smem:[#allocation18_spill]] %s2598_s16 }
   0xb LB: > { %2613 = sst [smem:[#allocation3_spill]] %s2180_s21  ;;  %s35_s26 = sadd.s32 1, %s2188_s23  ;;  %s2196_s25 = sphi %s2304_s25, %s26_s25   ;;  %s2192_s24 = sphi %s2302_s24, %s2642_s24   ;;  %s2188_s23 = sphi %s2300_s23, %s2641_s23   ;;  %s2184_s22 = sphi %s2298_s22, %s2640_s22   ;;  %s2180_s21 = sphi %s2296_s21, %s2639_s21  }
   0xc   : > { %2614 = sst [smem:[#allocation4_spill]] %s2188_s23  ;;  %s38_s27 = sadd.s32 1, %s2192_s24 }
   0xd   : > { %2615 = sst [smem:[#allocation5_spill]] %s2192_s24  ;;  %p36_p0 = scmp.ge.s32.totalorder %s35_s26, 2 }
   0xe   : > { %2616 = sst [smem:[#allocation6_spill]] %s2196_s25  ;;  %p1888_p1 = scmp.ge.s32.totalorder %s2196_s25, 1 }
   0xf   : > { %p577_p2 = scmp.lt.s32.totalorder %s2196_s25, 5  ;;  %s2644_s26 = smov (%p36_p0, %s35_s26), 0 }
  0x10   : > { %2617 = sst [smem:[#allocation7_spill]] %s2644_s26  ;;  %s2646_s27 = smov (!%p36_p0, %s38_s27), %s2192_s24 }
  0x11   : > { %p578_p3 = pnand %p1888_p1, %p577_p2  ;;  %p40_p4 = scmp.ge.s32.totalorder %s2646_s27, 2 }
  0x12   : > { %p669_p5 = scmp.lt.s32.totalorder (!%p578_p3), %s2184_s22, 1  ;;  %p673_p6 = scmp.lt.s32.totalorder (!%p578_p3), %s2180_s21, 1 }
  0x13   : > { %s2648_s27 = smov (%p40_p4, %s2646_s27), 0  ;;  %581 = sbr.rel (%p578_p3) target bundleno = 3596 (0xe0c), region = 84 }
  0x14   : > { %2618 = sst [smem:[#allocation8_spill]] %s2648_s27  ;;  %s2619_s18 = sld [smem:[#allocation9_spill]] (!%p578_p3) }
  0x15   : > { %s2620_s2 = sld [smem:[#allocation11_spill]] (!%p578_p3)  ;;  %s2621_s4 = sld [smem:[#allocation12_spill]] (!%p578_p3) }
  0x16   : > { %s2622_s8 = sld [smem:[#allocation13_spill]] (!%p578_p3)  ;;  %s2624_s27 = sld [smem:[#allocation15_spill]] (!%p578_p3) }
  0x17   : > { %s2625_s15 = sld [smem:[#allocation18_spill]] (!%p578_p3)  ;;  %s2626_s16 = sld [smem:[#allocation3_spill]] (!%p578_p3) }
  0x1a   : > { %s2650_s22 = smov (!%p669_p5, %s2184_s22), 1 }
  0x1b   : > { %s2330_s28 = scalar_select %p673_p6, %s2180_s21, 1 }
  0x1c   : > { %s1889_s29 = sshll.u32 %s2650_s22, 3  ;;  %s1898_s30 = sshll.u32 %s2650_s22, 2 }
  0x1d   : > { %s672_s19 = scalar_lea.vmem %s2619_s18, %s1889_s29  ;;  %s1936_s20 = sshll.u32 %s2330_s28, 4 }
  0x1e   : > { %s677_s24 = scalar_lea.vmem %s2620_s2, %s1936_s20  ;;  %s2346_s21 = scalar_lea.vmem %s2621_s4, %s1936_s20 }
  0x1f   : > { %s2363_s25 = scalar_lea.vmem %s2622_s8, %s1936_s20  ;;  %s1939_s4 = sshll.u32 %s2330_s28, 5 }
  0x20   : > { %s710_s13 = scalar_lea.vmem %s2593_s11, %s2330_s28  ;;  %s2377_s17 = scalar_lea.vmem %s2592_s10, %s1939_s4 }
  0x21   : > { %s713_s2 = scalar_lea.vmem %s2594_s12, %s2330_s28  ;;  %s716_s8 = scalar_lea.vmem %s2624_s27, %s2330_s28 }
  0x22   : > { %s2390_s9 = scalar_lea.vmem %s2625_s15, %s1898_s30  ;;  %p1899_p7 = scmp.ne.s32.totalorder %s2626_s16, 0 }
  0x23   : > { %v726_v0 = vld [vmem:[%s672_s19] sm:$0xff] (!%p1899_p7)  ;;  %s2627_s0 = sld [smem:[#allocation10_spill]] (!%p1899_p7)  ;;  %vm729_vm0 = vcmask (!%p1899_p7), 261120  }
  0x24   : > { %725 = sbr.rel (%p1899_p7) target bundleno = 45 (0x2d), region = 88 }
  0x29   : > { %v727_v1 = vld [vmem:[%s2627_s0] sm:$0xff] (!%p1899_p7) }
  0x2a   : > { %v728_v2 = vadd.f32 (!%p1899_p7), %v727_v1, %v726_v0 }
  0x2c   : > { %730 = vst.msk [vmem:[#allocation2] sm:$0xff] %vm729_vm0, %v728_v2 }
  0x2d PF: > { %v2128_v3 = vld [vmem:[%s677_s24] sm:$0xff]   ;;  %v2198_v4 = vmov 0.0   ;;  %v2129_v5 = vld [vmem:[%s677_s24 + $0x8] sm:$0xff]   ;;  %vm2199_vm1 = vmmov 0   ;;  %vm761_vm2 = vcmask 261120   ;;  %s2628_s30 = scalar_lea.vmem %s2585_s3, %s2330_s28  ;;  %s2200_s19 = smov 120  }
  0x2e   : > { %1975 = vmatprep.subr.bf16.mxu1 %v2198_v4  ;;  %1989 = vmatprep.subr.bf16.mxu0 %v2198_v4  ;;  %v1900_v8 = vld [vmem:[%s2628_s30] ss:$0 sm:$0xff]  ;;  %s2201_s27 = smov 96   ;;  %s2202_s29 = smov 88   ;;  %vm809_vm3 = vcmask 64512   ;;  %vm873_vm4 = vcmask 1043456  }
  0x2f   : > { %1976 = vmatpush3.bf16.msra.mxu1 %v2128_v3  ;;  %1979 = vmatprep.mubr.msk.bf16.mxu1 %vm2199_vm1, %v2198_v4  ;;  %s2203_s18 = smov 64   ;;  %s2204_s26 = smov 56   ;;  %v737_v52 = vld [vmem:[%s2346_s21] sm:$0xf]  ;;  %v738_v54 = vld [vmem:[%s2346_s21 + $0x4] sm:$0xf] }
  0x30   : > { %1977 = vmatprep.subr.bf16.mxu1 %v2198_v4  ;;  %1991 = vmatprep.mubr.msk.bf16.mxu0 %vm2199_vm1, %v2198_v4  ;;  %s2205_s20 = smov 112   ;;  %s2206_s23 = smov 80   ;;  %v1079_v53 = vsel %vm873_vm4, %v737_v52, 0  ;;  %v1033_v55 = vsel %vm873_vm4, %v738_v54, 0  ;;  %vm1585_vm5 = vcmask 523264  }
  0x31   : > { %s2207_s1 = smov 72   ;;  %s2208_s14 = smov 104  }
  0x32   : > { %s2209_s16 = smov 48   ;;  %s2210_s22 = smov 40  }
  0x33   : > { %v2400_v6 = vld [vmem:[#allocation2] sm:$0xff]  ;;  %1978 = vmatpush3.bf16.msra.mxu1 %v2129_v5  ;;  %s2629_s0 = scalar_lea.vmem %s2587_s5, %s2330_s28  ;;  %s2630_s24 = scalar_lea.vmem %s2588_s6, %s2330_s28 }
  0x34   : > { %v742_v7 = vpack.c.bf16 %v2400_v6, %v2400_v6  ;;  %1983 = vmatprep.subr.bf16.mxu1 %v2198_v4 }
  0x36   : > { %1980 = vmatmul.mubr.msk.bf16.vlgmr.msra.gmra.mrb[0].mxu1 %vm761_vm2, %v742_v7 }
  0x37   : > { %1985 = vmatprep.mubr.msk.bf16.mxu1 %vm2199_vm1, %v2198_v4 }
 0x109   : > { %v799_v9 = vpop.f32.mrb[0].mxu1 }
 0x10a   : > { %v800_v10 = vadd.f32 %v1900_v8, %v799_v9  ;;  %v1981_v11 = vpop.f32.mrb[1].mxu1 }
 0x10b   : > { %v802_v12 = vpop.f32.mrb[2].mxu1 }
 0x10c   : > { %v2416_v13 = vpack.c.bf16 %v800_v10, %v800_v10  ;;  %v1982_v14 = vpop.f32.mrb[3].mxu1 }
 0x10e   : > { %918 = vrot.lane.b32.xlu1 %v2416_v13, %s2200_s19  ;;  %807 = vrot.lane.b32.xlu0 %v2416_v13, %s2201_s27  ;;  %s2631_s27 = scalar_lea.vmem %s2589_s7, %s2330_s28 }
 0x112   : > { %920 = vrot.lane.b32.xlu0 %v2416_v13, %s2202_s29 }
 0x180   : > { %v808_v15 = vpop.permute.xlu0 %807  ;;  %v919_v19 = vpop.permute.xlu1 %918 }
 0x181   : > { %v814_v16 = vsel %vm809_vm3, %v808_v15, 0 }
 0x182   : > { %1984 = vmatpush3.bf16.xpose.msra.mxu1 %v814_v16 }
 0x183   : > { %1995 = vmatprep.subr.bf16.mxu1 %v2198_v4 }
 0x184   : > { %v921_v17 = vpop.permute.xlu0 %920 }
 0x185   : > { %v926_v18 = vsel %vm809_vm3, %v921_v17, 0 }
 0x189   : > { %1986 = vmatmul.mubr.msk.bf16.vlgmr.msra.gmra.mrb[4].mxu1 %vm809_vm3, %v2416_v13 }
 0x18a   : > { %1996 = vmatpush3.bf16.xpose.msra.mxu1 %v926_v18  ;;  %1997 = vmatprep.mubr.msk.bf16.mxu1 %vm2199_vm1, %v2198_v4 }
 0x18b   : > { %2007 = vmatprep.subr.bf16.mxu1 %v2198_v4 }
 0x191   : > { %1998 = vmatmul.mubr.msk.bf16.vlgmr.msra.gmra.mrb[8].mxu1 %vm809_vm3, %v919_v19 }
 0x192   : > { %2009 = vmatprep.mubr.msk.bf16.mxu1 %vm2199_vm1, %v2198_v4  ;;  %2008 = vmatpush3.bf16.msra.mxu1 %v1033_v55  ;;  %v740_v55 = vld [vmem:[%s2346_s21 + $0xc] sm:$0xf] }
 0x193   : > { %2019 = vmatprep.subr.bf16.mxu1 %v2198_v4 }
 0x25c   : > { %v850_v20 = vpop.f32.mrb[4].mxu1 }
 0x25d   : > { %v1987_v21 = vpop.f32.mrb[5].mxu1  ;;  %v856_v22 = vsel %vm809_vm3, %v850_v20, -inf }
 0x25e   : > { %857 = vmax.xlane.f32.xlu1 %v856_v22  ;;  %v853_v23 = vpop.f32.mrb[6].mxu1 }
 0x25f   : > { %v1988_v24 = vpop.f32.mrb[7].mxu1 }
 0x264   : > { %v962_v25 = vpop.f32.mrb[8].mxu1 }
 0x265   : > { %v1999_v26 = vpop.f32.mrb[9].mxu1  ;;  %v968_v27 = vsel %vm809_vm3, %v962_v25, -inf }
 0x266   : > { %969 = vmax.xlane.f32.xlu0 %v968_v27  ;;  %v965_v28 = vpop.f32.mrb[10].mxu1 }
 0x267   : > { %v2000_v29 = vpop.f32.mrb[11].mxu1 }
 0x2eb   : > { %v858_v30 = vpop.xlane.xlu1 %857 }
 0x2ec   : > { %v859_v31 = vsub.f32 %v850_v20, %v858_v30 }
 0x2ee   : > { %v860_v32 = vmul.f32 1.442695, %v859_v31 }
 0x2f0   : > { %2136 = vpow2.f32 %v860_v32 }
 0x2f3   : > { %v970_v33 = vpop.xlane.xlu0 %969 }
 0x2f4   : > { %v971_v34 = vsub.f32 %v962_v25, %v970_v33 }
 0x2f6   : > { %v972_v35 = vmul.f32 1.442695, %v971_v34 }
 0x2f8   : > { %2138 = vpow2.f32 %v972_v35 }
 0x2fa   : > { %v2137_v36 = vpop.eup %2136 }
 0x2fb   : > { %v862_v37 = vsel %vm809_vm3, %v2137_v36, 0.0 }
 0x2fc   : > { %863 = vadd.xlane.f32.xlu0 %v862_v37 }
 0x302   : > { %v2139_v38 = vpop.eup %2138 }
 0x303   : > { %v974_v39 = vsel %vm809_vm3, %v2139_v38, 0.0 }
 0x304   : > { %975 = vadd.xlane.f32.xlu1 %v974_v39 }
 0x312   : > { %868 = vrot.lane.b32.xlu0 %v2416_v13, %s2203_s18 }
 0x315   : > { %980 = vrot.lane.b32.xlu1 %v2416_v13, %s2204_s26  ;;  %s2632_s26 = sld [smem:[#allocation14_spill]] }
 0x316   : > { %1121 = vrot.lane.b32.xlu0 %v2416_v13, %s2205_s20 }
 0x319   : > { %1123 = vrot.lane.b32.xlu1 %v2416_v13, %s2206_s23 }
 0x31b   : > { %s2633_s20 = scalar_lea.vmem %s2632_s26, %s2330_s28 }
 0x389   : > { %v864_v40 = vpop.xlane.xlu0 %863 }
 0x38a   : > { %2140 = vrcp.f32 %v864_v40 }
 0x38d   : > { %v869_v41 = vpop.permute.xlu0 %868 }
 0x38e   : > { %v875_v42 = vsel %vm873_vm4, %v869_v41, 0 }
 0x38f   : > { %1990 = vmatpush3.bf16.msra.mxu0 %v875_v42 }
 0x390   : > { %2001 = vmatprep.subr.bf16.mxu0 %v2198_v4 }
 0x391   : > { %v976_v43 = vpop.xlane.xlu1 %975  ;;  %v1122_v5 = vpop.permute.xlu0 %1121 }
 0x392   : > { %2142 = vrcp.f32 %v976_v43 }
 0x394   : > { %v2141_v44 = vpop.eup %2140 }
 0x395   : > { %v866_v45 = vmul.f32 %v2141_v44, %v2137_v36  ;;  %v981_v46 = vpop.permute.xlu1 %980  ;;  %v739_v36 = vld [vmem:[%s2346_s21 + $0x8] sm:$0xf]  ;;  %s2635_s21 = sld [smem:[#allocation3_spill]] }
 0x396   : > { %v986_v48 = vsel %vm873_vm4, %v981_v46, 0  ;;  %v1236_v37 = vsel %vm873_vm4, %v739_v36, 0 }
 0x397   : > { %v867_v47 = vpack.c.bf16 %v866_v45, %v866_v45 }
 0x399   : > { %1992 = vmatmul.mubr.msk.bf16.vlgmr.msra.gmra.mrb[0].mxu0 %vm809_vm3, %v867_v47  ;;  %v1124_v61 = vpop.permute.xlu1 %1123 }
 0x39a   : > { %2002 = vmatpush3.bf16.msra.mxu0 %v986_v48  ;;  %2003 = vmatprep.mubr.msk.bf16.mxu0 %vm2199_vm1, %v2198_v4  ;;  %v1129_v2 = vsel %vm809_vm3, %v1124_v61, 0 }
 0x39b   : > { %2013 = vmatprep.subr.bf16.mxu0 %v2198_v4  ;;  %p1931_p8 = scmp.ne.s32.totalorder %s2635_s21, 1 }
 0x39c   : > { %v2143_v49 = vpop.eup %2142  ;;  %vm1698_vm6 = vcmask (!%p1931_p8), 257024  }
 0x39d   : > { %v978_v50 = vmul.f32 %v2143_v49, %v2139_v38 }
 0x39f   : > { %v979_v51 = vpack.c.bf16 %v978_v50, %v978_v50 }
 0x3a1   : > { %2004 = vmatmul.mubr.msk.bf16.vlgmr.msra.gmra.mrb[4].mxu0 %vm809_vm3, %v979_v51 }
 0x3a2   : > { %2015 = vmatprep.mubr.msk.bf16.mxu0 %vm2199_vm1, %v2198_v4  ;;  %2014 = vmatpush3.bf16.msra.mxu0 %v1079_v53 }
 0x3a3   : > { %2025 = vmatprep.subr.bf16.mxu0 %v2198_v4 }
 0x46c   : > { %v911_v56 = vpop.f32.mrb[0].mxu0 }
 0x46d   : > { %v917_v57 = vpack.c.bf16 %v911_v56, %v911_v56  ;;  %v1993_v58 = vpop.f32.mrb[1].mxu0  ;;  %v1394_v56 = vsel %vm873_vm4, %v740_v55, 0 }
 0x46e   : > { %v914_v59 = vpop.f32.mrb[2].mxu0 }
 0x46f   : > { %v1994_v60 = vpop.f32.mrb[3].mxu0  ;;  %2016 = vmatmul.mubr.msk.bf16.vlgmr.msra.gmra.mrb[8].mxu0 %vm809_vm3, %v917_v57 }
 0x470   : > { %2027 = vmatprep.mubr.msk.bf16.mxu0 %vm2199_vm1, %v2198_v4 }
 0x474   : > { %v1022_v62 = vpop.f32.mrb[4].mxu0 }
 0x475   : > { %v1028_v63 = vpack.c.bf16 %v1022_v62, %v1022_v62  ;;  %v2005_v0 = vpop.f32.mrb[5].mxu0 }
 0x476   : > { %v1025_v1 = vpop.f32.mrb[6].mxu0 }
 0x477   : > { %v2006_v3 = vpop.f32.mrb[7].mxu0  ;;  %2010 = vmatmul.mubr.msk.bf16.vlgmr.msra.gmra.mrb[12].mxu1 %vm809_vm3, %v1028_v63 }
 0x478   : > { %2020 = vmatpush3.bf16.xpose.msra.mxu1 %v1129_v2  ;;  %2021 = vmatprep.mubr.msk.bf16.mxu1 %vm2199_vm1, %v2198_v4 }
 0x479   : > { %2031 = vmatprep.subr.bf16.mxu1 %v2198_v4 }
 0x47f   : > { %2022 = vmatmul.mubr.msk.bf16.vlgmr.msra.gmra.mrb[16].mxu1 %vm809_vm3, %v1122_v5 }
 0x480   : > { %2033 = vmatprep.mubr.msk.bf16.mxu1 %vm2199_vm1, %v2198_v4  ;;  %2032 = vmatpush3.bf16.msra.mxu1 %v1236_v37 }
 0x481   : > { %2043 = vmatprep.subr.bf16.mxu1 %v2198_v4 }
 0x542   : > { %v1115_v7 = vpop.f32.mrb[8].mxu0 }
 0x543   : > { %v2017_v8 = vpop.f32.mrb[9].mxu0 }
 0x544   : > { %v1118_v9 = vpop.f32.mrb[10].mxu0  ;;  %v1916_v8 = vld [vmem:[%s2629_s0] ss:$0 sm:$0xff] }
 0x545   : > { %v2018_v10 = vpop.f32.mrb[11].mxu0 }
 0x54a   : > { %v1069_v11 = vpop.f32.mrb[12].mxu1 }
 0x54b   : > { %v2467_v12 = vadd.f32 %v1115_v7, %v1069_v11  ;;  %v2011_v14 = vpop.f32.mrb[13].mxu1 }
 0x54c   : > { %v1072_v15 = vpop.f32.mrb[14].mxu1 }
 0x54d   : > { %v2012_v16 = vpop.f32.mrb[15].mxu1 }
 0x552   : > { %v1165_v17 = vpop.f32.mrb[16].mxu1 }
 0x553   : > { %v2023_v18 = vpop.f32.mrb[17].mxu1  ;;  %v1171_v19 = vsel %vm809_vm3, %v1165_v17, -inf }
 0x554   : > { %1172 = vmax.xlane.f32.xlu1 %v1171_v19  ;;  %v1168_v20 = vpop.f32.mrb[18].mxu1 }
 0x555   : > { %v2024_v21 = vpop.f32.mrb[19].mxu1  ;;  %v2130_v20 = vld [vmem:[%s2363_s25] sm:$0xff]  }
 0x556   : > { %v2131_v21 = vld [vmem:[%s2363_s25 + $0x8] sm:$0xff]   ;;  %s2637_s25 = sld [smem:[#allocation17_spill]] (!%p1931_p8) }
 0x565   : > { %1281 = vrot.lane.b32.xlu1 %v2416_v13, %s2207_s1 }
 0x569   : > { %1279 = vrot.lane.b32.xlu1 %v2416_v13, %s2208_s14 }
 0x5e1   : > { %v1173_v22 = vpop.xlane.xlu1 %1172 }
 0x5e2   : > { %v1174_v23 = vsub.f32 %v1165_v17, %v1173_v22  ;;  %v2132_v22 = vld [vmem:[%s2377_s17] sm:$0xff]  }
 0x5e4   : > { %v1175_v24 = vmul.f32 1.442695, %v1174_v23  ;;  %v2133_v23 = vld [vmem:[%s2377_s17 + $0x8] sm:$0xff]  }
 0x5e5   : > { %v1282_v32 = vpop.permute.xlu1 %1281 }
 0x5e6   : > { %2144 = vpow2.f32 %v1175_v24  ;;  %v1287_v34 = vsel %vm809_vm3, %v1282_v32, 0  ;;  %v1917_v32 = vld [vmem:[%s2630_s24] ss:$0 sm:$0xff] }
 0x5e9   : > { %v1280_v35 = vpop.permute.xlu1 %1279 }
 0x5f0   : > { %v2145_v25 = vpop.eup %2144 }
 0x5f1   : > { %v1177_v26 = vsel %vm809_vm3, %v2145_v25, 0.0 }
 0x5f2   : > { %1178 = vadd.xlane.f32.xlu0 %v1177_v26 }
 0x608   : > { %1183 = vrot.lane.b32.xlu0 %v2416_v13, %s2209_s16 }
 0x67f   : > { %v1179_v27 = vpop.xlane.xlu0 %1178 }
 0x680   : > { %2146 = vrcp.f32 %v1179_v27 }
 0x683   : > { %v1184_v28 = vpop.permute.xlu0 %1183 }
 0x684   : > { %v1189_v29 = vsel %vm873_vm4, %v1184_v28, 0 }
 0x685   : > { %2026 = vmatpush3.bf16.msra.mxu0 %v1189_v29 }
 0x686   : > { %2037 = vmatprep.subr.bf16.mxu0 %v2198_v4 }
 0x68a   : > { %v2147_v30 = vpop.eup %2146 }
 0x68b   : > { %v1181_v31 = vmul.f32 %v2147_v30, %v2145_v25 }
 0x68d   : > { %v1182_v33 = vpack.c.bf16 %v1181_v31, %v1181_v31 }
 0x68f   : > { %2028 = vmatmul.mubr.msk.bf16.vlgmr.msra.gmra.mrb[12].mxu0 %vm809_vm3, %v1182_v33 }
 0x690   : > { %2038 = vmatpush3.bf16.xpose.msra.mxu0 %v1287_v34  ;;  %2039 = vmatprep.mubr.msk.bf16.mxu0 %vm2199_vm1, %v2198_v4  ;;  %v1918_v34 = vld [vmem:[%s2631_s27] ss:$0 sm:$0xff] }
 0x691   : > { %2049 = vmatprep.subr.bf16.mxu0 %v2198_v4 }
 0x697   : > { %2040 = vmatmul.mubr.msk.bf16.vlgmr.msra.gmra.mrb[16].mxu0 %vm809_vm3, %v1280_v35 }
 0x698   : > { %2051 = vmatprep.mubr.msk.bf16.mxu0 %vm2199_vm1, %v2198_v4  ;;  %2050 = vmatpush3.bf16.msra.mxu0 %v1394_v56 }
 0x699   : > { %2063 = vmatprep.subr.bf16.mxu0 %v2198_v4 }
 0x762   : > { %v1225_v38 = vpop.f32.mrb[12].mxu0 }
 0x763   : > { %v1231_v39 = vpack.c.bf16 %v1225_v38, %v1225_v38  ;;  %v2029_v40 = vpop.f32.mrb[13].mxu0  ;;  %v2134_v38 = vld [vmem:[%s2377_s17 + $0x10] sm:$0xff]  }
 0x764   : > { %v1228_v41 = vpop.f32.mrb[14].mxu0  ;;  %v1919_v40 = vld [vmem:[%s2633_s20] ss:$0 sm:$0xff] }
 0x765   : > { %v2030_v42 = vpop.f32.mrb[15].mxu0  ;;  %2034 = vmatmul.mubr.msk.bf16.vlgmr.msra.gmra.mrb[20].mxu1 %vm809_vm3, %v1231_v39  ;;  %v2135_v39 = vld [vmem:[%s2377_s17 + $0x18] sm:$0xff]  }
 0x766   : > { %2045 = vmatprep.mubr.msk.bf16.mxu1 %vm2199_vm1, %v2198_v4 }
 0x76a   : > { %v1323_v43 = vpop.f32.mrb[16].mxu0 }
 0x76b   : > { %v2041_v44 = vpop.f32.mrb[17].mxu0  ;;  %v1329_v45 = vsel %vm809_vm3, %v1323_v43, -inf }
 0x76c   : > { %1330 = vmax.xlane.f32.xlu0 %v1329_v45  ;;  %v1326_v46 = vpop.f32.mrb[18].mxu0 }
 0x76d   : > { %v2042_v47 = vpop.f32.mrb[19].mxu0 }
 0x782   : > { %1341 = vrot.lane.b32.xlu0 %v2416_v13, %s2210_s22 }
 0x7f9   : > { %v1331_v48 = vpop.xlane.xlu0 %1330 }
 0x7fa   : > { %v1332_v49 = vsub.f32 %v1323_v43, %v1331_v48 }
 0x7fc   : > { %v1333_v50 = vmul.f32 1.442695, %v1332_v49 }
 0x7fd   : > { %v1342_v51 = vpop.permute.xlu0 %1341 }
 0x7fe   : > { %2148 = vpow2.f32 %v1333_v50  ;;  %v1347_v52 = vsel %vm873_vm4, %v1342_v51, 0 }
 0x7ff   : > { %2044 = vmatpush3.bf16.msra.mxu1 %v1347_v52 }
 0x800   : > { %2055 = vmatprep.subr.bf16.mxu1 %v2198_v4 }
 0x808   : > { %v2149_v53 = vpop.eup %2148 }
 0x809   : > { %v1335_v54 = vsel %vm809_vm3, %v2149_v53, 0.0 }
 0x80a   : > { %1336 = vadd.xlane.f32.xlu1 %v1335_v54 }
 0x838   : > { %v1272_v13 = vpop.f32.mrb[20].mxu1 }
 0x839   : > { %v1278_v57 = vadd.f32 %v1272_v13, %v2467_v12  ;;  %v2035_v58 = vpop.f32.mrb[21].mxu1 }
 0x83a   : > { %v1275_v59 = vpop.f32.mrb[22].mxu1 }
 0x83b   : > { %v2036_v60 = vpop.f32.mrb[23].mxu1 }
 0x897   : > { %v1337_v61 = vpop.xlane.xlu1 %1336 }
 0x898   : > { %2150 = vrcp.f32 %v1337_v61 }
 0x8a2   : > { %v2151_v62 = vpop.eup %2150 }
 0x8a3   : > { %v1339_v63 = vmul.f32 %v2151_v62, %v2149_v53 }
 0x8a5   : > { %v1340_v0 = vpack.c.bf16 %v1339_v63, %v1339_v63 }
 0x8a7   : > { %2046 = vmatmul.mubr.msk.bf16.vlgmr.msra.gmra.mrb[24].mxu1 %vm809_vm3, %v1340_v0 }
 0x8a8   : > { %2059 = vmatprep.mubr.msk.bf16.mxu1 %vm2199_vm1, %v2198_v4  ;;  %2056 = vmatpush3.bf16.msra.mxu1 %v2130_v20 }
 0x8a9   : > { %2057 = vmatprep.subr.bf16.mxu1 %v2198_v4 }
 0x8ac   : > { %2058 = vmatpush3.bf16.msra.mxu1 %v2131_v21 }
 0x97a   : > { %v1383_v1 = vpop.f32.mrb[24].mxu1 }
 0x97b   : > { %v1389_v2 = vpack.c.bf16 %v1383_v1, %v1383_v1  ;;  %v2047_v3 = vpop.f32.mrb[25].mxu1  ;;  %v1929_v1 = vld [vmem:[%s713_s2] ss:$0 sm:$0xff]  ;;  %s2636_s2 = sld [smem:[#allocation16_spill]] (!%p1931_p8) }
 0x97c   : > { %v1386_v5 = vpop.f32.mrb[26].mxu1  ;;  %v1930_v3 = vld [vmem:[%s716_s8] ss:$0 sm:$0xff] }
 0x97d   : > { %v2048_v7 = vpop.f32.mrb[27].mxu1  ;;  %2052 = vmatmul.mubr.msk.bf16.vlgmr.msra.gmra.mrb[20].mxu0 %vm809_vm3, %v1389_v2 }
 0x97e   : > { %2071 = vmatprep.mubr.msk.bf16.mxu0 %vm2199_vm1, %v2198_v4  ;;  %2064 = vmatpush3.bf16.msra.mxu0 %v2132_v22 }
 0x97f   : > { %2065 = vmatprep.subr.bf16.mxu0 %v2198_v4 }
 0x981   : > { %v1932_v21 = vld [vmem:[%s2636_s2] ss:$0 sm:$0xff] (!%p1931_p8) }
 0x982   : > { %2066 = vmatpush3.bf16.msra.mxu0 %v2133_v23  ;;  %v1933_v23 = vld [vmem:[%s2637_s25] ss:$0 sm:$0xff] (!%p1931_p8) }
 0x983   : > { %2067 = vmatprep.subr.bf16.mxu0 %v2198_v4 }
 0x986   : > { %2068 = vmatpush3.bf16.msra.mxu0 %v2134_v38 }
 0x987   : > { %2069 = vmatprep.subr.bf16.mxu0 %v2198_v4  ;;  %v1923_v4 = vld [vmem:[%s710_s13] ss:$0 sm:$0xff] }
 0x98a   : > { %2070 = vmatpush3.bf16.msra.mxu0 %v2135_v39 }
 0xa50   : > { %v1430_v9 = vpop.f32.mrb[20].mxu0 }
 0xa51   : > { %v1436_v10 = vadd.f32 %v1430_v9, %v1278_v57  ;;  %v2053_v11 = vpop.f32.mrb[21].mxu0 }
 0xa52   : > { %v1433_v12 = vpop.f32.mrb[22].mxu0 }
 0xa53   : > { %v1443_v14 = vadd.f32 %v1916_v8, %v1436_v10  ;;  %v2054_v15 = vpop.f32.mrb[23].mxu0 }
 0xa55   : > { %v1444_v16 = vadd.f32 %v1443_v14, %v2400_v6 }
 0xa57   : > { %v1447_v17 = vsel %vm761_vm2, %v1444_v16, 0.0  ;;  %v1452_v18 = vmul.f32 %v1444_v16, %v1444_v16 }
 0xa58   : > { %1448 = vadd.xlane.f32.xlu1 %v1447_v17 }
 0xa59   : > { %v1453_v19 = vsel %vm761_vm2, %v1452_v18, 0.0 }
 0xa5c   : > { %1454 = vadd.xlane.f32.xlu1 %v1453_v19 }
 0xae5   : > { %v1449_v6 = vpop.xlane.xlu1 %1448 }
 0xae6   : > { %v1451_v24 = vmul.f32 0.03125, %v1449_v6 }
 0xae8   : > { %v1457_v26 = vmul.f32 %v1451_v24, %v1451_v24  ;;  %v1459_v30 = vsub.f32 %v1444_v16, %v1451_v24 }
 0xae9   : > { %v1455_v25 = vpop.xlane.xlu1 %1454 }
 0xaea   : > { %v1456_v27 = vmul.f32 0.03125, %v1455_v25 }
 0xaec   : > { %v1458_v28 = vsub.f32 %v1456_v27, %v1457_v26 }
 0xaee   : > { %v1460_v29 = vadd.f32 1e-05, %v1458_v28 }
 0xaf0   : > { %2152 = vrsqrt.f32 %v1460_v29 }
 0xafa   : > { %v2153_v31 = vpop.eup %2152 }
 0xafb   : > { %v1462_v33 = vmul.f32 %v2153_v31, %v1459_v30 }
 0xafd   : > { %v1469_v35 = vmul.f32 %v1917_v32, %v1462_v33 }
 0xaff   : > { %v1476_v36 = vadd.f32 %v1918_v34, %v1469_v35 }
 0xb01   : > { %v1491_v37 = vpack.c.bf16 %v1476_v36, %v1476_v36 }
 0xb03   : > { %2060 = vmatmul.mubr.msk.bf16.vlgmr.msra.gmra.mrb[28].mxu1 %vm761_vm2, %v1491_v37 }
 0xbd6   : > { %v1547_v41 = vpop.f32.mrb[28].mxu1 }
 0xbd7   : > { %v1548_v42 = vadd.f32 %v1919_v40, %v1547_v41  ;;  %v2061_v43 = vpop.f32.mrb[29].mxu1 }
 0xbd8   : > { %v1550_v44 = vpop.f32.mrb[30].mxu1 }
 0xbd9   : > { %v1553_v45 = vmax.f32 %v1548_v42, 0.0  ;;  %v2062_v46 = vpop.f32.mrb[31].mxu1 }
 0xbdb   : > { %v1554_v47 = vpack.c.bf16 %v1553_v45, %v1553_v45 }
 0xbdd   : > { %2072 = vmatmul.mubr.msk.bf16.vlgmr.msra.gmra.mrb[24].mxu0 %vm1585_vm5, %v1554_v47 }
 0xcb0   : > { %v1623_v48 = vpop.f32.mrb[24].mxu0 }
 0xcb1   : > { %v1624_v49 = vadd.f32 %v1923_v4, %v1623_v48  ;;  %v2073_v50 = vpop.f32.mrb[25].mxu0 }
 0xcb2   : > { %v1626_v51 = vpop.f32.mrb[26].mxu0 }
 0xcb3   : > { %v1629_v52 = vadd.f32 %v1624_v49, %v1476_v36  ;;  %v2074_v53 = vpop.f32.mrb[27].mxu0 }
 0xcb5   : > { %v1632_v54 = vsel %vm761_vm2, %v1629_v52, 0.0  ;;  %v1636_v55 = vmul.f32 %v1629_v52, %v1629_v52 }
 0xcb6   : > { %1633 = vadd.xlane.f32.xlu1 %v1632_v54 }
 0xcb7   : > { %v1637_v56 = vsel %vm761_vm2, %v1636_v55, 0.0 }
 0xcba   : > { %1638 = vadd.xlane.f32.xlu1 %v1637_v56 }
 0xd43   : > { %v1634_v13 = vpop.xlane.xlu1 %1633 }
 0xd44   : > { %v1635_v57 = vmul.f32 0.03125, %v1634_v13 }
 0xd46   : > { %v1641_v59 = vmul.f32 %v1635_v57, %v1635_v57  ;;  %v1643_v63 = vsub.f32 %v1629_v52, %v1635_v57 }
 0xd47   : > { %v1639_v58 = vpop.xlane.xlu1 %1638 }
 0xd48   : > { %v1640_v60 = vmul.f32 0.03125, %v1639_v58 }
 0xd4a   : > { %v1642_v61 = vsub.f32 %v1640_v60, %v1641_v59 }
 0xd4c   : > { %v1644_v62 = vadd.f32 1e-05, %v1642_v61 }
 0xd4e   : > { %2154 = vrsqrt.f32 %v1644_v62 }
 0xd58   : > { %v2155_v0 = vpop.eup %2154 }
 0xd59   : > { %v1646_v2 = vmul.f32 %v2155_v0, %v1643_v63  ;;  %1665 = sbr.rel (%p1931_p8) target bundleno = 3596 (0xe0c), region = 92 }
 0xd5b   : > { %v1653_v5 = vmul.f32 %v1929_v1, %v1646_v2 }
 0xd5d   : > { %v1660_v7 = vadd.f32 %v1930_v3, %v1653_v5 }
 0xd5f   : > { %1661 = vst.msk [vmem:[#allocation2] sm:$0xff] %vm761_vm2, %v1660_v7  ;;  %v1668_v8 = vsel (!%p1931_p8), %vm761_vm2, %v1660_v7, 0.0  ;;  %v1672_v9 = vmul.f32 (!%p1931_p8), %v1660_v7, %v1660_v7 }
 0xd60   : > { %1669 = vadd.xlane.f32.xlu0 %v1668_v8 }
 0xd61   : > { %v1673_v10 = vsel %vm761_vm2, %v1672_v9, 0.0 }
 0xd64   : > { %1674 = vadd.xlane.f32.xlu0 %v1673_v10 }
 0xded   : > { %v1670_v11 = vpop.xlane.xlu0 %1669 }
 0xdee   : > { %v1671_v12 = vmul.f32 0.03125, %v1670_v11 }
 0xdf0   : > { %v1677_v15 = vmul.f32 %v1671_v12, %v1671_v12  ;;  %v1679_v19 = vsub.f32 %v1660_v7, %v1671_v12 }
 0xdf1   : > { %v1675_v14 = vpop.xlane.xlu0 %1674 }
 0xdf2   : > { %v1676_v16 = vmul.f32 0.03125, %v1675_v14 }
 0xdf4   : > { %v1678_v17 = vsub.f32 %v1676_v16, %v1677_v15 }
 0xdf6   : > { %v1680_v18 = vadd.f32 1e-05, %v1678_v17 }
 0xdf8   : > { %2156 = vrsqrt.f32 %v1680_v18 }
 0xe02   : > { %v2157_v20 = vpop.eup %2156 }
 0xe03   : > { %v1682_v22 = vmul.f32 %v2157_v20, %v1679_v19 }
 0xe05   : > { %v1689_v6 = vmul.f32 %v1932_v21, %v1682_v22 }
 0xe07   : > { %v1696_v24 = vadd.f32 %v1933_v23, %v1689_v6 }
 0xe09   : > { %v1697_v25 = vpack.c.bf16 %v1696_v24, %v1696_v24 }
 0xe0b   : > { %1699 = vst.msk [vmem:[%s2390_s9] sm:$0xf] %vm1698_vm6, %v1697_v25 }
 0xe0c PF: > { %s2638_s15 = sld [smem:[#allocation6_spill]]  ;;  %s2639_s21 = sld [smem:[#allocation4_spill]] }
 0xe0d   : > { %s2640_s22 = sld [smem:[#allocation5_spill]]  ;;  %s2641_s23 = sld [smem:[#allocation7_spill]] }
 0xe0e   : > { %s2642_s24 = sld [smem:[#allocation8_spill]] }
 0xe12   : > { %s26_s25 = sadd.s32 1, %s2638_s15  }
 0xe13   : > { %p23_p9 = scmp.ge.s32.totalorder %s26_s25, 6  }
 0xe15   :  { %25 = sbr.rel (!%p23_p9) target bundleno = 11 (0xb), region = 158 }

// kernel: transformer_cp_forward.4
= control target key start
LH: loop header
LB: loop body
LE: loop exit
PB: predicated region body
PF: predicated region fallthrough
CT: control target
= control target key end

     0   :  { %s3715_s30 = smov 0   ;;  %s3717_s24 = smov 0   ;;  %s4213_s0 = inlined_call_operand.vmem [shape: f32[2,8,32], index: 0, kind: input, shape index: {}]   ;;  %s4214_s1 = inlined_call_operand.vmem [shape: bf16[2,8,32], index: 1, kind: input, shape index: {}]   ;;  %s4215_s2 = inlined_call_operand.vmem [shape: f32[1,8,32], index: 2, kind: input, shape index: {}]   ;;  %s4216_s3 = inlined_call_operand.vmem [shape: bf16[2,32,96], index: 3, kind: input, shape index: {}]   ;;  %s4217_s4 = inlined_call_operand.vmem [shape: f32[2,1,96], index: 4, kind: input, shape index: {}]   ;;  %s4218_s5 = inlined_call_operand.vmem [shape: bf16[2,32,32], index: 5, kind: input, shape index: {}]   ;;  %s4219_s6 = inlined_call_operand.vmem [shape: f32[2,1,32], index: 6, kind: input, shape index: {}]   ;;  %s4220_s7 = inlined_call_operand.vmem [shape: f32[2,1,32], index: 7, kind: input, shape index: {}]   ;;  %s4221_s8 = inlined_call_operand.vmem [shape: f32[2,1,32], index: 8, kind: input, shape index: {}]   ;;  %s4222_s9 = inlined_call_operand.vmem [shape: bf16[2,32,32], index: 9, kind: input, shape index: {}]   ;;  %s4223_s10 = inlined_call_operand.vmem [shape: f32[2,1,32], index: 10, kind: input, shape index: {}]   ;;  %s4224_s11 = inlined_call_operand.vmem [shape: bf16[2,32,64], index: 11, kind: input, shape index: {}]   ;;  %s4225_s12 = inlined_call_operand.vmem [shape: f32[2,1,64], index: 12, kind: input, shape index: {}]   ;;  %s4226_s13 = inlined_call_operand.vmem [shape: bf16[2,32,32], index: 13, kind: input, shape index: {}]   ;;  %s4227_s14 = inlined_call_operand.vmem [shape: f32[2,1,32], index: 14, kind: input, shape index: {}]   ;;  %s4228_s15 = inlined_call_operand.vmem [shape: f32[2,1,32], index: 15, kind: input, shape index: {}]   ;;  %s4229_s16 = inlined_call_operand.vmem [shape: f32[2,1,32], index: 16, kind: input, shape index: {}]   ;;  %s4230_s17 = inlined_call_operand.vmem [shape: bf16[2,32,64], index: 17, kind: input, shape index: {}]   ;;  %s4231_s18 = inlined_call_operand.vmem [shape: f32[2,1,64], index: 18, kind: input, shape index: {}]   ;;  %s4232_s19 = inlined_call_operand.vmem [shape: bf16[2,64,32], index: 19, kind: input, shape index: {}]   ;;  %s4233_s20 = inlined_call_operand.vmem [shape: f32[2,1,32], index: 20, kind: input, shape index: {}]   ;;  %s4234_s21 = inlined_call_operand.vmem [shape: f32[2,1,32], index: 21, kind: input, shape index: {}]   ;;  %s4235_s22 = inlined_call_operand.vmem [shape: f32[2,1,32], index: 22, kind: input, shape index: {}]   ;;  %s4236_s23 = inlined_call_operand.vmem [shape: f32[2,8,32], index: 23, kind: output, shape index: {}]  }
   0x1   :  { %4243 = sst [smem:[#allocation12_spill]] %s4213_s0  ;;  %s3719_s25 = smov 0  }
   0x2   :  { %4244 = sst [smem:[#allocation13_spill]] %s4214_s1 }
   0x3   :  { %4245 = sst [smem:[#allocation14_spill]] %s4215_s2 }
   0x4   :  { %4246 = sst [smem:[#allocation15_spill]] %s4216_s3 }
   0x5   :  { %4247 = sst [smem:[#allocation16_spill]] %s4217_s4  ;;  %s3713_s4 = smov 0  }
   0x6   :  { %4248 = sst [smem:[#allocation17_spill]] %s4218_s5  ;;  %s3721_s5 = smov 0  }
   0x7   :  { %4249 = sst [smem:[#allocation18_spill]] %s4219_s6 }
   0x8   :  { %4250 = sst [smem:[#allocation19_spill]] %s4220_s7 }
   0x9   :  { %4251 = sst [smem:[#allocation20_spill]] %s4222_s9 }
   0xa   :  { %4252 = sst [smem:[#allocation21_spill]] %s4224_s11 }
   0xb   :  { %4253 = sst [smem:[#allocation22_spill]] %s4226_s13 }
   0xc   :  { %4254 = sst [smem:[#allocation23_spill]] %s4227_s14 }
   0xd   :  { %4255 = sst [smem:[#allocation24_spill]] %s4228_s15 }
   0xe   :  { %4256 = sst [smem:[#allocation25_spill]] %s4229_s16 }
   0xf   :  { %4257 = sst [smem:[#allocation26_spill]] %s4230_s17 }
  0x10   :  { %4258 = sst [smem:[#allocation27_spill]] %s4231_s18 }
  0x11   :  { %4259 = sst [smem:[#allocation28_spill]] %s4232_s19 }
  0x12   :  { %4260 = sst [smem:[#allocation29_spill]] %s4233_s20 }
  0x13   :  { %4261 = sst [smem:[#allocation30_spill]] %s4234_s21 }
  0x14   :  { %4262 = sst [smem:[#allocation31_spill]] %s4235_s22 }
  0x15   :  { %4263 = sst [smem:[#allocation32_spill]] %s4236_s23 }
  0x16 LB: > { %4264 = sst [smem:[#allocation3_spill]] %s3562_s4  ;;  %s42_s1 = sadd.s32 1, %s3570_s24  ;;  %s3578_s5 = sphi %s3721_s5, %s33_s5   ;;  %s3574_s25 = sphi %s3719_s25, %s4323_s25   ;;  %s3570_s24 = sphi %s3717_s24, %s4322_s24   ;;  %s3566_s30 = sphi %s3715_s30, %s4321_s30   ;;  %s3562_s4 = sphi %s3713_s4, %s4320_s4  }
  0x17   : > { %4265 = sst [smem:[#allocation4_spill]] %s3570_s24  ;;  %s45_s26 = sadd.s32 1, %s3574_s25 }
  0x18   : > { %4266 = sst [smem:[#allocation5_spill]] %s3574_s25  ;;  %p43_p0 = scmp.ge.s32.totalorder %s42_s1, 2 }
  0x19   : > { %4267 = sst [smem:[#allocation6_spill]] %s3578_s5  ;;  %p3101_p1 = scmp.ge.s32.totalorder %s3578_s5, 1 }
  0x1a   : > { %p831_p2 = scmp.lt.s32.totalorder %s3578_s5, 5  ;;  %s4325_s1 = smov (%p43_p0, %s42_s1), 0 }
  0x1b   : > { %4268 = sst [smem:[#allocation7_spill]] %s4325_s1  ;;  %s4327_s26 = smov (!%p43_p0, %s45_s26), %s3574_s25 }
  0x1c   : > { %p832_p3 = pnand %p3101_p1, %p831_p2  ;;  %p47_p4 = scmp.ge.s32.totalorder %s4327_s26, 2 }
  0x1e   : > { %s4329_s26 = smov (%p47_p4, %s4327_s26), 0  ;;  %835 = sbr.rel (%p832_p3) target bundleno = 6209 (0x1841), region = 112 }
  0x1f   : > { %4269 = sst [smem:[#allocation8_spill]] %s4329_s26 }
  0x25   : > { %p971_p5 = scmp.lt.s32.totalorder %s3566_s30, 1  ;;  %p979_p6 = scmp.lt.s32.totalorder %s3562_s4, 1 }
  0x26   : > { %s4270_s29 = sld [smem:[#allocation12_spill]]  ;;  %s4271_s1 = sld [smem:[#allocation13_spill]] }
  0x27   : > { %s4331_s30 = smov (!%p971_p5, %s3566_s30), 1  ;;  %s4279_s9 = sld [smem:[#allocation20_spill]] }
  0x28   : > { %s3749_s2 = scalar_select %p979_p6, %s3562_s4, 1 }
  0x29   : > { %s3102_s6 = sshll.u32 %s4331_s30, 3  ;;  %s3103_s27 = sshll.u32 %s4331_s30, 2 }
  0x2a   : > { %s3177_s24 = sshll.u32 %s3749_s2, 4  ;;  %s4274_s30 = sld [smem:[#allocation15_spill]] }
  0x2b   : > { %s4280_s11 = sld [smem:[#allocation21_spill]]  ;;  %s4281_s13 = sld [smem:[#allocation22_spill]] }
  0x2c   : > { %s974_s3 = scalar_lea.vmem %s4270_s29, %s3102_s6  ;;  %s3759_s25 = scalar_lea.vmem %s4271_s1, %s3103_s27 }
  0x2d   : > { %4272 = sst [smem:[#allocation9_spill]] %s3759_s25  ;;  %s4276_s29 = sld [smem:[#allocation17_spill]] }
  0x2e   : > { %s3791_s7 = scalar_lea.vmem %s4279_s9, %s3177_s24  ;;  %s4286_s17 = sld [smem:[#allocation26_spill]] }
  0x2f   : > { %s4288_s0 = sld [smem:[#allocation28_spill]]  ;;  %s4289_s26 = sld [smem:[#allocation29_spill]] }
  0x30   : > { %s3769_s19 = scalar_lea.vmem %s4274_s30, %s3177_s24  ;;  %s4290_s16 = sld [smem:[#allocation30_spill]] }
  0x31   : > { %4275 = sst [smem:[#allocation10_spill]] %s3769_s19  ;;  %s3800_s25 = scalar_lea.vmem %s4280_s11, %s3177_s24 }
  0x32   : > { %s3809_s23 = scalar_lea.vmem %s4281_s13, %s3177_s24  ;;  %s4292_s20 = sld [smem:[#allocation32_spill]] }
  0x33   : > { %s3774_s18 = scalar_lea.vmem %s4276_s29, %s3177_s24  ;;  %4282 = sst [smem:[#allocation11_spill]] %s3809_s23 }
  0x34   : > { %s3826_s5 = scalar_lea.vmem %s4286_s17, %s3177_s24  ;;  %s3183_s23 = sshll.u32 %s3749_s2, 5 }
  0x35   : > { %s3836_s14 = scalar_lea.vmem %s4288_s0, %s3183_s23  ;;  %s1046_s1 = scalar_lea.vmem %s4289_s26, %s3749_s2 }
  0x36   : > { %s1049_s11 = scalar_lea.vmem %s4290_s16, %s3749_s2  ;;  %s4291_s17 = sld [smem:[#allocation31_spill]] }
  0x37   : > { %s4293_s19 = sld [smem:[#allocation3_spill]] }
  0x38   : > { %s3853_s13 = scalar_lea.vmem %s4292_s20, %s3102_s6 }
  0x3c   : > { %s1052_s15 = scalar_lea.vmem %s4291_s17, %s3749_s2 }
  0x3d   : > { %p3119_p7 = scmp.ne.s32.totalorder %s4293_s19, 0 }
  0x3e   : > { %v1062_v0 = vld [vmem:[%s974_s3] sm:$0xff] (!%p3119_p7)  ;;  %s4294_s26 = sld [smem:[#allocation14_spill]] (!%p3119_p7)  ;;  %vm1065_vm0 = vcmask (!%p3119_p7), 261120  }
  0x3f   : > { %1061 = sbr.rel (%p3119_p7) target bundleno = 72 (0x48), region = 116 }
  0x44   : > { %v1063_v1 = vld [vmem:[%s4294_s26] sm:$0xff] (!%p3119_p7) }
  0x45   : > { %v1064_v2 = vadd.f32 (!%p3119_p7), %v1063_v1, %v1062_v0 }
  0x47   : > { %1066 = vst.msk [vmem:[#allocation2] sm:$0xff] %vm1065_vm0, %v1064_v2 }
  0x48 PF: > { %s4295_s9 = sld [smem:[#allocation10_spill]]  ;;  %v3580_v4 = vmov 0.0   ;;  %vm3581_vm1 = vmmov 0   ;;  %vm1098_vm2 = vcmask 261120   ;;  %s4296_s6 = sld [smem:[#allocation16_spill]]  ;;  %vm1151_vm3 = vcmask 64512  }
  0x49   : > { %3249 = vmatprep.subr.bf16.mxu1 %v3580_v4  ;;  %3263 = vmatprep.subr.bf16.mxu0 %v3580_v4  ;;  %s3582_s30 = smov 120   ;;  %s3583_s28 = smov 96   ;;  %v1143_v20 = vlaneseq  ;;  %vm1216_vm5 = vcmask 1043456   ;;  %v1074_v57 = vld [vmem:[%s3774_s18] sm:$0xf]  ;;  %vm2738_vm6 = vcmask 523264  }
  0x4a   : > { %3253 = vmatprep.mubr.msk.bf16.mxu1 %vm3581_vm1, %v3580_v4  ;;  %3265 = vmatprep.mubr.msk.bf16.mxu0 %vm3581_vm1, %v3580_v4  ;;  %s3584_s29 = smov 88   ;;  %s3585_s27 = smov 64   ;;  %v1423_v58 = vsel %vm1216_vm5, %v1074_v57, 0  ;;  %v1075_v59 = vld [vmem:[%s3774_s18 + $0x4] sm:$0xf] }
  0x4b   : > { %v3900_v21 = vshrl.u32 %v1143_v20, 7  ;;  %v3902_v22 = vand.u32 127, %v1143_v20  ;;  %s3586_s24 = smov 56   ;;  %s3587_s4 = smov 112   ;;  %v1377_v60 = vsel %vm1216_vm5, %v1075_v59, 0 }
  0x4c   : > { %s3588_s21 = smov 80   ;;  %s3589_s22 = smov 72  }
  0x4d   : > { %vm1147_vm4 = vcmp.le.s32.totalorder %v3902_v22, %v3900_v21  ;;  %s3590_s20 = smov 104   ;;  %s3591_s19 = smov 48  }
  0x4e   : > { %v3490_v3 = vld [vmem:[%s4295_s9] sm:$0xff]   ;;  %v3491_v5 = vld [vmem:[%s4295_s9 + $0x8] sm:$0xff]   ;;  %s4297_s3 = scalar_lea.vmem %s4296_s6, %s3749_s2  ;;  %s3592_s0 = smov 40  }
  0x4f   : > { %3250 = vmatpush3.bf16.msra.mxu1 %v3490_v3  ;;  %v3865_v6 = vld [vmem:[#allocation2] sm:$0xff]  ;;  %s4298_s9 = sld [smem:[#allocation18_spill]]  ;;  %s4304_s23 = scalar_lea.vmem %s4225_s12, %s3749_s2 }
  0x50   : > { %3251 = vmatprep.subr.bf16.mxu1 %v3580_v4  ;;  %v1079_v7 = vpack.c.bf16 %v3865_v6, %v3865_v6  ;;  %v3120_v8 = vld [vmem:[%s4297_s3] ss:$0 sm:$0xff]  ;;  %s4300_s16 = sld [smem:[#allocation9_spill]] }
  0x53   : > { %3252 = vmatpush3.bf16.msra.mxu1 %v3491_v5 }
  0x54   : > { %3257 = vmatprep.subr.bf16.mxu1 %v3580_v4 }
  0x56   : > { %3254 = vmatmul.mubr.msk.bf16.vlgmr.msra.gmra.mrb[0].mxu1 %vm1098_vm2, %v1079_v7 }
  0x57   : > { %3259 = vmatprep.mubr.msk.bf16.mxu1 %vm3581_vm1, %v3580_v4 }
 0x129   : > { %v1136_v9 = vpop.f32.mrb[0].mxu1 }
 0x12a   : > { %v1137_v10 = vadd.f32 %v3120_v8, %v1136_v9  ;;  %v3255_v11 = vpop.f32.mrb[1].mxu1 }
 0x12b   : > { %v1139_v12 = vpop.f32.mrb[2].mxu1 }
 0x12c   : > { %v3881_v13 = vpack.c.bf16 %v1137_v10, %v1137_v10  ;;  %v3256_v14 = vpop.f32.mrb[3].mxu1 }
 0x12e   : > { %1261 = vrot.lane.b32.xlu1 %v3881_v13, %s3582_s30  ;;  %1149 = vrot.lane.b32.xlu0 %v3881_v13, %s3583_s28 }
 0x132   : > { %1263 = vrot.lane.b32.xlu0 %v3881_v13, %s3584_s29 }
 0x1a0   : > { %v1150_v15 = vpop.permute.xlu0 %1149  ;;  %v1262_v19 = vpop.permute.xlu1 %1261 }
 0x1a1   : > { %v1156_v16 = vsel %vm1151_vm3, %v1150_v15, 0 }
 0x1a2   : > { %3258 = vmatpush3.bf16.xpose.msra.mxu1 %v1156_v16 }
 0x1a3   : > { %3269 = vmatprep.subr.bf16.mxu1 %v3580_v4 }
 0x1a4   : > { %v1264_v17 = vpop.permute.xlu0 %1263 }
 0x1a5   : > { %v1269_v18 = vsel %vm1151_vm3, %v1264_v17, 0 }
 0x1a9   : > { %3260 = vmatmul.mubr.msk.bf16.vlgmr.msra.gmra.mrb[4].mxu1 %vm1151_vm3, %v3881_v13 }
 0x1aa   : > { %3270 = vmatpush3.bf16.xpose.msra.mxu1 %v1269_v18  ;;  %3271 = vmatprep.mubr.msk.bf16.mxu1 %vm3581_vm1, %v3580_v4 }
 0x1ab   : > { %3281 = vmatprep.subr.bf16.mxu1 %v3580_v4 }
 0x1b1   : > { %3272 = vmatmul.mubr.msk.bf16.vlgmr.msra.gmra.mrb[8].mxu1 %vm1151_vm3, %v1262_v19 }
 0x1b2   : > { %3283 = vmatprep.mubr.msk.bf16.mxu1 %vm3581_vm1, %v3580_v4  ;;  %3282 = vmatpush3.bf16.msra.mxu1 %v1377_v60 }
 0x1b3   : > { %3293 = vmatprep.subr.bf16.mxu1 %v3580_v4 }
 0x27c   : > { %v1192_v23 = vpop.f32.mrb[4].mxu1 }
 0x27d   : > { %v1198_v24 = vsel %vm1147_vm4, %v1192_v23, -1e+30  ;;  %v3261_v25 = vpop.f32.mrb[5].mxu1 }
 0x27e   : > { %v1195_v26 = vpop.f32.mrb[6].mxu1  ;;  %v1199_v27 = vsel %vm1151_vm3, %v1198_v24, -inf }
 0x27f   : > { %1200 = vmax.xlane.f32.xlu1 %v1199_v27  ;;  %v3262_v28 = vpop.f32.mrb[7].mxu1 }
 0x284   : > { %v1305_v29 = vpop.f32.mrb[8].mxu1 }
 0x285   : > { %v1311_v30 = vsel %vm1147_vm4, %v1305_v29, -1e+30  ;;  %v3273_v31 = vpop.f32.mrb[9].mxu1 }
 0x286   : > { %v1308_v32 = vpop.f32.mrb[10].mxu1  ;;  %v1312_v33 = vsel %vm1151_vm3, %v1311_v30, -inf }
 0x287   : > { %1313 = vmax.xlane.f32.xlu0 %v1312_v33  ;;  %v3274_v34 = vpop.f32.mrb[11].mxu1 }
 0x30c   : > { %v1201_v35 = vpop.xlane.xlu1 %1200 }
 0x30d   : > { %v1202_v36 = vsub.f32 %v1198_v24, %v1201_v35 }
 0x30f   : > { %v1203_v37 = vmul.f32 1.442695, %v1202_v36 }
 0x311   : > { %3502 = vpow2.f32 %v1203_v37 }
 0x314   : > { %v1314_v38 = vpop.xlane.xlu0 %1313 }
 0x315   : > { %v1315_v39 = vsub.f32 %v1311_v30, %v1314_v38 }
 0x317   : > { %v1316_v40 = vmul.f32 1.442695, %v1315_v39 }
 0x319   : > { %3504 = vpow2.f32 %v1316_v40 }
 0x31b   : > { %v3503_v41 = vpop.eup %3502 }
 0x31c   : > { %v1205_v42 = vsel %vm1151_vm3, %v3503_v41, 0.0 }
 0x31d   : > { %1206 = vadd.xlane.f32.xlu0 %v1205_v42 }
 0x323   : > { %v3505_v43 = vpop.eup %3504 }
 0x324   : > { %v1318_v44 = vsel %vm1151_vm3, %v3505_v43, 0.0 }
 0x325   : > { %1319 = vadd.xlane.f32.xlu1 %v1318_v44  ;;  %v1076_v44 = vld [vmem:[%s3774_s18 + $0x8] sm:$0xf] }
 0x333   : > { %1211 = vrot.lane.b32.xlu0 %v3881_v13, %s3585_s27 }
 0x336   : > { %1324 = vrot.lane.b32.xlu1 %v3881_v13, %s3586_s24  ;;  %s4303_s24 = scalar_lea.vmem %s4221_s8, %s3749_s2 }
 0x337   : > { %1465 = vrot.lane.b32.xlu0 %v3881_v13, %s3587_s4 }
 0x33a   : > { %1467 = vrot.lane.b32.xlu1 %v3881_v13, %s3588_s21 }
 0x3aa   : > { %v1207_v45 = vpop.xlane.xlu0 %1206 }
 0x3ab   : > { %3506 = vrcp.f32 %v1207_v45  ;;  %v1581_v45 = vsel %vm1216_vm5, %v1076_v44, 0  ;;  %v3138_v44 = vld [vmem:[%s4303_s24] ss:$0 sm:$0xff]  ;;  %s4313_s24 = sld [smem:[#allocation27_spill]] }
 0x3ae   : > { %v1212_v46 = vpop.permute.xlu0 %1211 }
 0x3af   : > { %v1218_v47 = vsel %vm1216_vm5, %v1212_v46, 0 }
 0x3b0   : > { %3264 = vmatpush3.bf16.msra.mxu0 %v1218_v47 }
 0x3b1   : > { %3275 = vmatprep.subr.bf16.mxu0 %v3580_v4 }
 0x3b2   : > { %v1320_v48 = vpop.xlane.xlu1 %1319  ;;  %v1466_v11 = vpop.permute.xlu0 %1465 }
 0x3b3   : > { %3508 = vrcp.f32 %v1320_v48 }
 0x3b5   : > { %v3507_v49 = vpop.eup %3506 }
 0x3b6   : > { %v1209_v50 = vmul.f32 %v3507_v49, %v3503_v41  ;;  %v1325_v51 = vpop.permute.xlu1 %1324 }
 0x3b7   : > { %v1330_v53 = vsel %vm1216_vm5, %v1325_v51, 0 }
 0x3b8   : > { %v1210_v52 = vpack.c.bf16 %v1209_v50, %v1209_v50 }
 0x3ba   : > { %3266 = vmatmul.mubr.msk.bf16.vlgmr.msra.gmra.mrb[0].mxu0 %vm1151_vm3, %v1210_v52  ;;  %v1468_v2 = vpop.permute.xlu1 %1467 }
 0x3bb   : > { %3276 = vmatpush3.bf16.msra.mxu0 %v1330_v53  ;;  %3277 = vmatprep.mubr.msk.bf16.mxu0 %vm3581_vm1, %v3580_v4  ;;  %v1473_v9 = vsel %vm1151_vm3, %v1468_v2, 0 }
 0x3bc   : > { %3287 = vmatprep.subr.bf16.mxu0 %v3580_v4 }
 0x3bd   : > { %v3509_v54 = vpop.eup %3508 }
 0x3be   : > { %v1322_v55 = vmul.f32 %v3509_v54, %v3505_v43 }
 0x3c0   : > { %v1323_v56 = vpack.c.bf16 %v1322_v55, %v1322_v55 }
 0x3c2   : > { %3278 = vmatmul.mubr.msk.bf16.vlgmr.msra.gmra.mrb[4].mxu0 %vm1151_vm3, %v1323_v56 }
 0x3c3   : > { %3289 = vmatprep.mubr.msk.bf16.mxu0 %vm3581_vm1, %v3580_v4  ;;  %3288 = vmatpush3.bf16.msra.mxu0 %v1423_v58 }
 0x3c4   : > { %3299 = vmatprep.subr.bf16.mxu0 %v3580_v4 }
 0x48d   : > { %v1254_v61 = vpop.f32.mrb[0].mxu0 }
 0x48e   : > { %v1260_v62 = vpack.c.bf16 %v1254_v61, %v1254_v61  ;;  %v3267_v63 = vpop.f32.mrb[1].mxu0 }
 0x48f   : > { %v1257_v0 = vpop.f32.mrb[2].mxu0 }
 0x490   : > { %v3268_v1 = vpop.f32.mrb[3].mxu0  ;;  %3290 = vmatmul.mubr.msk.bf16.vlgmr.msra.gmra.mrb[8].mxu0 %vm1151_vm3, %v1260_v62 }
 0x491   : > { %3301 = vmatprep.mubr.msk.bf16.mxu0 %vm3581_vm1, %v3580_v4 }
 0x495   : > { %v1366_v3 = vpop.f32.mrb[4].mxu0 }
 0x496   : > { %v1372_v5 = vpack.c.bf16 %v1366_v3, %v1366_v3  ;;  %v3279_v7 = vpop.f32.mrb[5].mxu0 }
 0x497   : > { %v1369_v8 = vpop.f32.mrb[6].mxu0 }
 0x498   : > { %v3280_v10 = vpop.f32.mrb[7].mxu0  ;;  %3284 = vmatmul.mubr.msk.bf16.vlgmr.msra.gmra.mrb[12].mxu1 %vm1151_vm3, %v1372_v5  ;;  %v1077_v8 = vld [vmem:[%s3774_s18 + $0xc] sm:$0xf]  ;;  %s4299_s18 = scalar_lea.vmem %s4298_s9, %s3749_s2 }
 0x499   : > { %3294 = vmatpush3.bf16.xpose.msra.mxu1 %v1473_v9  ;;  %3295 = vmatprep.mubr.msk.bf16.mxu1 %vm3581_vm1, %v3580_v4  ;;  %v1740_v9 = vsel %vm1216_vm5, %v1077_v8, 0 }
 0x49a   : > { %3305 = vmatprep.subr.bf16.mxu1 %v3580_v4 }
 0x4a0   : > { %3296 = vmatmul.mubr.msk.bf16.vlgmr.msra.gmra.mrb[16].mxu1 %vm1151_vm3, %v1466_v11 }
 0x4a1   : > { %3307 = vmatprep.mubr.msk.bf16.mxu1 %vm3581_vm1, %v3580_v4  ;;  %3306 = vmatpush3.bf16.msra.mxu1 %v1581_v45 }
 0x4a2   : > { %3317 = vmatprep.subr.bf16.mxu1 %v3580_v4 }
 0x563   : > { %v1459_v12 = vpop.f32.mrb[8].mxu0 }
 0x564   : > { %v3291_v14 = vpop.f32.mrb[9].mxu0 }
 0x565   : > { %v1462_v15 = vpop.f32.mrb[10].mxu0 }
 0x566   : > { %v3292_v16 = vpop.f32.mrb[11].mxu0 }
 0x567   : > { %v3136_v16 = vld [vmem:[%s4299_s18] ss:$0 sm:$0xff]  ;;  %s4305_s18 = scalar_lea.vmem %s4223_s10, %s3749_s2 }
 0x56b   : > { %v1413_v17 = vpop.f32.mrb[12].mxu1 }
 0x56c   : > { %v3949_v18 = vadd.f32 %v1459_v12, %v1413_v17  ;;  %v3285_v19 = vpop.f32.mrb[13].mxu1 }
 0x56d   : > { %v1416_v20 = vpop.f32.mrb[14].mxu1 }
 0x56e   : > { %v3286_v23 = vpop.f32.mrb[15].mxu1 }
 0x573   : > { %v1509_v24 = vpop.f32.mrb[16].mxu1 }
 0x574   : > { %v1515_v25 = vsel %vm1147_vm4, %v1509_v24, -1e+30  ;;  %v3297_v26 = vpop.f32.mrb[17].mxu1 }
 0x575   : > { %v1512_v27 = vpop.f32.mrb[18].mxu1  ;;  %v1516_v28 = vsel %vm1151_vm3, %v1515_v25, -inf }
 0x576   : > { %1517 = vmax.xlane.f32.xlu1 %v1516_v28  ;;  %v3298_v29 = vpop.f32.mrb[19].mxu1 }
 0x577   : > { %v3492_v29 = vld [vmem:[%s3800_s25] sm:$0xff]  }
 0x587   : > { %1626 = vrot.lane.b32.xlu1 %v3881_v13, %s3589_s22 }
 0x58b   : > { %1624 = vrot.lane.b32.xlu1 %v3881_v13, %s3590_s20 }
 0x603   : > { %v1518_v30 = vpop.xlane.xlu1 %1517 }
 0x604   : > { %v1519_v31 = vsub.f32 %v1515_v25, %v1518_v30  ;;  %v3493_v30 = vld [vmem:[%s3800_s25 + $0x8] sm:$0xff]  }
 0x606   : > { %v1520_v32 = vmul.f32 1.442695, %v1519_v31  ;;  %v1068_v31 = vld [vmem:[%s4300_s16] sm:$0xf] }
 0x607   : > { %v1627_v40 = vpop.permute.xlu1 %1626 }
 0x608   : > { %3510 = vpow2.f32 %v1520_v32  ;;  %v1632_v42 = vsel %vm1151_vm3, %v1627_v40, 0  ;;  %v3495_v32 = vld [vmem:[%s3791_s7 + $0x8] sm:$0xff]  }
 0x60b   : > { %v1625_v43 = vpop.permute.xlu1 %1624 }
 0x612   : > { %v3511_v33 = vpop.eup %3510 }
 0x613   : > { %v1522_v34 = vsel %vm1151_vm3, %v3511_v33, 0.0 }
 0x614   : > { %1523 = vadd.xlane.f32.xlu0 %v1522_v34 }
 0x62a   : > { %1528 = vrot.lane.b32.xlu0 %v3881_v13, %s3591_s19  ;;  %s4314_s19 = scalar_lea.vmem %s4313_s24, %s3749_s2 }
 0x6a1   : > { %v1524_v35 = vpop.xlane.xlu0 %1523 }
 0x6a2   : > { %3512 = vrcp.f32 %v1524_v35 }
 0x6a5   : > { %v1529_v36 = vpop.permute.xlu0 %1528 }
 0x6a6   : > { %v1534_v37 = vsel %vm1216_vm5, %v1529_v36, 0 }
 0x6a7   : > { %3300 = vmatpush3.bf16.msra.mxu0 %v1534_v37 }
 0x6a8   : > { %3311 = vmatprep.subr.bf16.mxu0 %v3580_v4 }
 0x6ac   : > { %v3513_v38 = vpop.eup %3512 }
 0x6ad   : > { %v1526_v39 = vmul.f32 %v3513_v38, %v3511_v33 }
 0x6af   : > { %v1527_v41 = vpack.c.bf16 %v1526_v39, %v1526_v39 }
 0x6b1   : > { %3302 = vmatmul.mubr.msk.bf16.vlgmr.msra.gmra.mrb[12].mxu0 %vm1151_vm3, %v1527_v41 }
 0x6b2   : > { %3312 = vmatpush3.bf16.xpose.msra.mxu0 %v1632_v42  ;;  %3313 = vmatprep.mubr.msk.bf16.mxu0 %vm3581_vm1, %v3580_v4 }
 0x6b3   : > { %3323 = vmatprep.subr.bf16.mxu0 %v3580_v4 }
 0x6b9   : > { %3314 = vmatmul.mubr.msk.bf16.vlgmr.msra.gmra.mrb[16].mxu0 %vm1151_vm3, %v1625_v43 }
 0x6ba   : > { %3325 = vmatprep.mubr.msk.bf16.mxu0 %vm3581_vm1, %v3580_v4  ;;  %3324 = vmatpush3.bf16.msra.mxu0 %v1740_v9 }
 0x6bb   : > { %3337 = vmatprep.subr.bf16.mxu0 %v3580_v4 }
 0x784   : > { %v1570_v46 = vpop.f32.mrb[12].mxu0 }
 0x785   : > { %v1576_v47 = vpack.c.bf16 %v1570_v46, %v1570_v46  ;;  %v3303_v48 = vpop.f32.mrb[13].mxu0 }
 0x786   : > { %v1573_v49 = vpop.f32.mrb[14].mxu0  ;;  %v3143_v48 = vld [vmem:[%s4304_s23] ss:$0 sm:$0xff] }
 0x787   : > { %v3304_v50 = vpop.f32.mrb[15].mxu0  ;;  %3308 = vmatmul.mubr.msk.bf16.vlgmr.msra.gmra.mrb[20].mxu1 %vm1151_vm3, %v1576_v47 }
 0x788   : > { %3319 = vmatprep.mubr.msk.bf16.mxu1 %vm3581_vm1, %v3580_v4 }
 0x78c   : > { %v1668_v51 = vpop.f32.mrb[16].mxu0 }
 0x78d   : > { %v1674_v52 = vsel %vm1147_vm4, %v1668_v51, -1e+30  ;;  %v3315_v53 = vpop.f32.mrb[17].mxu0 }
 0x78e   : > { %v1671_v54 = vpop.f32.mrb[18].mxu0  ;;  %v1675_v55 = vsel %vm1151_vm3, %v1674_v52, -inf }
 0x78f   : > { %1676 = vmax.xlane.f32.xlu0 %v1675_v55  ;;  %v3316_v56 = vpop.f32.mrb[19].mxu0 }
 0x790   : > { %v3139_v56 = vld [vmem:[%s4305_s18] ss:$0 sm:$0xff] }
 0x7a5   : > { %1687 = vrot.lane.b32.xlu0 %v3881_v13, %s3592_s0 }
 0x81c   : > { %v1677_v57 = vpop.xlane.xlu0 %1676 }
 0x81d   : > { %v1678_v58 = vsub.f32 %v1674_v52, %v1677_v57 }
 0x81f   : > { %v1679_v59 = vmul.f32 1.442695, %v1678_v58 }
 0x820   : > { %v1688_v60 = vpop.permute.xlu0 %1687 }
 0x821   : > { %3514 = vpow2.f32 %v1679_v59  ;;  %v1693_v61 = vsel %vm1216_vm5, %v1688_v60, 0 }
 0x822   : > { %3318 = vmatpush3.bf16.msra.mxu1 %v1693_v61 }
 0x823   : > { %3329 = vmatprep.subr.bf16.mxu1 %v3580_v4 }
 0x82b   : > { %v3515_v21 = vpop.eup %3514 }
 0x82c   : > { %v1681_v22 = vsel %vm1151_vm3, %v3515_v21, 0.0 }
 0x82d   : > { %1682 = vadd.xlane.f32.xlu1 %v1681_v22 }
 0x85a   : > { %v1617_v62 = vpop.f32.mrb[20].mxu1 }
 0x85b   : > { %v1623_v63 = vadd.f32 %v1617_v62, %v3949_v18  ;;  %v3309_v0 = vpop.f32.mrb[21].mxu1 }
 0x85c   : > { %v1620_v13 = vpop.f32.mrb[22].mxu1 }
 0x85d   : > { %v3310_v1 = vpop.f32.mrb[23].mxu1 }
 0x8ba   : > { %v1683_v2 = vpop.xlane.xlu1 %1682 }
 0x8bb   : > { %3516 = vrcp.f32 %v1683_v2 }
 0x8c5   : > { %v3517_v3 = vpop.eup %3516 }
 0x8c6   : > { %v1685_v5 = vmul.f32 %v3517_v3, %v3515_v21 }
 0x8c8   : > { %v1686_v7 = vpack.c.bf16 %v1685_v5, %v1685_v5 }
 0x8ca   : > { %3320 = vmatmul.mubr.msk.bf16.vlgmr.msra.gmra.mrb[24].mxu1 %vm1151_vm3, %v1686_v7 }
 0x8cb   : > { %3333 = vmatprep.mubr.msk.bf16.mxu1 %vm3581_vm1, %v3580_v4 }
 0x99d   : > { %v1729_v10 = vpop.f32.mrb[24].mxu1 }
 0x99e   : > { %v1735_v11 = vpack.c.bf16 %v1729_v10, %v1729_v10  ;;  %v3321_v12 = vpop.f32.mrb[25].mxu1 }
 0x99f   : > { %v1732_v14 = vpop.f32.mrb[26].mxu1 }
 0x9a0   : > { %v3322_v15 = vpop.f32.mrb[27].mxu1  ;;  %3326 = vmatmul.mubr.msk.bf16.vlgmr.msra.gmra.mrb[20].mxu0 %vm1151_vm3, %v1735_v11 }
 0x9a1   : > { %3341 = vmatprep.mubr.msk.bf16.mxu0 %vm3581_vm1, %v3580_v4  ;;  %3338 = vmatpush3.bf16.msra.mxu0 %v3492_v29 }
 0x9a2   : > { %3339 = vmatprep.subr.bf16.mxu0 %v3580_v4 }
 0x9a5   : > { %3340 = vmatpush3.bf16.msra.mxu0 %v3493_v30 }
 0x9a6   : > { %3351 = vmatprep.subr.bf16.mxu0 %v3580_v4 }
 0x9a8   : > { %3342 = vmatmul.mubr.msk.bf16.vlgmr.msra.gmra.mrb[24].mxu0 %vm1098_vm2, %v1068_v31 }
 0x9a9   : > { %3353 = vmatprep.mubr.msk.bf16.mxu0 %vm3581_vm1, %v3580_v4 }
 0xa73   : > { %v1776_v17 = vpop.f32.mrb[20].mxu0 }
 0xa74   : > { %v1782_v18 = vadd.f32 %v1776_v17, %v1623_v63  ;;  %v3327_v19 = vpop.f32.mrb[21].mxu0 }
 0xa75   : > { %v1779_v20 = vpop.f32.mrb[22].mxu0 }
 0xa76   : > { %v1789_v23 = vadd.f32 %v3136_v16, %v1782_v18  ;;  %v3328_v24 = vpop.f32.mrb[23].mxu0 }
 0xa78   : > { %v1790_v25 = vadd.f32 %v1789_v23, %v3865_v6  ;;  %v3494_v6 = vld [vmem:[%s3791_s7] sm:$0xff]   ;;  %s4301_s7 = sld [smem:[#allocation19_spill]] }
 0xa79   : > { %3330 = vmatpush3.bf16.msra.mxu1 %v3494_v6 }
 0xa7a   : > { %v1793_v26 = vsel %vm1098_vm2, %v1790_v25, 0.0  ;;  %v1798_v27 = vmul.f32 %v1790_v25, %v1790_v25  ;;  %3331 = vmatprep.subr.bf16.mxu1 %v3580_v4 }
 0xa7b   : > { %1794 = vadd.xlane.f32.xlu1 %v1793_v26  ;;  %v1956_v49 = vpop.f32.mrb[24].mxu0 }
 0xa7c   : > { %v1799_v28 = vsel %vm1098_vm2, %v1798_v27, 0.0  ;;  %v1957_v50 = vadd.f32 %v3143_v48, %v1956_v49  ;;  %v3343_v51 = vpop.f32.mrb[25].mxu0 }
 0xa7d   : > { %3332 = vmatpush3.bf16.msra.mxu1 %v3495_v32  ;;  %v1959_v52 = vpop.f32.mrb[26].mxu0 }
 0xa7e   : > { %3345 = vmatprep.subr.bf16.mxu1 %v3580_v4  ;;  %s4302_s6 = scalar_lea.vmem %s4301_s7, %s3749_s2  ;;  %v4037_v53 = vpack.c.bf16 %v1957_v50, %v1957_v50  ;;  %v3344_v54 = vpop.f32.mrb[27].mxu0  ;;  %s4311_s7 = sld [smem:[#allocation25_spill]] }
 0xa7f   : > { %1800 = vadd.xlane.f32.xlu1 %v1799_v28  ;;  %v3137_v42 = vld [vmem:[%s4302_s6] ss:$0 sm:$0xff] }
 0xa80   : > { %v1967_v55 = vsel %vm1151_vm3, %v4037_v53, 0 }
 0xa84   : > { %s4312_s6 = scalar_lea.vmem %s4311_s7, %s3749_s2 }
 0xa90   : > { %2074 = vrot.lane.b32.xlu1 %v4037_v53, %s3582_s30 }
 0xb08   : > { %v1795_v33 = vpop.xlane.xlu1 %1794 }
 0xb09   : > { %v1797_v34 = vmul.f32 0.03125, %v1795_v33 }
 0xb0b   : > { %v1803_v36 = vmul.f32 %v1797_v34, %v1797_v34  ;;  %v1805_v40 = vsub.f32 %v1790_v25, %v1797_v34 }
 0xb0c   : > { %v1801_v35 = vpop.xlane.xlu1 %1800 }
 0xb0d   : > { %v1802_v37 = vmul.f32 0.03125, %v1801_v35 }
 0xb0f   : > { %v1804_v38 = vsub.f32 %v1802_v37, %v1803_v36 }
 0xb10   : > { %v2075_v58 = vpop.permute.xlu1 %2074 }
 0xb11   : > { %v1806_v39 = vadd.f32 1e-05, %v1804_v38  ;;  %v2080_v62 = vsel %vm1151_vm3, %v2075_v58, 0 }
 0xb13   : > { %3518 = vrsqrt.f32 %v1806_v39 }
 0xb1d   : > { %v3519_v41 = vpop.eup %3518 }
 0xb1e   : > { %v1808_v43 = vmul.f32 %v3519_v41, %v1805_v40 }
 0xb20   : > { %v1815_v45 = vmul.f32 %v3137_v42, %v1808_v43 }
 0xb22   : > { %v4025_v46 = vadd.f32 %v3138_v44, %v1815_v45 }
 0xb24   : > { %v1838_v47 = vpack.c.bf16 %v4025_v46, %v4025_v46 }
 0xb26   : > { %3334 = vmatmul.mubr.msk.bf16.vlgmr.msra.gmra.mrb[28].mxu1 %vm1098_vm2, %v1838_v47 }
 0xb27   : > { %3347 = vmatprep.mubr.msk.bf16.mxu1 %vm3581_vm1, %v3580_v4  ;;  %3346 = vmatpush3.bf16.xpose.msra.mxu1 %v1967_v55 }
 0xb28   : > { %3357 = vmatprep.subr.bf16.mxu1 %v3580_v4 }
 0xbf9   : > { %v1894_v57 = vpop.f32.mrb[28].mxu1 }
 0xbfa   : > { %v1895_v59 = vadd.f32 %v3139_v56, %v1894_v57  ;;  %v3335_v60 = vpop.f32.mrb[29].mxu1 }
 0xbfb   : > { %v1897_v61 = vpop.f32.mrb[30].mxu1 }
 0xbfc   : > { %v4049_v21 = vpack.c.bf16 %v1895_v59, %v1895_v59  ;;  %v3336_v22 = vpop.f32.mrb[31].mxu1 }
 0xbfe   : > { %2072 = vrot.lane.b32.xlu0 %v4049_v21, %s3582_s30  ;;  %3348 = vmatmul.mubr.msk.bf16.vlgmr.msra.gmra.mrb[32].mxu1 %vm1151_vm3, %v4049_v21  ;;  %s4306_s30 = sld [smem:[#allocation11_spill]] }
 0xbff   : > { %3358 = vmatpush3.bf16.xpose.msra.mxu1 %v2080_v62  ;;  %3359 = vmatprep.mubr.msk.bf16.mxu1 %vm3581_vm1, %v3580_v4 }
 0xc00   : > { %3369 = vmatprep.subr.bf16.mxu1 %v3580_v4 }
 0xc04   : > { %v1833_v35 = vld [vmem:[%s4306_s30] sm:$0xf]  ;;  %v1834_v37 = vld [vmem:[%s4306_s30 + $0x4] sm:$0xf] }
 0xc05   : > { %v2233_v36 = vsel %vm1216_vm5, %v1833_v35, 0  ;;  %v2187_v38 = vsel %vm1216_vm5, %v1834_v37, 0 }
 0xc70   : > { %v2073_v63 = vpop.permute.xlu0 %2072 }
 0xc71   : > { %3360 = vmatmul.mubr.msk.bf16.vlgmr.msra.gmra.mrb[36].mxu1 %vm1151_vm3, %v2073_v63 }
 0xc72   : > { %3371 = vmatprep.mubr.msk.bf16.mxu1 %vm3581_vm1, %v3580_v4  ;;  %3370 = vmatpush3.bf16.msra.mxu1 %v2187_v38 }
 0xc73   : > { %3381 = vmatprep.subr.bf16.mxu1 %v3580_v4 }
 0xcd1   : > { %v2003_v0 = vpop.f32.mrb[32].mxu1 }
 0xcd2   : > { %v3349_v13 = vpop.f32.mrb[33].mxu1  ;;  %v2009_v1 = vsel %vm1151_vm3, %v2003_v0, -inf }
 0xcd3   : > { %2010 = vmax.xlane.f32.xlu0 %v2009_v1  ;;  %v2006_v2 = vpop.f32.mrb[34].mxu1 }
 0xcd4   : > { %v3350_v3 = vpop.f32.mrb[35].mxu1 }
 0xd44   : > { %v2116_v5 = vpop.f32.mrb[36].mxu1 }
 0xd45   : > { %v3361_v7 = vpop.f32.mrb[37].mxu1  ;;  %v2122_v8 = vsel %vm1151_vm3, %v2116_v5, -inf }
 0xd46   : > { %2123 = vmax.xlane.f32.xlu1 %v2122_v8  ;;  %v2119_v9 = vpop.f32.mrb[38].mxu1 }
 0xd47   : > { %v3362_v10 = vpop.f32.mrb[39].mxu1 }
 0xd57   : > { %2134 = vrot.lane.b32.xlu1 %v4037_v53, %s3584_s29  ;;  %s4318_s29 = sld [smem:[#allocation3_spill]] }
 0xd5b   : > { %2277 = vrot.lane.b32.xlu1 %v4037_v53, %s3587_s4 }
 0xd5d   : > { %p3174_p8 = scmp.ne.s32.totalorder %s4318_s29, 1 }
 0xd60   : > { %v2011_v11 = vpop.xlane.xlu0 %2010 }
 0xd61   : > { %v2012_v12 = vsub.f32 %v2003_v0, %v2011_v11 }
 0xd63   : > { %v2013_v14 = vmul.f32 1.442695, %v2012_v12 }
 0xd65   : > { %3520 = vpow2.f32 %v2013_v14 }
 0xd6f   : > { %v3521_v15 = vpop.eup %3520 }
 0xd70   : > { %v2015_v16 = vsel %vm1151_vm3, %v3521_v15, 0.0 }
 0xd71   : > { %2016 = vadd.xlane.f32.xlu0 %v2015_v16 }
 0xdd3   : > { %v2124_v17 = vpop.xlane.xlu1 %2123 }
 0xdd4   : > { %v2125_v18 = vsub.f32 %v2116_v5, %v2124_v17 }
 0xdd6   : > { %v2126_v19 = vmul.f32 1.442695, %v2125_v18  ;;  %v1835_v18 = vld [vmem:[%s4306_s30 + $0x8] sm:$0xf] }
 0xdd7   : > { %v2135_v30 = vpop.permute.xlu1 %2134 }
 0xdd8   : > { %3522 = vpow2.f32 %v2126_v19  ;;  %v2140_v6 = vsel %vm1216_vm5, %v2135_v30, 0  ;;  %v2390_v19 = vsel %vm1216_vm5, %v1835_v18, 0 }
 0xddb   : > { %v2278_v44 = vpop.permute.xlu1 %2277 }
 0xddc   : > { %v2283_v50 = vsel %vm1151_vm3, %v2278_v44, 0 }
 0xde2   : > { %v3523_v20 = vpop.eup %3522 }
 0xde3   : > { %v2128_v23 = vsel %vm1151_vm3, %v3523_v20, 0.0 }
 0xde4   : > { %2129 = vadd.xlane.f32.xlu0 %v2128_v23 }
 0xdfa   : > { %2022 = vrot.lane.b32.xlu0 %v4037_v53, %s3583_s28 }
 0xdfe   : > { %2275 = vrot.lane.b32.xlu0 %v4049_v21, %s3587_s4  ;;  %v2017_v24 = vpop.xlane.xlu0 %2016  ;;  %s4307_s4 = sld [smem:[#allocation23_spill]] }
 0xdff   : > { %3524 = vrcp.f32 %v2017_v24 }
 0xe09   : > { %v3525_v25 = vpop.eup %3524 }
 0xe0a   : > { %v2019_v27 = vmul.f32 %v3525_v25, %v3521_v15 }
 0xe0c   : > { %v2020_v31 = vpack.c.bf16 %v2019_v27, %v2019_v27 }
 0xe71   : > { %v2130_v26 = vpop.xlane.xlu0 %2129 }
 0xe72   : > { %3526 = vrcp.f32 %v2130_v26 }
 0xe75   : > { %v2023_v28 = vpop.permute.xlu0 %2022 }
 0xe76   : > { %v2028_v29 = vsel %vm1216_vm5, %v2023_v28, 0 }
 0xe77   : > { %3352 = vmatpush3.bf16.msra.mxu0 %v2028_v29 }
 0xe78   : > { %3363 = vmatprep.subr.bf16.mxu0 %v3580_v4 }
 0xe79   : > { %v2276_v52 = vpop.permute.xlu0 %2275 }
 0xe7a   : > { %3354 = vmatmul.mubr.msk.bf16.vlgmr.msra.gmra.mrb[28].mxu0 %vm1151_vm3, %v2020_v31 }
 0xe7b   : > { %3364 = vmatpush3.bf16.msra.mxu0 %v2140_v6  ;;  %3365 = vmatprep.mubr.msk.bf16.mxu0 %vm3581_vm1, %v3580_v4 }
 0xe7c   : > { %v3527_v32 = vpop.eup %3526  ;;  %3375 = vmatprep.subr.bf16.mxu0 %v3580_v4 }
 0xe7d   : > { %v2132_v33 = vmul.f32 %v3527_v32, %v3523_v20 }
 0xe7f   : > { %v2133_v34 = vpack.c.bf16 %v2132_v33, %v2132_v33 }
 0xe82   : > { %3366 = vmatmul.mubr.msk.bf16.vlgmr.msra.gmra.mrb[32].mxu0 %vm1151_vm3, %v2133_v34 }
 0xe83   : > { %3377 = vmatprep.mubr.msk.bf16.mxu0 %vm3581_vm1, %v3580_v4  ;;  %3376 = vmatpush3.bf16.msra.mxu0 %v2233_v36 }
 0xe84   : > { %3387 = vmatprep.subr.bf16.mxu0 %v3580_v4 }
 0xf4d   : > { %v2064_v39 = vpop.f32.mrb[28].mxu0 }
 0xf4e   : > { %v2070_v40 = vpack.c.bf16 %v2064_v39, %v2064_v39  ;;  %v3355_v41 = vpop.f32.mrb[29].mxu0 }
 0xf4f   : > { %v2067_v42 = vpop.f32.mrb[30].mxu0 }
 0xf50   : > { %v3356_v43 = vpop.f32.mrb[31].mxu0  ;;  %3378 = vmatmul.mubr.msk.bf16.vlgmr.msra.gmra.mrb[36].mxu0 %vm1151_vm3, %v2070_v40 }
 0xf51   : > { %3389 = vmatprep.mubr.msk.bf16.mxu0 %vm3581_vm1, %v3580_v4 }
 0xf55   : > { %v2176_v45 = vpop.f32.mrb[32].mxu0 }
 0xf56   : > { %v2182_v47 = vpack.c.bf16 %v2176_v45, %v2176_v45  ;;  %v3367_v48 = vpop.f32.mrb[33].mxu0 }
 0xf57   : > { %v2179_v49 = vpop.f32.mrb[34].mxu0 }
 0xf58   : > { %v3368_v51 = vpop.f32.mrb[35].mxu0  ;;  %3372 = vmatmul.mubr.msk.bf16.vlgmr.msra.gmra.mrb[40].mxu1 %vm1151_vm3, %v2182_v47  ;;  %v1836_v47 = vld [vmem:[%s4306_s30 + $0xc] sm:$0xf] }
 0xf59   : > { %3382 = vmatpush3.bf16.xpose.msra.mxu1 %v2283_v50  ;;  %3383 = vmatprep.mubr.msk.bf16.mxu1 %vm3581_vm1, %v3580_v4  ;;  %v2548_v48 = vsel %vm1216_vm5, %v1836_v47, 0 }
 0xf5a   : > { %3393 = vmatprep.subr.bf16.mxu1 %v3580_v4 }
 0xf60   : > { %3384 = vmatmul.mubr.msk.bf16.vlgmr.msra.gmra.mrb[44].mxu1 %vm1151_vm3, %v2276_v52 }
 0xf61   : > { %3395 = vmatprep.mubr.msk.bf16.mxu1 %vm3581_vm1, %v3580_v4  ;;  %3394 = vmatpush3.bf16.msra.mxu1 %v2390_v19 }
 0xf62   : > { %3405 = vmatprep.subr.bf16.mxu1 %v3580_v4 }
0x1023   : > { %v2269_v54 = vpop.f32.mrb[36].mxu0 }
0x1024   : > { %v3379_v55 = vpop.f32.mrb[37].mxu0 }
0x1025   : > { %v2272_v56 = vpop.f32.mrb[38].mxu0 }
0x1026   : > { %v3380_v57 = vpop.f32.mrb[39].mxu0 }
0x102b   : > { %v2223_v58 = vpop.f32.mrb[40].mxu1 }
0x102c   : > { %v4101_v59 = vadd.f32 %v2269_v54, %v2223_v58  ;;  %v3373_v60 = vpop.f32.mrb[41].mxu1 }
0x102d   : > { %v2226_v61 = vpop.f32.mrb[42].mxu1 }
0x102e   : > { %v3374_v22 = vpop.f32.mrb[43].mxu1 }
0x1033   : > { %v2319_v62 = vpop.f32.mrb[44].mxu1 }
0x1034   : > { %v3385_v63 = vpop.f32.mrb[45].mxu1  ;;  %v2325_v0 = vsel %vm1151_vm3, %v2319_v62, -inf }
0x1035   : > { %2326 = vmax.xlane.f32.xlu1 %v2325_v0  ;;  %v2322_v13 = vpop.f32.mrb[46].mxu1 }
0x1036   : > { %v3386_v1 = vpop.f32.mrb[47].mxu1  ;;  %v3496_v13 = vld [vmem:[%s3826_s5] sm:$0xff]  }
0x1037   : > { %v3497_v1 = vld [vmem:[%s3826_s5 + $0x8] sm:$0xff]  }
0x1046   : > { %2435 = vrot.lane.b32.xlu1 %v4037_v53, %s3590_s20 }
0x104a   : > { %2433 = vrot.lane.b32.xlu1 %v4049_v21, %s3590_s20  ;;  %s4309_s20 = sld [smem:[#allocation24_spill]] }
0x1050   : > { %s4310_s16 = scalar_lea.vmem %s4309_s20, %s3749_s2 }
0x10c2   : > { %v2327_v2 = vpop.xlane.xlu1 %2326 }
0x10c3   : > { %v2328_v3 = vsub.f32 %v2319_v62, %v2327_v2  ;;  %v3498_v2 = vld [vmem:[%s3836_s14] sm:$0xff]  }
0x10c5   : > { %v2329_v5 = vmul.f32 1.442695, %v2328_v3  ;;  %v3499_v3 = vld [vmem:[%s3836_s14 + $0x8] sm:$0xff]  }
0x10c6   : > { %v2436_v14 = vpop.permute.xlu1 %2435 }
0x10c7   : > { %3528 = vpow2.f32 %v2329_v5  ;;  %v2441_v16 = vsel %vm1151_vm3, %v2436_v14, 0  ;;  %v3160_v14 = vld [vmem:[%s4310_s16] ss:$0 sm:$0xff] }
0x10ca   : > { %v2434_v17 = vpop.permute.xlu1 %2433 }
0x10d1   : > { %v3529_v7 = vpop.eup %3528 }
0x10d2   : > { %v2331_v8 = vsel %vm1151_vm3, %v3529_v7, 0.0 }
0x10d3   : > { %2332 = vadd.xlane.f32.xlu0 %v2331_v8 }
0x10e9   : > { %2337 = vrot.lane.b32.xlu0 %v4037_v53, %s3588_s21  ;;  %s4308_s21 = scalar_lea.vmem %s4307_s4, %s3749_s2 }
0x10ea   : > { %v3159_v55 = vld [vmem:[%s4308_s21] ss:$0 sm:$0xff] }
0x1160   : > { %v2333_v9 = vpop.xlane.xlu0 %2332 }
0x1161   : > { %3530 = vrcp.f32 %v2333_v9 }
0x1164   : > { %v2338_v10 = vpop.permute.xlu0 %2337 }
0x1165   : > { %v2343_v11 = vsel %vm1216_vm5, %v2338_v10, 0 }
0x1166   : > { %3388 = vmatpush3.bf16.msra.mxu0 %v2343_v11 }
0x1167   : > { %3399 = vmatprep.subr.bf16.mxu0 %v3580_v4 }
0x116b   : > { %v3531_v21 = vpop.eup %3530 }
0x116c   : > { %v2335_v12 = vmul.f32 %v3531_v21, %v3529_v7 }
0x116e   : > { %v2336_v15 = vpack.c.bf16 %v2335_v12, %v2335_v12 }
0x1170   : > { %3390 = vmatmul.mubr.msk.bf16.vlgmr.msra.gmra.mrb[40].mxu0 %vm1151_vm3, %v2336_v15 }
0x1171   : > { %3400 = vmatpush3.bf16.xpose.msra.mxu0 %v2441_v16  ;;  %3401 = vmatprep.mubr.msk.bf16.mxu0 %vm3581_vm1, %v3580_v4  ;;  %v3161_v16 = vld [vmem:[%s4312_s6] ss:$0 sm:$0xff] }
0x1172   : > { %3411 = vmatprep.subr.bf16.mxu0 %v3580_v4 }
0x1178   : > { %3402 = vmatmul.mubr.msk.bf16.vlgmr.msra.gmra.mrb[44].mxu0 %vm1151_vm3, %v2434_v17 }
0x1179   : > { %3413 = vmatprep.mubr.msk.bf16.mxu0 %vm3581_vm1, %v3580_v4  ;;  %3412 = vmatpush3.bf16.msra.mxu0 %v2548_v48 }
0x117a   : > { %3425 = vmatprep.subr.bf16.mxu0 %v3580_v4 }
0x1243   : > { %v2379_v20 = vpop.f32.mrb[40].mxu0 }
0x1244   : > { %v2385_v23 = vpack.c.bf16 %v2379_v20, %v2379_v20  ;;  %v3391_v24 = vpop.f32.mrb[41].mxu0  ;;  %v3500_v20 = vld [vmem:[%s3836_s14 + $0x10] sm:$0xff]  }
0x1245   : > { %v2382_v25 = vpop.f32.mrb[42].mxu0  ;;  %v3162_v24 = vld [vmem:[%s4314_s19] ss:$0 sm:$0xff] }
0x1246   : > { %v3392_v26 = vpop.f32.mrb[43].mxu0  ;;  %3396 = vmatmul.mubr.msk.bf16.vlgmr.msra.gmra.mrb[48].mxu1 %vm1151_vm3, %v2385_v23  ;;  %v3501_v23 = vld [vmem:[%s3836_s14 + $0x18] sm:$0xff]  }
0x1247   : > { %3407 = vmatprep.mubr.msk.bf16.mxu1 %vm3581_vm1, %v3580_v4 }
0x124b   : > { %v2477_v27 = vpop.f32.mrb[44].mxu0 }
0x124c   : > { %v3403_v28 = vpop.f32.mrb[45].mxu0  ;;  %v2483_v29 = vsel %vm1151_vm3, %v2477_v27, -inf }
0x124d   : > { %2484 = vmax.xlane.f32.xlu0 %v2483_v29  ;;  %v2480_v30 = vpop.f32.mrb[46].mxu0 }
0x124e   : > { %v3404_v31 = vpop.f32.mrb[47].mxu0 }
0x1263   : > { %2495 = vrot.lane.b32.xlu0 %v4037_v53, %s3589_s22 }
0x12da   : > { %v2485_v6 = vpop.xlane.xlu0 %2484 }
0x12db   : > { %v2486_v32 = vsub.f32 %v2477_v27, %v2485_v6 }
0x12dd   : > { %v2487_v33 = vmul.f32 1.442695, %v2486_v32 }
0x12de   : > { %v2496_v34 = vpop.permute.xlu0 %2495 }
0x12df   : > { %3532 = vpow2.f32 %v2487_v33  ;;  %v2501_v35 = vsel %vm1216_vm5, %v2496_v34, 0 }
0x12e0   : > { %3406 = vmatpush3.bf16.msra.mxu1 %v2501_v35 }
0x12e1   : > { %3417 = vmatprep.subr.bf16.mxu1 %v3580_v4 }
0x12e9   : > { %v3533_v36 = vpop.eup %3532 }
0x12ea   : > { %v2489_v37 = vsel %vm1151_vm3, %v3533_v36, 0.0 }
0x12eb   : > { %2490 = vadd.xlane.f32.xlu1 %v2489_v37 }
0x1319   : > { %v2426_v38 = vpop.f32.mrb[48].mxu1 }
0x131a   : > { %v2432_v39 = vadd.f32 %v2426_v38, %v4101_v59  ;;  %v3397_v40 = vpop.f32.mrb[49].mxu1 }
0x131b   : > { %v2429_v53 = vpop.f32.mrb[50].mxu1 }
0x131c   : > { %v3398_v41 = vpop.f32.mrb[51].mxu1 }
0x1378   : > { %v2491_v42 = vpop.xlane.xlu1 %2490 }
0x1379   : > { %3534 = vrcp.f32 %v2491_v42 }
0x1383   : > { %v3535_v43 = vpop.eup %3534 }
0x1384   : > { %v2493_v44 = vmul.f32 %v3535_v43, %v3533_v36 }
0x1386   : > { %v2494_v45 = vpack.c.bf16 %v2493_v44, %v2493_v44 }
0x1388   : > { %3408 = vmatmul.mubr.msk.bf16.vlgmr.msra.gmra.mrb[52].mxu1 %vm1151_vm3, %v2494_v45 }
0x1389   : > { %3421 = vmatprep.mubr.msk.bf16.mxu1 %vm3581_vm1, %v3580_v4  ;;  %3418 = vmatpush3.bf16.msra.mxu1 %v3496_v13 }
0x138a   : > { %3419 = vmatprep.subr.bf16.mxu1 %v3580_v4 }
0x138d   : > { %3420 = vmatpush3.bf16.msra.mxu1 %v3497_v1 }
0x145b   : > { %v2537_v49 = vpop.f32.mrb[52].mxu1 }
0x145c   : > { %v2543_v50 = vpack.c.bf16 %v2537_v49, %v2537_v49  ;;  %v3409_v51 = vpop.f32.mrb[53].mxu1  ;;  %v3172_v49 = vld [vmem:[%s1049_s11] ss:$0 sm:$0xff] }
0x145d   : > { %v2540_v52 = vpop.f32.mrb[54].mxu1  ;;  %v3173_v51 = vld [vmem:[%s1052_s15] ss:$0 sm:$0xff] }
0x145e   : > { %v3410_v54 = vpop.f32.mrb[55].mxu1  ;;  %3414 = vmatmul.mubr.msk.bf16.vlgmr.msra.gmra.mrb[48].mxu0 %vm1151_vm3, %v2543_v50 }
0x145f   : > { %3433 = vmatprep.mubr.msk.bf16.mxu0 %vm3581_vm1, %v3580_v4  ;;  %3426 = vmatpush3.bf16.msra.mxu0 %v3498_v2 }
0x1460   : > { %3427 = vmatprep.subr.bf16.mxu0 %v3580_v4 }
0x1463   : > { %3428 = vmatpush3.bf16.msra.mxu0 %v3499_v3 }
0x1464   : > { %3429 = vmatprep.subr.bf16.mxu0 %v3580_v4 }
0x1467   : > { %3430 = vmatpush3.bf16.msra.mxu0 %v3500_v20 }
0x1468   : > { %3431 = vmatprep.subr.bf16.mxu0 %v3580_v4  ;;  %v3166_v4 = vld [vmem:[%s1046_s1] ss:$0 sm:$0xff] }
0x146b   : > { %3432 = vmatpush3.bf16.msra.mxu0 %v3501_v23 }
0x1531   : > { %v2584_v56 = vpop.f32.mrb[48].mxu0 }
0x1532   : > { %v2590_v57 = vadd.f32 %v2584_v56, %v2432_v39  ;;  %v3415_v58 = vpop.f32.mrb[49].mxu0 }
0x1533   : > { %v2587_v59 = vpop.f32.mrb[50].mxu0 }
0x1534   : > { %v2597_v60 = vadd.f32 %v3159_v55, %v2590_v57  ;;  %v3416_v61 = vpop.f32.mrb[51].mxu0 }
0x1536   : > { %v2598_v22 = vadd.f32 %v2597_v60, %v4025_v46 }
0x1538   : > { %v2601_v62 = vsel %vm1098_vm2, %v2598_v22, 0.0  ;;  %v2605_v63 = vmul.f32 %v2598_v22, %v2598_v22 }
0x1539   : > { %2602 = vadd.xlane.f32.xlu1 %v2601_v62 }
0x153a   : > { %v2606_v0 = vsel %vm1098_vm2, %v2605_v63, 0.0 }
0x153d   : > { %2607 = vadd.xlane.f32.xlu1 %v2606_v0 }
0x15c6   : > { %v2603_v46 = vpop.xlane.xlu1 %2602 }
0x15c7   : > { %v2604_v5 = vmul.f32 0.03125, %v2603_v46 }
0x15c9   : > { %v2610_v8 = vmul.f32 %v2604_v5, %v2604_v5  ;;  %v2612_v21 = vsub.f32 %v2598_v22, %v2604_v5 }
0x15ca   : > { %v2608_v7 = vpop.xlane.xlu1 %2607 }
0x15cb   : > { %v2609_v9 = vmul.f32 0.03125, %v2608_v7 }
0x15cd   : > { %v2611_v10 = vsub.f32 %v2609_v9, %v2610_v8 }
0x15cf   : > { %v2613_v11 = vadd.f32 1e-05, %v2611_v10 }
0x15d1   : > { %3536 = vrsqrt.f32 %v2613_v11 }
0x15db   : > { %v3537_v12 = vpop.eup %3536 }
0x15dc   : > { %v2615_v15 = vmul.f32 %v3537_v12, %v2612_v21 }
0x15de   : > { %v2622_v17 = vmul.f32 %v3160_v14, %v2615_v15 }
0x15e0   : > { %v2629_v18 = vadd.f32 %v3161_v16, %v2622_v17 }
0x15e2   : > { %v2644_v19 = vpack.c.bf16 %v2629_v18, %v2629_v18 }
0x15e4   : > { %3422 = vmatmul.mubr.msk.bf16.vlgmr.msra.gmra.mrb[56].mxu1 %vm1098_vm2, %v2644_v19 }
0x16b7   : > { %v2700_v25 = vpop.f32.mrb[56].mxu1 }
0x16b8   : > { %v2701_v26 = vadd.f32 %v3162_v24, %v2700_v25  ;;  %v3423_v27 = vpop.f32.mrb[57].mxu1 }
0x16b9   : > { %v2703_v28 = vpop.f32.mrb[58].mxu1 }
0x16ba   : > { %v2706_v29 = vmax.f32 %v2701_v26, 0.0  ;;  %v3424_v30 = vpop.f32.mrb[59].mxu1 }
0x16bc   : > { %v2707_v31 = vpack.c.bf16 %v2706_v29, %v2706_v29 }
0x16be   : > { %3434 = vmatmul.mubr.msk.bf16.vlgmr.msra.gmra.mrb[52].mxu0 %vm2738_vm6, %v2707_v31 }
0x1791   : > { %v2776_v6 = vpop.f32.mrb[52].mxu0 }
0x1792   : > { %v2777_v32 = vadd.f32 %v3166_v4, %v2776_v6  ;;  %v3435_v33 = vpop.f32.mrb[53].mxu0 }
0x1793   : > { %v2779_v34 = vpop.f32.mrb[54].mxu0 }
0x1794   : > { %v2782_v35 = vadd.f32 %v2777_v32, %v2629_v18  ;;  %v3436_v36 = vpop.f32.mrb[55].mxu0 }
0x1796   : > { %v2785_v37 = vsel %vm1098_vm2, %v2782_v35, 0.0  ;;  %v2789_v38 = vmul.f32 %v2782_v35, %v2782_v35 }
0x1797   : > { %2786 = vadd.xlane.f32.xlu1 %v2785_v37 }
0x1798   : > { %v2790_v39 = vsel %vm1098_vm2, %v2789_v38, 0.0 }
0x179b   : > { %2791 = vadd.xlane.f32.xlu1 %v2790_v39 }
0x1824   : > { %v2787_v40 = vpop.xlane.xlu1 %2786 }
0x1825   : > { %v2788_v53 = vmul.f32 0.03125, %v2787_v40 }
0x1827   : > { %v2794_v42 = vmul.f32 %v2788_v53, %v2788_v53  ;;  %v2796_v47 = vsub.f32 %v2782_v35, %v2788_v53 }
0x1828   : > { %v2792_v41 = vpop.xlane.xlu1 %2791 }
0x1829   : > { %v2793_v43 = vmul.f32 0.03125, %v2792_v41 }
0x182b   : > { %v2795_v44 = vsub.f32 %v2793_v43, %v2794_v42 }
0x182d   : > { %v2797_v45 = vadd.f32 1e-05, %v2795_v44 }
0x182f   : > { %3538 = vrsqrt.f32 %v2797_v45 }
0x1839   : > { %v3539_v48 = vpop.eup %3538 }
0x183a   : > { %v2799_v50 = vmul.f32 %v3539_v48, %v2796_v47  ;;  %2818 = sbr.rel (%p3174_p8) target bundleno = 6209 (0x1841), region = 120 }
0x183c   : > { %v2806_v52 = vmul.f32 %v3172_v49, %v2799_v50 }
0x183e   : > { %v2813_v54 = vadd.f32 %v3173_v51, %v2806_v52 }
0x1840   : > { %2814 = vst.msk [vmem:[#allocation2] sm:$0xff] %vm1098_vm2, %v2813_v54  ;;  %2819 = vst.msk [vmem:[%s3853_s13] sm:$0xff] (!%p3174_p8), %vm1098_vm2, %v2813_v54 }
0x1841 PF: > { %s4319_s4 = sld [smem:[#allocation6_spill]]  ;;  %s4321_s30 = sld [smem:[#allocation5_spill]] }
0x1842   : > { %s4322_s24 = sld [smem:[#allocation7_spill]]  ;;  %s4323_s25 = sld [smem:[#allocation8_spill]] }
0x1847   : > { %s33_s5 = sadd.s32 1, %s4319_s4   ;;  %s4320_s4 = sld [smem:[#allocation4_spill]] }
0x1848   : > { %p30_p9 = scmp.ge.s32.totalorder %s33_s5, 6  }
0x184a   :  { %32 = sbr.rel (!%p30_p9) target bundleno = 22 (0x16), region = 213 }

</bundles_post_ra>
